<compile_context>
chip_gen: v5e
topology: v5e:2x2
jax: 0.10.0
libtpu: 0.0.40
codegen_flags: <defaults>
</compile_context>

<pallas_src>
import functools
import math

import jax
import jax.numpy as jnp
from jax import lax
from jax.experimental import pallas as pl
from jax.experimental.pallas import tpu as pltpu


# ---------------------------------------------------------------------------
# Pallas kernel: in-kernel input projections + sequential GRU recurrences
# (A and L) + fused 'cat' linear head.
# ---------------------------------------------------------------------------
def mm_gru_kernel(xa_ref, xl_ref,
                  wih_a_ref, bih_a_ref,
                  wih_l_ref, bih_l_ref,
                  whh_a_ref, bhn_a_ref,
                  whh_l_ref, bhn_l_ref,
                  wlin_a_ref, wlin_l_ref, blin_ref,
                  out_ref,
                  gia_scr, gil_scr,
                  *, batch, seq_len):
    B, T = batch, seq_len
    H = whh_a_ref.shape[0]          # PyTorch gate order [r, z, n]; G = 3H

    # --- Prologue: input projections for ALL timesteps, one MXU dot per
    # modality, written to VMEM scratch (time-major rows: row t*B+b = x[b,t]).
    # b_ih already has b_hr/b_hz folded in by the wrapper.
    gia_scr[...] = (jnp.dot(xa_ref[...], wih_a_ref[...],
                            preferred_element_type=jnp.float32)
                    + bih_a_ref[...])
    gil_scr[...] = (jnp.dot(xl_ref[...], wih_l_ref[...],
                            preferred_element_type=jnp.float32)
                    + bih_l_ref[...])

    # Small loop-invariant biases (only b_hn survives inside the loop).
    bhn_a = jnp.broadcast_to(bhn_a_ref[...], (B, H))
    bhn_l = jnp.broadcast_to(bhn_l_ref[...], (B, H))

    def cell(gi, h, whh_ref, bhn):
        # W_hh is consumed directly from its VMEM ref — never hoisted into the
        # register file with a live range spanning the unrolled recurrence.
        gh = jnp.dot(h, whh_ref[...], preferred_element_type=jnp.float32)
        r = jax.nn.sigmoid(gi[:, 0 * H:1 * H] + gh[:, 0 * H:1 * H])
        z = jax.nn.sigmoid(gi[:, 1 * H:2 * H] + gh[:, 1 * H:2 * H])
        n = jnp.tanh(gi[:, 2 * H:3 * H] + r * (gh[:, 2 * H:3 * H] + bhn))
        return (1.0 - z) * n + z * h

    h_a = jnp.zeros((B, H), jnp.float32)
    h_l = jnp.zeros((B, H), jnp.float32)

    if T <= 16:
        # Short fixed trip count: static Python unroll -> static VMEM slices,
        # full LLO scheduler visibility.
        for t in range(T):
            gi_a = gia_scr[t * B:(t + 1) * B, :]
            gi_l = gil_scr[t * B:(t + 1) * B, :]
            h_a = cell(gi_a, h_a, whh_a_ref, bhn_a)
            h_l = cell(gi_l, h_l, whh_l_ref, bhn_l)
    else:
        # Guarded unroll for long sequences (avoid code-size / vreg blowup).
        def step(t, carry):
            ha, hl = carry
            row = t * B
            ha = cell(gia_scr[pl.ds(row, B), :], ha, whh_a_ref, bhn_a)
            hl = cell(gil_scr[pl.ds(row, B), :], hl, whh_l_ref, bhn_l)
            return (ha, hl)
        h_a, h_l = lax.fori_loop(0, T, step, (h_a, h_l), unroll=8)

    # --- 'cat' fusion + Linear head without a lane-axis concatenate:
    #   concat([h_a, h_l]) @ W == h_a @ W[:H] + h_l @ W[H:]
    y = (jnp.dot(h_a, wlin_a_ref[...], preferred_element_type=jnp.float32)
         + jnp.dot(h_l, wlin_l_ref[...], preferred_element_type=jnp.float32)
         + blin_ref[...])
    out_ref[...] = y.astype(out_ref.dtype)


# ---------------------------------------------------------------------------
# Wrapper
# ---------------------------------------------------------------------------
def my_multimodal_gru_forward(x_A, x_L, params):
    """Returns output of shape (B, 1, outputSize) — matches the PyTorch module."""
    B, T, FA = x_A.shape
    _, _, FL = x_L.shape
    H = params["whh_A"].shape[0]
    G = 3 * H
    O = params["w_lin"].shape[1]
    O_pad = ((O + 127) // 128) * 128              # lane-dense head / unmasked vst

    # Time-major flatten of the (tiny) raw inputs so per-step gi rows are
    # contiguous in the VMEM scratch (row t*B+b).
    xa = jnp.swapaxes(x_A.astype(jnp.float32), 0, 1).reshape(T * B, FA)
    xl = jnp.swapaxes(x_L.astype(jnp.float32), 0, 1).reshape(T * B, FL)

    # Fold b_hr, b_hz into the input bias; keep b_hn (inside r*(...)) separate.
    bih_A = params["bih_A"].at[:, :2 * H].add(params["bhh_A"][:, :2 * H])
    bih_L = params["bih_L"].at[:, :2 * H].add(params["bhh_L"][:, :2 * H])
    bhn_A = params["bhh_A"][:, 2 * H:]            # (1, H)
    bhn_L = params["bhh_L"][:, 2 * H:]            # (1, H)

    # 'cat' head: split weight (avoids in-kernel concat) and pad O to 128 lanes.
    w_lin = jnp.pad(params["w_lin"], ((0, 0), (0, O_pad - O)))
    b_lin = jnp.pad(params["b_lin"], ((0, 0), (0, O_pad - O)))
    w_lin_A, w_lin_L = w_lin[:H, :], w_lin[H:, :]

    kernel = functools.partial(mm_gru_kernel, batch=B, seq_len=T)
    full = lambda shape: pl.BlockSpec(shape, lambda i: tuple(0 for _ in shape))

    out = pl.pallas_call(
        kernel,
        out_shape=jax.ShapeDtypeStruct((B, O_pad), jnp.float32),
        grid_spec=pltpu.PrefetchScalarGridSpec(
            num_scalar_prefetch=0,
            grid=(1,),                       # whole recurrence in one program
            in_specs=[
                full((T * B, FA)), full((T * B, FL)),        # x_A, x_L
                full((FA, G)), full((1, G)),                 # wih_A, bih_A(folded)
                full((FL, G)), full((1, G)),                 # wih_L, bih_L(folded)
                full((H, G)), full((1, H)),                  # whh_A, bhn_A
                full((H, G)), full((1, H)),                  # whh_L, bhn_L
                full((H, O_pad)), full((H, O_pad)),          # w_lin_A, w_lin_L
                full((1, O_pad)),                            # b_lin
            ],
            out_specs=pl.BlockSpec((B, O_pad), lambda i: (0, 0)),
            scratch_shapes=[pltpu.VMEM((T * B, G), jnp.float32),   # gi_A
                            pltpu.VMEM((T * B, G), jnp.float32)],  # gi_L
        ),
        compiler_params=pltpu.CompilerParams(
            dimension_semantics=("arbitrary",)),
    )(
        xa, xl,
        params["wih_A"], bih_A,
        params["wih_L"], bih_L,
        params["whh_A"], bhn_A,
        params["whh_L"], bhn_L,
        w_lin_A, w_lin_L, b_lin,
    )
    return out[:, :O][:, None, :]                 # (B, 1, O)


# ---------------------------------------------------------------------------
# Parameters & pure-JAX reference
# ---------------------------------------------------------------------------
def init_params(key, featSizeA, featSizeL, hidden_size, output_size):
    """PyTorch-style uniform(-1/sqrt(H), 1/sqrt(H)) init; weights pre-transposed."""
    H = hidden_size
    bound = 1.0 / math.sqrt(H)
    keys = jax.random.split(key, 12)
    u = lambda k, shape: jax.random.uniform(k, shape, jnp.float32, -bound, bound)
    return {
        # GRU_A (stored transposed relative to torch: (in, 3H), gate order [r,z,n])
        "wih_A": u(keys[0], (featSizeA, 3 * H)),
        "whh_A": u(keys[1], (H, 3 * H)),
        "bih_A": u(keys[2], (1, 3 * H)),
        "bhh_A": u(keys[3], (1, 3 * H)),
        # GRU_L
        "wih_L": u(keys[4], (featSizeL, 3 * H)),
        "whh_L": u(keys[5], (H, 3 * H)),
        "bih_L": u(keys[6], (1, 3 * H)),
        "bhh_L": u(keys[7], (1, 3 * H)),
        # task head (fusion='cat' -> 2H input), stored transposed (2H, O)
        "w_lin": u(keys[8], (2 * H, output_size)),
        "b_lin": u(keys[9], (1, output_size)),
    }


def _gru_step_ref(x_t, h, wih, whh, bih, bhh):
    H = h.shape[-1]
    gi = x_t @ wih + bih
    gh = h @ whh + bhh
    r = jax.nn.sigmoid(gi[:, 0 * H:1 * H] + gh[:, 0 * H:1 * H])
    z = jax.nn.sigmoid(gi[:, 1 * H:2 * H] + gh[:, 1 * H:2 * H])
    n = jnp.tanh(gi[:, 2 * H:3 * H] + r * gh[:, 2 * H:3 * H])
    return (1.0 - z) * n + z * h


def _reference_forward(x_A, x_L, params):
    """Plain-JAX reference replicating torch nn.GRU + Linear semantics."""
    def run_gru(x, wih, whh, bih, bhh):
        B = x.shape[0]
        H = whh.shape[0]
        h0 = jnp.zeros((B, H), jnp.float32)

        def step(h, x_t):
            return _gru_step_ref(x_t, h, wih, whh, bih, bhh), None

        h_last, _ = jax.lax.scan(step, h0, jnp.swapaxes(x, 0, 1))
        return h_last

    h_a = run_gru(x_A, params["wih_A"], params["whh_A"],
                  params["bih_A"], params["bhh_A"])
    h_l = run_gru(x_L, params["wih_L"], params["whh_L"],
                  params["bih_L"], params["bhh_L"])
    fused = jnp.concatenate([h_a, h_l], axis=-1)
    y = fused @ params["w_lin"] + params["b_lin"]
    return y[:, None, :]


if __name__ == "__main__":
    B, T = 2, 8
    featSizeA, featSizeL = 16, 24
    hidden_size = 128          # module default
    output_size = 1            # outputSizes=[1]

    key = jax.random.PRNGKey(0)
    k_xa, k_xl, k_p = jax.random.split(key, 3)
    x_A = jax.random.normal(k_xa, (B, T, featSizeA), jnp.float32)
    x_L = jax.random.normal(k_xl, (B, T, featSizeL), jnp.float32)
    params = init_params(k_p, featSizeA, featSizeL, hidden_size, output_size)

    fwd = jax.jit(my_multimodal_gru_forward)
    out = jax.block_until_ready(fwd(x_A, x_L, params))
    ref = jax.block_until_ready(_reference_forward(x_A, x_L, params))

    assert out.shape == (B, 1, output_size)
    assert jnp.allclose(out, ref, rtol=1e-4, atol=1e-4), (out, ref)

    print("KERNEL_OK")
</pallas_src>

<mosaic_0001>
module attributes {stable_mosaic.version = 11 : i64} {
  func.func @mm_gru_kernel(%arg0: i32, %arg1: memref<16x16xf32, #tpu.memory_space<vmem>>, %arg2: memref<16x24xf32, #tpu.memory_space<vmem>>, %arg3: memref<16x384xf32, #tpu.memory_space<vmem>>, %arg4: memref<1x384xf32, #tpu.memory_space<vmem>>, %arg5: memref<24x384xf32, #tpu.memory_space<vmem>>, %arg6: memref<1x384xf32, #tpu.memory_space<vmem>>, %arg7: memref<128x384xf32, #tpu.memory_space<vmem>>, %arg8: memref<1x128xf32, #tpu.memory_space<vmem>>, %arg9: memref<128x384xf32, #tpu.memory_space<vmem>>, %arg10: memref<1x128xf32, #tpu.memory_space<vmem>>, %arg11: memref<128x128xf32, #tpu.memory_space<vmem>>, %arg12: memref<128x128xf32, #tpu.memory_space<vmem>>, %arg13: memref<1x128xf32, #tpu.memory_space<vmem>>, %arg14: memref<2x128xf32, #tpu.memory_space<vmem>>, %arg15: memref<16x384xf32, #tpu.memory_space<vmem>>, %arg16: memref<16x384xf32, #tpu.memory_space<vmem>>) attributes {dimension_semantics = [#tpu.dimension_semantics<arbitrary>], iteration_bounds = array<i64: 1>, scalar_prefetch = 0 : i64, scratch_operands = 2 : i64, tpu.core_type = #tpu.core_type<tc>, window_params = [{pipeline_mode = #tpu.pipeline_mode<synchronous>, transform_indices = @transform_0, window_bounds = array<i64: 16, 16>}, {pipeline_mode = #tpu.pipeline_mode<synchronous>, transform_indices = @transform_1, window_bounds = array<i64: 16, 24>}, {pipeline_mode = #tpu.pipeline_mode<synchronous>, transform_indices = @transform_2, window_bounds = array<i64: 16, 384>}, {pipeline_mode = #tpu.pipeline_mode<synchronous>, transform_indices = @transform_3, window_bounds = array<i64: 1, 384>}, {pipeline_mode = #tpu.pipeline_mode<synchronous>, transform_indices = @transform_4, window_bounds = array<i64: 24, 384>}, {pipeline_mode = #tpu.pipeline_mode<synchronous>, transform_indices = @transform_5, window_bounds = array<i64: 1, 384>}, {pipeline_mode = #tpu.pipeline_mode<synchronous>, transform_indices = @transform_6, window_bounds = array<i64: 128, 384>}, {pipeline_mode = #tpu.pipeline_mode<synchronous>, transform_indices = @transform_7, window_bounds = array<i64: 1, 128>}, {pipeline_mode = #tpu.pipeline_mode<synchronous>, transform_indices = @transform_8, window_bounds = array<i64: 128, 384>}, {pipeline_mode = #tpu.pipeline_mode<synchronous>, transform_indices = @transform_9, window_bounds = array<i64: 1, 128>}, {pipeline_mode = #tpu.pipeline_mode<synchronous>, transform_indices = @transform_10, window_bounds = array<i64: 128, 128>}, {pipeline_mode = #tpu.pipeline_mode<synchronous>, transform_indices = @transform_11, window_bounds = array<i64: 128, 128>}, {pipeline_mode = #tpu.pipeline_mode<synchronous>, transform_indices = @transform_12, window_bounds = array<i64: 1, 128>}, {pipeline_mode = #tpu.pipeline_mode<synchronous>, transform_indices = @transform_13, window_bounds = array<i64: 2, 128>}]} {
    %c0 = arith.constant 0 : index
    %c0_0 = arith.constant 0 : index
    %0 = vector.load %arg1[%c0, %c0_0] : memref<16x16xf32, #tpu.memory_space<vmem>>, vector<16x16xf32>
    %c0_1 = arith.constant 0 : index
    %c0_2 = arith.constant 0 : index
    %1 = vector.load %arg3[%c0_1, %c0_2] : memref<16x384xf32, #tpu.memory_space<vmem>>, vector<16x384xf32>
    %cst = arith.constant dense<0.000000e+00> : vector<16x384xf32>
    %2 = tpu.matmul %0, %1, %cst {dimension_numbers = #tpu.dot_dimension_numbers<[1], [0], [0], [1], [0, 0, 1, 1], [], []>} : vector<16x16xf32>, vector<16x384xf32>, vector<16x384xf32> -> vector<16x384xf32>
    %c0_3 = arith.constant 0 : index
    %c0_4 = arith.constant 0 : index
    %3 = vector.load %arg4[%c0_3, %c0_4] : memref<1x384xf32, #tpu.memory_space<vmem>>, vector<1x384xf32>
    %4 = vector.broadcast %3 : vector<1x384xf32> to vector<16x384xf32>
    %5 = arith.addf %2, %4 : vector<16x384xf32>
    %c0_5 = arith.constant 0 : index
    %c0_6 = arith.constant 0 : index
    %6 = vector.load %arg15[%c0_5, %c0_6] : memref<16x384xf32, #tpu.memory_space<vmem>>, vector<16x384xf32>
    tpu.vector_store %arg15[%c0_5, %c0_6], %5 {strides = array<i32>} : memref<16x384xf32, #tpu.memory_space<vmem>>, vector<16x384xf32>,
    %c0_7 = arith.constant 0 : index
    %c0_8 = arith.constant 0 : index
    %7 = vector.load %arg2[%c0_7, %c0_8] : memref<16x24xf32, #tpu.memory_space<vmem>>, vector<16x24xf32>
    %c0_9 = arith.constant 0 : index
    %c0_10 = arith.constant 0 : index
    %8 = vector.load %arg5[%c0_9, %c0_10] : memref<24x384xf32, #tpu.memory_space<vmem>>, vector<24x384xf32>
    %cst_11 = arith.constant dense<0.000000e+00> : vector<16x384xf32>
    %9 = tpu.matmul %7, %8, %cst_11 {dimension_numbers = #tpu.dot_dimension_numbers<[1], [0], [0], [1], [0, 0, 1, 1], [], []>} : vector<16x24xf32>, vector<24x384xf32>, vector<16x384xf32> -> vector<16x384xf32>
    %c0_12 = arith.constant 0 : index
    %c0_13 = arith.constant 0 : index
    %10 = vector.load %arg6[%c0_12, %c0_13] : memref<1x384xf32, #tpu.memory_space<vmem>>, vector<1x384xf32>
    %11 = vector.broadcast %10 : vector<1x384xf32> to vector<16x384xf32>
    %12 = arith.addf %9, %11 : vector<16x384xf32>
    %c0_14 = arith.constant 0 : index
    %c0_15 = arith.constant 0 : index
    %13 = vector.load %arg16[%c0_14, %c0_15] : memref<16x384xf32, #tpu.memory_space<vmem>>, vector<16x384xf32>
    tpu.vector_store %arg16[%c0_14, %c0_15], %12 {strides = array<i32>} : memref<16x384xf32, #tpu.memory_space<vmem>>, vector<16x384xf32>,
    %c0_16 = arith.constant 0 : index
    %c0_17 = arith.constant 0 : index
    %14 = vector.load %arg8[%c0_16, %c0_17] : memref<1x128xf32, #tpu.memory_space<vmem>>, vector<1x128xf32>
    %15 = vector.shape_cast %14 : vector<1x128xf32> to vector<1x128xf32>
    %16 = vector.broadcast %15 : vector<1x128xf32> to vector<2x128xf32>
    %c0_18 = arith.constant 0 : index
    %c0_19 = arith.constant 0 : index
    %17 = vector.load %arg10[%c0_18, %c0_19] : memref<1x128xf32, #tpu.memory_space<vmem>>, vector<1x128xf32>
    %18 = vector.shape_cast %17 : vector<1x128xf32> to vector<1x128xf32>
    %19 = vector.broadcast %18 : vector<1x128xf32> to vector<2x128xf32>
    %cst_20 = arith.constant 0.000000e+00 : f32
    %20 = vector.broadcast %cst_20 : f32 to vector<2x128xf32>
    %cst_21 = arith.constant 0.000000e+00 : f32
    %21 = vector.broadcast %cst_21 : f32 to vector<2x128xf32>
    %c0_22 = arith.constant 0 : index
    %c0_23 = arith.constant 0 : index
    %22 = vector.load %arg15[%c0_22, %c0_23] : memref<16x384xf32, #tpu.memory_space<vmem>>, vector<2x384xf32>
    %c0_24 = arith.constant 0 : index
    %c0_25 = arith.constant 0 : index
    %23 = vector.load %arg16[%c0_24, %c0_25] : memref<16x384xf32, #tpu.memory_space<vmem>>, vector<2x384xf32>
    %c0_26 = arith.constant 0 : index
    %c0_27 = arith.constant 0 : index
    %24 = vector.load %arg7[%c0_26, %c0_27] : memref<128x384xf32, #tpu.memory_space<vmem>>, vector<128x384xf32>
    %cst_28 = arith.constant dense<0.000000e+00> : vector<2x384xf32>
    %25 = tpu.matmul %20, %24, %cst_28 {dimension_numbers = #tpu.dot_dimension_numbers<[1], [0], [0], [1], [0, 0, 1, 1], [], []>} : vector<2x128xf32>, vector<128x384xf32>, vector<2x384xf32> -> vector<2x384xf32>
    %26 = vector.extract_strided_slice %22 {offsets = [0, 0], sizes = [2, 128], strides = [1, 1]} : vector<2x384xf32> to vector<2x128xf32>
    %27 = vector.extract_strided_slice %25 {offsets = [0, 0], sizes = [2, 128], strides = [1, 1]} : vector<2x384xf32> to vector<2x128xf32>
    %28 = arith.addf %26, %27 : vector<2x128xf32>
    %29 = arith.negf %28 : vector<2x128xf32>
    %30 = math.exp %29 : vector<2x128xf32>
    %cst_29 = arith.constant 1.000000e+00 : f32
    %31 = vector.broadcast %cst_29 : f32 to vector<2x128xf32>
    %32 = arith.addf %31, %30 : vector<2x128xf32>
    %33 = arith.divf %31, %32 : vector<2x128xf32>
    %34 = vector.extract_strided_slice %22 {offsets = [0, 128], sizes = [2, 128], strides = [1, 1]} : vector<2x384xf32> to vector<2x128xf32>
    %35 = vector.extract_strided_slice %25 {offsets = [0, 128], sizes = [2, 128], strides = [1, 1]} : vector<2x384xf32> to vector<2x128xf32>
    %36 = arith.addf %34, %35 : vector<2x128xf32>
    %37 = arith.negf %36 : vector<2x128xf32>
    %38 = math.exp %37 : vector<2x128xf32>
    %cst_30 = arith.constant 1.000000e+00 : f32
    %39 = vector.broadcast %cst_30 : f32 to vector<2x128xf32>
    %40 = arith.addf %39, %38 : vector<2x128xf32>
    %41 = arith.divf %39, %40 : vector<2x128xf32>
    %42 = vector.extract_strided_slice %22 {offsets = [0, 256], sizes = [2, 128], strides = [1, 1]} : vector<2x384xf32> to vector<2x128xf32>
    %43 = vector.extract_strided_slice %25 {offsets = [0, 256], sizes = [2, 128], strides = [1, 1]} : vector<2x384xf32> to vector<2x128xf32>
    %44 = arith.addf %43, %16 : vector<2x128xf32>
    %45 = arith.mulf %33, %44 : vector<2x128xf32>
    %46 = arith.addf %42, %45 : vector<2x128xf32>
    %47 = math.tanh %46 : vector<2x128xf32>
    %cst_31 = arith.constant 1.000000e+00 : f32
    %48 = vector.broadcast %cst_31 : f32 to vector<2x128xf32>
    %49 = arith.subf %48, %41 : vector<2x128xf32>
    %50 = arith.mulf %49, %47 : vector<2x128xf32>
    %51 = arith.mulf %41, %20 : vector<2x128xf32>
    %52 = arith.addf %50, %51 : vector<2x128xf32>
    %c0_32 = arith.constant 0 : index
    %c0_33 = arith.constant 0 : index
    %53 = vector.load %arg9[%c0_32, %c0_33] : memref<128x384xf32, #tpu.memory_space<vmem>>, vector<128x384xf32>
    %cst_34 = arith.constant dense<0.000000e+00> : vector<2x384xf32>
    %54 = tpu.matmul %21, %53, %cst_34 {dimension_numbers = #tpu.dot_dimension_numbers<[1], [0], [0], [1], [0, 0, 1, 1], [], []>} : vector<2x128xf32>, vector<128x384xf32>, vector<2x384xf32> -> vector<2x384xf32>
    %55 = vector.extract_strided_slice %23 {offsets = [0, 0], sizes = [2, 128], strides = [1, 1]} : vector<2x384xf32> to vector<2x128xf32>
    %56 = vector.extract_strided_slice %54 {offsets = [0, 0], sizes = [2, 128], strides = [1, 1]} : vector<2x384xf32> to vector<2x128xf32>
    %57 = arith.addf %55, %56 : vector<2x128xf32>
    %58 = arith.negf %57 : vector<2x128xf32>
    %59 = math.exp %58 : vector<2x128xf32>
    %cst_35 = arith.constant 1.000000e+00 : f32
    %60 = vector.broadcast %cst_35 : f32 to vector<2x128xf32>
    %61 = arith.addf %60, %59 : vector<2x128xf32>
    %62 = arith.divf %60, %61 : vector<2x128xf32>
    %63 = vector.extract_strided_slice %23 {offsets = [0, 128], sizes = [2, 128], strides = [1, 1]} : vector<2x384xf32> to vector<2x128xf32>
    %64 = vector.extract_strided_slice %54 {offsets = [0, 128], sizes = [2, 128], strides = [1, 1]} : vector<2x384xf32> to vector<2x128xf32>
    %65 = arith.addf %63, %64 : vector<2x128xf32>
    %66 = arith.negf %65 : vector<2x128xf32>
    %67 = math.exp %66 : vector<2x128xf32>
    %cst_36 = arith.constant 1.000000e+00 : f32
    %68 = vector.broadcast %cst_36 : f32 to vector<2x128xf32>
    %69 = arith.addf %68, %67 : vector<2x128xf32>
    %70 = arith.divf %68, %69 : vector<2x128xf32>
    %71 = vector.extract_strided_slice %23 {offsets = [0, 256], sizes = [2, 128], strides = [1, 1]} : vector<2x384xf32> to vector<2x128xf32>
    %72 = vector.extract_strided_slice %54 {offsets = [0, 256], sizes = [2, 128], strides = [1, 1]} : vector<2x384xf32> to vector<2x128xf32>
    %73 = arith.addf %72, %19 : vector<2x128xf32>
    %74 = arith.mulf %62, %73 : vector<2x128xf32>
    %75 = arith.addf %71, %74 : vector<2x128xf32>
    %76 = math.tanh %75 : vector<2x128xf32>
    %cst_37 = arith.constant 1.000000e+00 : f32
    %77 = vector.broadcast %cst_37 : f32 to vector<2x128xf32>
    %78 = arith.subf %77, %70 : vector<2x128xf32>
    %79 = arith.mulf %78, %76 : vector<2x128xf32>
    %80 = arith.mulf %70, %21 : vector<2x128xf32>
    %81 = arith.addf %79, %80 : vector<2x128xf32>
    %c2 = arith.constant 2 : index
    %c0_38 = arith.constant 0 : index
    %82 = vector.load %arg15[%c2, %c0_38] : memref<16x384xf32, #tpu.memory_space<vmem>>, vector<2x384xf32>
    %c2_39 = arith.constant 2 : index
    %c0_40 = arith.constant 0 : index
    %83 = vector.load %arg16[%c2_39, %c0_40] : memref<16x384xf32, #tpu.memory_space<vmem>>, vector<2x384xf32>
    %c0_41 = arith.constant 0 : index
    %c0_42 = arith.constant 0 : index
    %84 = vector.load %arg7[%c0_41, %c0_42] : memref<128x384xf32, #tpu.memory_space<vmem>>, vector<128x384xf32>
    %cst_43 = arith.constant dense<0.000000e+00> : vector<2x384xf32>
    %85 = tpu.matmul %52, %84, %cst_43 {dimension_numbers = #tpu.dot_dimension_numbers<[1], [0], [0], [1], [0, 0, 1, 1], [], []>} : vector<2x128xf32>, vector<128x384xf32>, vector<2x384xf32> -> vector<2x384xf32>
    %86 = vector.extract_strided_slice %82 {offsets = [0, 0], sizes = [2, 128], strides = [1, 1]} : vector<2x384xf32> to vector<2x128xf32>
    %87 = vector.extract_strided_slice %85 {offsets = [0, 0], sizes = [2, 128], strides = [1, 1]} : vector<2x384xf32> to vector<2x128xf32>
    %88 = arith.addf %86, %87 : vector<2x128xf32>
    %89 = arith.negf %88 : vector<2x128xf32>
    %90 = math.exp %89 : vector<2x128xf32>
    %cst_44 = arith.constant 1.000000e+00 : f32
    %91 = vector.broadcast %cst_44 : f32 to vector<2x128xf32>
    %92 = arith.addf %91, %90 : vector<2x128xf32>
    %93 = arith.divf %91, %92 : vector<2x128xf32>
    %94 = vector.extract_strided_slice %82 {offsets = [0, 128], sizes = [2, 128], strides = [1, 1]} : vector<2x384xf32> to vector<2x128xf32>
    %95 = vector.extract_strided_slice %85 {offsets = [0, 128], sizes = [2, 128], strides = [1, 1]} : vector<2x384xf32> to vector<2x128xf32>
    %96 = arith.addf %94, %95 : vector<2x128xf32>
    %97 = arith.negf %96 : vector<2x128xf32>
    %98 = math.exp %97 : vector<2x128xf32>
    %cst_45 = arith.constant 1.000000e+00 : f32
    %99 = vector.broadcast %cst_45 : f32 to vector<2x128xf32>
    %100 = arith.addf %99, %98 : vector<2x128xf32>
    %101 = arith.divf %99, %100 : vector<2x128xf32>
    %102 = vector.extract_strided_slice %82 {offsets = [0, 256], sizes = [2, 128], strides = [1, 1]} : vector<2x384xf32> to vector<2x128xf32>
    %103 = vector.extract_strided_slice %85 {offsets = [0, 256], sizes = [2, 128], strides = [1, 1]} : vector<2x384xf32> to vector<2x128xf32>
    %104 = arith.addf %103, %16 : vector<2x128xf32>
    %105 = arith.mulf %93, %104 : vector<2x128xf32>
    %106 = arith.addf %102, %105 : vector<2x128xf32>
    %107 = math.tanh %106 : vector<2x128xf32>
    %cst_46 = arith.constant 1.000000e+00 : f32
    %108 = vector.broadcast %cst_46 : f32 to vector<2x128xf32>
    %109 = arith.subf %108, %101 : vector<2x128xf32>
    %110 = arith.mulf %109, %107 : vector<2x128xf32>
    %111 = arith.mulf %101, %52 : vector<2x128xf32>
    %112 = arith.addf %110, %111 : vector<2x128xf32>
    %c0_47 = arith.constant 0 : index
    %c0_48 = arith.constant 0 : index
    %113 = vector.load %arg9[%c0_47, %c0_48] : memref<128x384xf32, #tpu.memory_space<vmem>>, vector<128x384xf32>
    %cst_49 = arith.constant dense<0.000000e+00> : vector<2x384xf32>
    %114 = tpu.matmul %81, %113, %cst_49 {dimension_numbers = #tpu.dot_dimension_numbers<[1], [0], [0], [1], [0, 0, 1, 1], [], []>} : vector<2x128xf32>, vector<128x384xf32>, vector<2x384xf32> -> vector<2x384xf32>
    %115 = vector.extract_strided_slice %83 {offsets = [0, 0], sizes = [2, 128], strides = [1, 1]} : vector<2x384xf32> to vector<2x128xf32>
    %116 = vector.extract_strided_slice %114 {offsets = [0, 0], sizes = [2, 128], strides = [1, 1]} : vector<2x384xf32> to vector<2x128xf32>
    %117 = arith.addf %115, %116 : vector<2x128xf32>
    %118 = arith.negf %117 : vector<2x128xf32>
    %119 = math.exp %118 : vector<2x128xf32>
    %cst_50 = arith.constant 1.000000e+00 : f32
    %120 = vector.broadcast %cst_50 : f32 to vector<2x128xf32>
    %121 = arith.addf %120, %119 : vector<2x128xf32>
    %122 = arith.divf %120, %121 : vector<2x128xf32>
    %123 = vector.extract_strided_slice %83 {offsets = [0, 128], sizes = [2, 128], strides = [1, 1]} : vector<2x384xf32> to vector<2x128xf32>
    %124 = vector.extract_strided_slice %114 {offsets = [0, 128], sizes = [2, 128], strides = [1, 1]} : vector<2x384xf32> to vector<2x128xf32>
    %125 = arith.addf %123, %124 : vector<2x128xf32>
    %126 = arith.negf %125 : vector<2x128xf32>
    %127 = math.exp %126 : vector<2x128xf32>
    %cst_51 = arith.constant 1.000000e+00 : f32
    %128 = vector.broadcast %cst_51 : f32 to vector<2x128xf32>
    %129 = arith.addf %128, %127 : vector<2x128xf32>
    %130 = arith.divf %128, %129 : vector<2x128xf32>
    %131 = vector.extract_strided_slice %83 {offsets = [0, 256], sizes = [2, 128], strides = [1, 1]} : vector<2x384xf32> to vector<2x128xf32>
    %132 = vector.extract_strided_slice %114 {offsets = [0, 256], sizes = [2, 128], strides = [1, 1]} : vector<2x384xf32> to vector<2x128xf32>
    %133 = arith.addf %132, %19 : vector<2x128xf32>
    %134 = arith.mulf %122, %133 : vector<2x128xf32>
    %135 = arith.addf %131, %134 : vector<2x128xf32>
    %136 = math.tanh %135 : vector<2x128xf32>
    %cst_52 = arith.constant 1.000000e+00 : f32
    %137 = vector.broadcast %cst_52 : f32 to vector<2x128xf32>
    %138 = arith.subf %137, %130 : vector<2x128xf32>
    %139 = arith.mulf %138, %136 : vector<2x128xf32>
    %140 = arith.mulf %130, %81 : vector<2x128xf32>
    %141 = arith.addf %139, %140 : vector<2x128xf32>
    %c4 = arith.constant 4 : index
    %c0_53 = arith.constant 0 : index
    %142 = vector.load %arg15[%c4, %c0_53] : memref<16x384xf32, #tpu.memory_space<vmem>>, vector<2x384xf32>
    %c4_54 = arith.constant 4 : index
    %c0_55 = arith.constant 0 : index
    %143 = vector.load %arg16[%c4_54, %c0_55] : memref<16x384xf32, #tpu.memory_space<vmem>>, vector<2x384xf32>
    %c0_56 = arith.constant 0 : index
    %c0_57 = arith.constant 0 : index
    %144 = vector.load %arg7[%c0_56, %c0_57] : memref<128x384xf32, #tpu.memory_space<vmem>>, vector<128x384xf32>
    %cst_58 = arith.constant dense<0.000000e+00> : vector<2x384xf32>
    %145 = tpu.matmul %112, %144, %cst_58 {dimension_numbers = #tpu.dot_dimension_numbers<[1], [0], [0], [1], [0, 0, 1, 1], [], []>} : vector<2x128xf32>, vector<128x384xf32>, vector<2x384xf32> -> vector<2x384xf32>
    %146 = vector.extract_strided_slice %142 {offsets = [0, 0], sizes = [2, 128], strides = [1, 1]} : vector<2x384xf32> to vector<2x128xf32>
    %147 = vector.extract_strided_slice %145 {offsets = [0, 0], sizes = [2, 128], strides = [1, 1]} : vector<2x384xf32> to vector<2x128xf32>
    %148 = arith.addf %146, %147 : vector<2x128xf32>
    %149 = arith.negf %148 : vector<2x128xf32>
    %150 = math.exp %149 : vector<2x128xf32>
    %cst_59 = arith.constant 1.000000e+00 : f32
    %151 = vector.broadcast %cst_59 : f32 to vector<2x128xf32>
    %152 = arith.addf %151, %150 : vector<2x128xf32>
    %153 = arith.divf %151, %152 : vector<2x128xf32>
    %154 = vector.extract_strided_slice %142 {offsets = [0, 128], sizes = [2, 128], strides = [1, 1]} : vector<2x384xf32> to vector<2x128xf32>
    %155 = vector.extract_strided_slice %145 {offsets = [0, 128], sizes = [2, 128], strides = [1, 1]} : vector<2x384xf32> to vector<2x128xf32>
    %156 = arith.addf %154, %155 : vector<2x128xf32>
    %157 = arith.negf %156 : vector<2x128xf32>
    %158 = math.exp %157 : vector<2x128xf32>
    %cst_60 = arith.constant 1.000000e+00 : f32
    %159 = vector.broadcast %cst_60 : f32 to vector<2x128xf32>
    %160 = arith.addf %159, %158 : vector<2x128xf32>
    %161 = arith.divf %159, %160 : vector<2x128xf32>
    %162 = vector.extract_strided_slice %142 {offsets = [0, 256], sizes = [2, 128], strides = [1, 1]} : vector<2x384xf32> to vector<2x128xf32>
    %163 = vector.extract_strided_slice %145 {offsets = [0, 256], sizes = [2, 128], strides = [1, 1]} : vector<2x384xf32> to vector<2x128xf32>
    %164 = arith.addf %163, %16 : vector<2x128xf32>
    %165 = arith.mulf %153, %164 : vector<2x128xf32>
    %166 = arith.addf %162, %165 : vector<2x128xf32>
    %167 = math.tanh %166 : vector<2x128xf32>
    %cst_61 = arith.constant 1.000000e+00 : f32
    %168 = vector.broadcast %cst_61 : f32 to vector<2x128xf32>
    %169 = arith.subf %168, %161 : vector<2x128xf32>
    %170 = arith.mulf %169, %167 : vector<2x128xf32>
    %171 = arith.mulf %161, %112 : vector<2x128xf32>
    %172 = arith.addf %170, %171 : vector<2x128xf32>
    %c0_62 = arith.constant 0 : index
    %c0_63 = arith.constant 0 : index
    %173 = vector.load %arg9[%c0_62, %c0_63] : memref<128x384xf32, #tpu.memory_space<vmem>>, vector<128x384xf32>
    %cst_64 = arith.constant dense<0.000000e+00> : vector<2x384xf32>
    %174 = tpu.matmul %141, %173, %cst_64 {dimension_numbers = #tpu.dot_dimension_numbers<[1], [0], [0], [1], [0, 0, 1, 1], [], []>} : vector<2x128xf32>, vector<128x384xf32>, vector<2x384xf32> -> vector<2x384xf32>
    %175 = vector.extract_strided_slice %143 {offsets = [0, 0], sizes = [2, 128], strides = [1, 1]} : vector<2x384xf32> to vector<2x128xf32>
    %176 = vector.extract_strided_slice %174 {offsets = [0, 0], sizes = [2, 128], strides = [1, 1]} : vector<2x384xf32> to vector<2x128xf32>
    %177 = arith.addf %175, %176 : vector<2x128xf32>
    %178 = arith.negf %177 : vector<2x128xf32>
    %179 = math.exp %178 : vector<2x128xf32>
    %cst_65 = arith.constant 1.000000e+00 : f32
    %180 = vector.broadcast %cst_65 : f32 to vector<2x128xf32>
    %181 = arith.addf %180, %179 : vector<2x128xf32>
    %182 = arith.divf %180, %181 : vector<2x128xf32>
    %183 = vector.extract_strided_slice %143 {offsets = [0, 128], sizes = [2, 128], strides = [1, 1]} : vector<2x384xf32> to vector<2x128xf32>
    %184 = vector.extract_strided_slice %174 {offsets = [0, 128], sizes = [2, 128], strides = [1, 1]} : vector<2x384xf32> to vector<2x128xf32>
    %185 = arith.addf %183, %184 : vector<2x128xf32>
    %186 = arith.negf %185 : vector<2x128xf32>
    %187 = math.exp %186 : vector<2x128xf32>
    %cst_66 = arith.constant 1.000000e+00 : f32
    %188 = vector.broadcast %cst_66 : f32 to vector<2x128xf32>
    %189 = arith.addf %188, %187 : vector<2x128xf32>
    %190 = arith.divf %188, %189 : vector<2x128xf32>
    %191 = vector.extract_strided_slice %143 {offsets = [0, 256], sizes = [2, 128], strides = [1, 1]} : vector<2x384xf32> to vector<2x128xf32>
    %192 = vector.extract_strided_slice %174 {offsets = [0, 256], sizes = [2, 128], strides = [1, 1]} : vector<2x384xf32> to vector<2x128xf32>
    %193 = arith.addf %192, %19 : vector<2x128xf32>
    %194 = arith.mulf %182, %193 : vector<2x128xf32>
    %195 = arith.addf %191, %194 : vector<2x128xf32>
    %196 = math.tanh %195 : vector<2x128xf32>
    %cst_67 = arith.constant 1.000000e+00 : f32
    %197 = vector.broadcast %cst_67 : f32 to vector<2x128xf32>
    %198 = arith.subf %197, %190 : vector<2x128xf32>
    %199 = arith.mulf %198, %196 : vector<2x128xf32>
    %200 = arith.mulf %190, %141 : vector<2x128xf32>
    %201 = arith.addf %199, %200 : vector<2x128xf32>
    %c6 = arith.constant 6 : index
    %c0_68 = arith.constant 0 : index
    %202 = vector.load %arg15[%c6, %c0_68] : memref<16x384xf32, #tpu.memory_space<vmem>>, vector<2x384xf32>
    %c6_69 = arith.constant 6 : index
    %c0_70 = arith.constant 0 : index
    %203 = vector.load %arg16[%c6_69, %c0_70] : memref<16x384xf32, #tpu.memory_space<vmem>>, vector<2x384xf32>
    %c0_71 = arith.constant 0 : index
    %c0_72 = arith.constant 0 : index
    %204 = vector.load %arg7[%c0_71, %c0_72] : memref<128x384xf32, #tpu.memory_space<vmem>>, vector<128x384xf32>
    %cst_73 = arith.constant dense<0.000000e+00> : vector<2x384xf32>
    %205 = tpu.matmul %172, %204, %cst_73 {dimension_numbers = #tpu.dot_dimension_numbers<[1], [0], [0], [1], [0, 0, 1, 1], [], []>} : vector<2x128xf32>, vector<128x384xf32>, vector<2x384xf32> -> vector<2x384xf32>
    %206 = vector.extract_strided_slice %202 {offsets = [0, 0], sizes = [2, 128], strides = [1, 1]} : vector<2x384xf32> to vector<2x128xf32>
    %207 = vector.extract_strided_slice %205 {offsets = [0, 0], sizes = [2, 128], strides = [1, 1]} : vector<2x384xf32> to vector<2x128xf32>
    %208 = arith.addf %206, %207 : vector<2x128xf32>
    %209 = arith.negf %208 : vector<2x128xf32>
    %210 = math.exp %209 : vector<2x128xf32>
    %cst_74 = arith.constant 1.000000e+00 : f32
    %211 = vector.broadcast %cst_74 : f32 to vector<2x128xf32>
    %212 = arith.addf %211, %210 : vector<2x128xf32>
    %213 = arith.divf %211, %212 : vector<2x128xf32>
    %214 = vector.extract_strided_slice %202 {offsets = [0, 128], sizes = [2, 128], strides = [1, 1]} : vector<2x384xf32> to vector<2x128xf32>
    %215 = vector.extract_strided_slice %205 {offsets = [0, 128], sizes = [2, 128], strides = [1, 1]} : vector<2x384xf32> to vector<2x128xf32>
    %216 = arith.addf %214, %215 : vector<2x128xf32>
    %217 = arith.negf %216 : vector<2x128xf32>
    %218 = math.exp %217 : vector<2x128xf32>
    %cst_75 = arith.constant 1.000000e+00 : f32
    %219 = vector.broadcast %cst_75 : f32 to vector<2x128xf32>
    %220 = arith.addf %219, %218 : vector<2x128xf32>
    %221 = arith.divf %219, %220 : vector<2x128xf32>
    %222 = vector.extract_strided_slice %202 {offsets = [0, 256], sizes = [2, 128], strides = [1, 1]} : vector<2x384xf32> to vector<2x128xf32>
    %223 = vector.extract_strided_slice %205 {offsets = [0, 256], sizes = [2, 128], strides = [1, 1]} : vector<2x384xf32> to vector<2x128xf32>
    %224 = arith.addf %223, %16 : vector<2x128xf32>
    %225 = arith.mulf %213, %224 : vector<2x128xf32>
    %226 = arith.addf %222, %225 : vector<2x128xf32>
    %227 = math.tanh %226 : vector<2x128xf32>
    %cst_76 = arith.constant 1.000000e+00 : f32
    %228 = vector.broadcast %cst_76 : f32 to vector<2x128xf32>
    %229 = arith.subf %228, %221 : vector<2x128xf32>
    %230 = arith.mulf %229, %227 : vector<2x128xf32>
    %231 = arith.mulf %221, %172 : vector<2x128xf32>
    %232 = arith.addf %230, %231 : vector<2x128xf32>
    %c0_77 = arith.constant 0 : index
    %c0_78 = arith.constant 0 : index
    %233 = vector.load %arg9[%c0_77, %c0_78] : memref<128x384xf32, #tpu.memory_space<vmem>>, vector<128x384xf32>
    %cst_79 = arith.constant dense<0.000000e+00> : vector<2x384xf32>
    %234 = tpu.matmul %201, %233, %cst_79 {dimension_numbers = #tpu.dot_dimension_numbers<[1], [0], [0], [1], [0, 0, 1, 1], [], []>} : vector<2x128xf32>, vector<128x384xf32>, vector<2x384xf32> -> vector<2x384xf32>
    %235 = vector.extract_strided_slice %203 {offsets = [0, 0], sizes = [2, 128], strides = [1, 1]} : vector<2x384xf32> to vector<2x128xf32>
    %236 = vector.extract_strided_slice %234 {offsets = [0, 0], sizes = [2, 128], strides = [1, 1]} : vector<2x384xf32> to vector<2x128xf32>
    %237 = arith.addf %235, %236 : vector<2x128xf32>
    %238 = arith.negf %237 : vector<2x128xf32>
    %239 = math.exp %238 : vector<2x128xf32>
    %cst_80 = arith.constant 1.000000e+00 : f32
    %240 = vector.broadcast %cst_80 : f32 to vector<2x128xf32>
    %241 = arith.addf %240, %239 : vector<2x128xf32>
    %242 = arith.divf %240, %241 : vector<2x128xf32>
    %243 = vector.extract_strided_slice %203 {offsets = [0, 128], sizes = [2, 128], strides = [1, 1]} : vector<2x384xf32> to vector<2x128xf32>
    %244 = vector.extract_strided_slice %234 {offsets = [0, 128], sizes = [2, 128], strides = [1, 1]} : vector<2x384xf32> to vector<2x128xf32>
    %245 = arith.addf %243, %244 : vector<2x128xf32>
    %246 = arith.negf %245 : vector<2x128xf32>
    %247 = math.exp %246 : vector<2x128xf32>
    %cst_81 = arith.constant 1.000000e+00 : f32
    %248 = vector.broadcast %cst_81 : f32 to vector<2x128xf32>
    %249 = arith.addf %248, %247 : vector<2x128xf32>
    %250 = arith.divf %248, %249 : vector<2x128xf32>
    %251 = vector.extract_strided_slice %203 {offsets = [0, 256], sizes = [2, 128], strides = [1, 1]} : vector<2x384xf32> to vector<2x128xf32>
    %252 = vector.extract_strided_slice %234 {offsets = [0, 256], sizes = [2, 128], strides = [1, 1]} : vector<2x384xf32> to vector<2x128xf32>
    %253 = arith.addf %252, %19 : vector<2x128xf32>
    %254 = arith.mulf %242, %253 : vector<2x128xf32>
    %255 = arith.addf %251, %254 : vector<2x128xf32>
    %256 = math.tanh %255 : vector<2x128xf32>
    %cst_82 = arith.constant 1.000000e+00 : f32
    %257 = vector.broadcast %cst_82 : f32 to vector<2x128xf32>
    %258 = arith.subf %257, %250 : vector<2x128xf32>
    %259 = arith.mulf %258, %256 : vector<2x128xf32>
    %260 = arith.mulf %250, %201 : vector<2x128xf32>
    %261 = arith.addf %259, %260 : vector<2x128xf32>
    %c8 = arith.constant 8 : index
    %c0_83 = arith.constant 0 : index
    %262 = vector.load %arg15[%c8, %c0_83] : memref<16x384xf32, #tpu.memory_space<vmem>>, vector<2x384xf32>
    %c8_84 = arith.constant 8 : index
    %c0_85 = arith.constant 0 : index
    %263 = vector.load %arg16[%c8_84, %c0_85] : memref<16x384xf32, #tpu.memory_space<vmem>>, vector<2x384xf32>
    %c0_86 = arith.constant 0 : index
    %c0_87 = arith.constant 0 : index
    %264 = vector.load %arg7[%c0_86, %c0_87] : memref<128x384xf32, #tpu.memory_space<vmem>>, vector<128x384xf32>
    %cst_88 = arith.constant dense<0.000000e+00> : vector<2x384xf32>
    %265 = tpu.matmul %232, %264, %cst_88 {dimension_numbers = #tpu.dot_dimension_numbers<[1], [0], [0], [1], [0, 0, 1, 1], [], []>} : vector<2x128xf32>, vector<128x384xf32>, vector<2x384xf32> -> vector<2x384xf32>
    %266 = vector.extract_strided_slice %262 {offsets = [0, 0], sizes = [2, 128], strides = [1, 1]} : vector<2x384xf32> to vector<2x128xf32>
    %267 = vector.extract_strided_slice %265 {offsets = [0, 0], sizes = [2, 128], strides = [1, 1]} : vector<2x384xf32> to vector<2x128xf32>
    %268 = arith.addf %266, %267 : vector<2x128xf32>
    %269 = arith.negf %268 : vector<2x128xf32>
    %270 = math.exp %269 : vector<2x128xf32>
    %cst_89 = arith.constant 1.000000e+00 : f32
    %271 = vector.broadcast %cst_89 : f32 to vector<2x128xf32>
    %272 = arith.addf %271, %270 : vector<2x128xf32>
    %273 = arith.divf %271, %272 : vector<2x128xf32>
    %274 = vector.extract_strided_slice %262 {offsets = [0, 128], sizes = [2, 128], strides = [1, 1]} : vector<2x384xf32> to vector<2x128xf32>
    %275 = vector.extract_strided_slice %265 {offsets = [0, 128], sizes = [2, 128], strides = [1, 1]} : vector<2x384xf32> to vector<2x128xf32>
    %276 = arith.addf %274, %275 : vector<2x128xf32>
    %277 = arith.negf %276 : vector<2x128xf32>
    %278 = math.exp %277 : vector<2x128xf32>
    %cst_90 = arith.constant 1.000000e+00 : f32
    %279 = vector.broadcast %cst_90 : f32 to vector<2x128xf32>
    %280 = arith.addf %279, %278 : vector<2x128xf32>
    %281 = arith.divf %279, %280 : vector<2x128xf32>
    %282 = vector.extract_strided_slice %262 {offsets = [0, 256], sizes = [2, 128], strides = [1, 1]} : vector<2x384xf32> to vector<2x128xf32>
    %283 = vector.extract_strided_slice %265 {offsets = [0, 256], sizes = [2, 128], strides = [1, 1]} : vector<2x384xf32> to vector<2x128xf32>
    %284 = arith.addf %283, %16 : vector<2x128xf32>
    %285 = arith.mulf %273, %284 : vector<2x128xf32>
    %286 = arith.addf %282, %285 : vector<2x128xf32>
    %287 = math.tanh %286 : vector<2x128xf32>
    %cst_91 = arith.constant 1.000000e+00 : f32
    %288 = vector.broadcast %cst_91 : f32 to vector<2x128xf32>
    %289 = arith.subf %288, %281 : vector<2x128xf32>
    %290 = arith.mulf %289, %287 : vector<2x128xf32>
    %291 = arith.mulf %281, %232 : vector<2x128xf32>
    %292 = arith.addf %290, %291 : vector<2x128xf32>
    %c0_92 = arith.constant 0 : index
    %c0_93 = arith.constant 0 : index
    %293 = vector.load %arg9[%c0_92, %c0_93] : memref<128x384xf32, #tpu.memory_space<vmem>>, vector<128x384xf32>
    %cst_94 = arith.constant dense<0.000000e+00> : vector<2x384xf32>
    %294 = tpu.matmul %261, %293, %cst_94 {dimension_numbers = #tpu.dot_dimension_numbers<[1], [0], [0], [1], [0, 0, 1, 1], [], []>} : vector<2x128xf32>, vector<128x384xf32>, vector<2x384xf32> -> vector<2x384xf32>
    %295 = vector.extract_strided_slice %263 {offsets = [0, 0], sizes = [2, 128], strides = [1, 1]} : vector<2x384xf32> to vector<2x128xf32>
    %296 = vector.extract_strided_slice %294 {offsets = [0, 0], sizes = [2, 128], strides = [1, 1]} : vector<2x384xf32> to vector<2x128xf32>
    %297 = arith.addf %295, %296 : vector<2x128xf32>
    %298 = arith.negf %297 : vector<2x128xf32>
    %299 = math.exp %298 : vector<2x128xf32>
    %cst_95 = arith.constant 1.000000e+00 : f32
    %300 = vector.broadcast %cst_95 : f32 to vector<2x128xf32>
    %301 = arith.addf %300, %299 : vector<2x128xf32>
    %302 = arith.divf %300, %301 : vector<2x128xf32>
    %303 = vector.extract_strided_slice %263 {offsets = [0, 128], sizes = [2, 128], strides = [1, 1]} : vector<2x384xf32> to vector<2x128xf32>
    %304 = vector.extract_strided_slice %294 {offsets = [0, 128], sizes = [2, 128], strides = [1, 1]} : vector<2x384xf32> to vector<2x128xf32>
    %305 = arith.addf %303, %304 : vector<2x128xf32>
    %306 = arith.negf %305 : vector<2x128xf32>
    %307 = math.exp %306 : vector<2x128xf32>
    %cst_96 = arith.constant 1.000000e+00 : f32
    %308 = vector.broadcast %cst_96 : f32 to vector<2x128xf32>
    %309 = arith.addf %308, %307 : vector<2x128xf32>
    %310 = arith.divf %308, %309 : vector<2x128xf32>
    %311 = vector.extract_strided_slice %263 {offsets = [0, 256], sizes = [2, 128], strides = [1, 1]} : vector<2x384xf32> to vector<2x128xf32>
    %312 = vector.extract_strided_slice %294 {offsets = [0, 256], sizes = [2, 128], strides = [1, 1]} : vector<2x384xf32> to vector<2x128xf32>
    %313 = arith.addf %312, %19 : vector<2x128xf32>
    %314 = arith.mulf %302, %313 : vector<2x128xf32>
    %315 = arith.addf %311, %314 : vector<2x128xf32>
    %316 = math.tanh %315 : vector<2x128xf32>
    %cst_97 = arith.constant 1.000000e+00 : f32
    %317 = vector.broadcast %cst_97 : f32 to vector<2x128xf32>
    %318 = arith.subf %317, %310 : vector<2x128xf32>
    %319 = arith.mulf %318, %316 : vector<2x128xf32>
    %320 = arith.mulf %310, %261 : vector<2x128xf32>
    %321 = arith.addf %319, %320 : vector<2x128xf32>
    %c10 = arith.constant 10 : index
    %c0_98 = arith.constant 0 : index
    %322 = vector.load %arg15[%c10, %c0_98] : memref<16x384xf32, #tpu.memory_space<vmem>>, vector<2x384xf32>
    %c10_99 = arith.constant 10 : index
    %c0_100 = arith.constant 0 : index
    %323 = vector.load %arg16[%c10_99, %c0_100] : memref<16x384xf32, #tpu.memory_space<vmem>>, vector<2x384xf32>
    %c0_101 = arith.constant 0 : index
    %c0_102 = arith.constant 0 : index
    %324 = vector.load %arg7[%c0_101, %c0_102] : memref<128x384xf32, #tpu.memory_space<vmem>>, vector<128x384xf32>
    %cst_103 = arith.constant dense<0.000000e+00> : vector<2x384xf32>
    %325 = tpu.matmul %292, %324, %cst_103 {dimension_numbers = #tpu.dot_dimension_numbers<[1], [0], [0], [1], [0, 0, 1, 1], [], []>} : vector<2x128xf32>, vector<128x384xf32>, vector<2x384xf32> -> vector<2x384xf32>
    %326 = vector.extract_strided_slice %322 {offsets = [0, 0], sizes = [2, 128], strides = [1, 1]} : vector<2x384xf32> to vector<2x128xf32>
    %327 = vector.extract_strided_slice %325 {offsets = [0, 0], sizes = [2, 128], strides = [1, 1]} : vector<2x384xf32> to vector<2x128xf32>
    %328 = arith.addf %326, %327 : vector<2x128xf32>
    %329 = arith.negf %328 : vector<2x128xf32>
    %330 = math.exp %329 : vector<2x128xf32>
    %cst_104 = arith.constant 1.000000e+00 : f32
    %331 = vector.broadcast %cst_104 : f32 to vector<2x128xf32>
    %332 = arith.addf %331, %330 : vector<2x128xf32>
    %333 = arith.divf %331, %332 : vector<2x128xf32>
    %334 = vector.extract_strided_slice %322 {offsets = [0, 128], sizes = [2, 128], strides = [1, 1]} : vector<2x384xf32> to vector<2x128xf32>
    %335 = vector.extract_strided_slice %325 {offsets = [0, 128], sizes = [2, 128], strides = [1, 1]} : vector<2x384xf32> to vector<2x128xf32>
    %336 = arith.addf %334, %335 : vector<2x128xf32>
    %337 = arith.negf %336 : vector<2x128xf32>
    %338 = math.exp %337 : vector<2x128xf32>
    %cst_105 = arith.constant 1.000000e+00 : f32
    %339 = vector.broadcast %cst_105 : f32 to vector<2x128xf32>
    %340 = arith.addf %339, %338 : vector<2x128xf32>
    %341 = arith.divf %339, %340 : vector<2x128xf32>
    %342 = vector.extract_strided_slice %322 {offsets = [0, 256], sizes = [2, 128], strides = [1, 1]} : vector<2x384xf32> to vector<2x128xf32>
    %343 = vector.extract_strided_slice %325 {offsets = [0, 256], sizes = [2, 128], strides = [1, 1]} : vector<2x384xf32> to vector<2x128xf32>
    %344 = arith.addf %343, %16 : vector<2x128xf32>
    %345 = arith.mulf %333, %344 : vector<2x128xf32>
    %346 = arith.addf %342, %345 : vector<2x128xf32>
    %347 = math.tanh %346 : vector<2x128xf32>
    %cst_106 = arith.constant 1.000000e+00 : f32
    %348 = vector.broadcast %cst_106 : f32 to vector<2x128xf32>
    %349 = arith.subf %348, %341 : vector<2x128xf32>
    %350 = arith.mulf %349, %347 : vector<2x128xf32>
    %351 = arith.mulf %341, %292 : vector<2x128xf32>
    %352 = arith.addf %350, %351 : vector<2x128xf32>
    %c0_107 = arith.constant 0 : index
    %c0_108 = arith.constant 0 : index
    %353 = vector.load %arg9[%c0_107, %c0_108] : memref<128x384xf32, #tpu.memory_space<vmem>>, vector<128x384xf32>
    %cst_109 = arith.constant dense<0.000000e+00> : vector<2x384xf32>
    %354 = tpu.matmul %321, %353, %cst_109 {dimension_numbers = #tpu.dot_dimension_numbers<[1], [0], [0], [1], [0, 0, 1, 1], [], []>} : vector<2x128xf32>, vector<128x384xf32>, vector<2x384xf32> -> vector<2x384xf32>
    %355 = vector.extract_strided_slice %323 {offsets = [0, 0], sizes = [2, 128], strides = [1, 1]} : vector<2x384xf32> to vector<2x128xf32>
    %356 = vector.extract_strided_slice %354 {offsets = [0, 0], sizes = [2, 128], strides = [1, 1]} : vector<2x384xf32> to vector<2x128xf32>
    %357 = arith.addf %355, %356 : vector<2x128xf32>
    %358 = arith.negf %357 : vector<2x128xf32>
    %359 = math.exp %358 : vector<2x128xf32>
    %cst_110 = arith.constant 1.000000e+00 : f32
    %360 = vector.broadcast %cst_110 : f32 to vector<2x128xf32>
    %361 = arith.addf %360, %359 : vector<2x128xf32>
    %362 = arith.divf %360, %361 : vector<2x128xf32>
    %363 = vector.extract_strided_slice %323 {offsets = [0, 128], sizes = [2, 128], strides = [1, 1]} : vector<2x384xf32> to vector<2x128xf32>
    %364 = vector.extract_strided_slice %354 {offsets = [0, 128], sizes = [2, 128], strides = [1, 1]} : vector<2x384xf32> to vector<2x128xf32>
    %365 = arith.addf %363, %364 : vector<2x128xf32>
    %366 = arith.negf %365 : vector<2x128xf32>
    %367 = math.exp %366 : vector<2x128xf32>
    %cst_111 = arith.constant 1.000000e+00 : f32
    %368 = vector.broadcast %cst_111 : f32 to vector<2x128xf32>
    %369 = arith.addf %368, %367 : vector<2x128xf32>
    %370 = arith.divf %368, %369 : vector<2x128xf32>
    %371 = vector.extract_strided_slice %323 {offsets = [0, 256], sizes = [2, 128], strides = [1, 1]} : vector<2x384xf32> to vector<2x128xf32>
    %372 = vector.extract_strided_slice %354 {offsets = [0, 256], sizes = [2, 128], strides = [1, 1]} : vector<2x384xf32> to vector<2x128xf32>
    %373 = arith.addf %372, %19 : vector<2x128xf32>
    %374 = arith.mulf %362, %373 : vector<2x128xf32>
    %375 = arith.addf %371, %374 : vector<2x128xf32>
    %376 = math.tanh %375 : vector<2x128xf32>
    %cst_112 = arith.constant 1.000000e+00 : f32
    %377 = vector.broadcast %cst_112 : f32 to vector<2x128xf32>
    %378 = arith.subf %377, %370 : vector<2x128xf32>
    %379 = arith.mulf %378, %376 : vector<2x128xf32>
    %380 = arith.mulf %370, %321 : vector<2x128xf32>
    %381 = arith.addf %379, %380 : vector<2x128xf32>
    %c12 = arith.constant 12 : index
    %c0_113 = arith.constant 0 : index
    %382 = vector.load %arg15[%c12, %c0_113] : memref<16x384xf32, #tpu.memory_space<vmem>>, vector<2x384xf32>
    %c12_114 = arith.constant 12 : index
    %c0_115 = arith.constant 0 : index
    %383 = vector.load %arg16[%c12_114, %c0_115] : memref<16x384xf32, #tpu.memory_space<vmem>>, vector<2x384xf32>
    %c0_116 = arith.constant 0 : index
    %c0_117 = arith.constant 0 : index
    %384 = vector.load %arg7[%c0_116, %c0_117] : memref<128x384xf32, #tpu.memory_space<vmem>>, vector<128x384xf32>
    %cst_118 = arith.constant dense<0.000000e+00> : vector<2x384xf32>
    %385 = tpu.matmul %352, %384, %cst_118 {dimension_numbers = #tpu.dot_dimension_numbers<[1], [0], [0], [1], [0, 0, 1, 1], [], []>} : vector<2x128xf32>, vector<128x384xf32>, vector<2x384xf32> -> vector<2x384xf32>
    %386 = vector.extract_strided_slice %382 {offsets = [0, 0], sizes = [2, 128], strides = [1, 1]} : vector<2x384xf32> to vector<2x128xf32>
    %387 = vector.extract_strided_slice %385 {offsets = [0, 0], sizes = [2, 128], strides = [1, 1]} : vector<2x384xf32> to vector<2x128xf32>
    %388 = arith.addf %386, %387 : vector<2x128xf32>
    %389 = arith.negf %388 : vector<2x128xf32>
    %390 = math.exp %389 : vector<2x128xf32>
    %cst_119 = arith.constant 1.000000e+00 : f32
    %391 = vector.broadcast %cst_119 : f32 to vector<2x128xf32>
    %392 = arith.addf %391, %390 : vector<2x128xf32>
    %393 = arith.divf %391, %392 : vector<2x128xf32>
    %394 = vector.extract_strided_slice %382 {offsets = [0, 128], sizes = [2, 128], strides = [1, 1]} : vector<2x384xf32> to vector<2x128xf32>
    %395 = vector.extract_strided_slice %385 {offsets = [0, 128], sizes = [2, 128], strides = [1, 1]} : vector<2x384xf32> to vector<2x128xf32>
    %396 = arith.addf %394, %395 : vector<2x128xf32>
    %397 = arith.negf %396 : vector<2x128xf32>
    %398 = math.exp %397 : vector<2x128xf32>
    %cst_120 = arith.constant 1.000000e+00 : f32
    %399 = vector.broadcast %cst_120 : f32 to vector<2x128xf32>
    %400 = arith.addf %399, %398 : vector<2x128xf32>
    %401 = arith.divf %399, %400 : vector<2x128xf32>
    %402 = vector.extract_strided_slice %382 {offsets = [0, 256], sizes = [2, 128], strides = [1, 1]} : vector<2x384xf32> to vector<2x128xf32>
    %403 = vector.extract_strided_slice %385 {offsets = [0, 256], sizes = [2, 128], strides = [1, 1]} : vector<2x384xf32> to vector<2x128xf32>
    %404 = arith.addf %403, %16 : vector<2x128xf32>
    %405 = arith.mulf %393, %404 : vector<2x128xf32>
    %406 = arith.addf %402, %405 : vector<2x128xf32>
    %407 = math.tanh %406 : vector<2x128xf32>
    %cst_121 = arith.constant 1.000000e+00 : f32
    %408 = vector.broadcast %cst_121 : f32 to vector<2x128xf32>
    %409 = arith.subf %408, %401 : vector<2x128xf32>
    %410 = arith.mulf %409, %407 : vector<2x128xf32>
    %411 = arith.mulf %401, %352 : vector<2x128xf32>
    %412 = arith.addf %410, %411 : vector<2x128xf32>
    %c0_122 = arith.constant 0 : index
    %c0_123 = arith.constant 0 : index
    %413 = vector.load %arg9[%c0_122, %c0_123] : memref<128x384xf32, #tpu.memory_space<vmem>>, vector<128x384xf32>
    %cst_124 = arith.constant dense<0.000000e+00> : vector<2x384xf32>
    %414 = tpu.matmul %381, %413, %cst_124 {dimension_numbers = #tpu.dot_dimension_numbers<[1], [0], [0], [1], [0, 0, 1, 1], [], []>} : vector<2x128xf32>, vector<128x384xf32>, vector<2x384xf32> -> vector<2x384xf32>
    %415 = vector.extract_strided_slice %383 {offsets = [0, 0], sizes = [2, 128], strides = [1, 1]} : vector<2x384xf32> to vector<2x128xf32>
    %416 = vector.extract_strided_slice %414 {offsets = [0, 0], sizes = [2, 128], strides = [1, 1]} : vector<2x384xf32> to vector<2x128xf32>
    %417 = arith.addf %415, %416 : vector<2x128xf32>
    %418 = arith.negf %417 : vector<2x128xf32>
    %419 = math.exp %418 : vector<2x128xf32>
    %cst_125 = arith.constant 1.000000e+00 : f32
    %420 = vector.broadcast %cst_125 : f32 to vector<2x128xf32>
    %421 = arith.addf %420, %419 : vector<2x128xf32>
    %422 = arith.divf %420, %421 : vector<2x128xf32>
    %423 = vector.extract_strided_slice %383 {offsets = [0, 128], sizes = [2, 128], strides = [1, 1]} : vector<2x384xf32> to vector<2x128xf32>
    %424 = vector.extract_strided_slice %414 {offsets = [0, 128], sizes = [2, 128], strides = [1, 1]} : vector<2x384xf32> to vector<2x128xf32>
    %425 = arith.addf %423, %424 : vector<2x128xf32>
    %426 = arith.negf %425 : vector<2x128xf32>
    %427 = math.exp %426 : vector<2x128xf32>
    %cst_126 = arith.constant 1.000000e+00 : f32
    %428 = vector.broadcast %cst_126 : f32 to vector<2x128xf32>
    %429 = arith.addf %428, %427 : vector<2x128xf32>
    %430 = arith.divf %428, %429 : vector<2x128xf32>
    %431 = vector.extract_strided_slice %383 {offsets = [0, 256], sizes = [2, 128], strides = [1, 1]} : vector<2x384xf32> to vector<2x128xf32>
    %432 = vector.extract_strided_slice %414 {offsets = [0, 256], sizes = [2, 128], strides = [1, 1]} : vector<2x384xf32> to vector<2x128xf32>
    %433 = arith.addf %432, %19 : vector<2x128xf32>
    %434 = arith.mulf %422, %433 : vector<2x128xf32>
    %435 = arith.addf %431, %434 : vector<2x128xf32>
    %436 = math.tanh %435 : vector<2x128xf32>
    %cst_127 = arith.constant 1.000000e+00 : f32
    %437 = vector.broadcast %cst_127 : f32 to vector<2x128xf32>
    %438 = arith.subf %437, %430 : vector<2x128xf32>
    %439 = arith.mulf %438, %436 : vector<2x128xf32>
    %440 = arith.mulf %430, %381 : vector<2x128xf32>
    %441 = arith.addf %439, %440 : vector<2x128xf32>
    %c14 = arith.constant 14 : index
    %c0_128 = arith.constant 0 : index
    %442 = vector.load %arg15[%c14, %c0_128] : memref<16x384xf32, #tpu.memory_space<vmem>>, vector<2x384xf32>
    %c14_129 = arith.constant 14 : index
    %c0_130 = arith.constant 0 : index
    %443 = vector.load %arg16[%c14_129, %c0_130] : memref<16x384xf32, #tpu.memory_space<vmem>>, vector<2x384xf32>
    %c0_131 = arith.constant 0 : index
    %c0_132 = arith.constant 0 : index
    %444 = vector.load %arg7[%c0_131, %c0_132] : memref<128x384xf32, #tpu.memory_space<vmem>>, vector<128x384xf32>
    %cst_133 = arith.constant dense<0.000000e+00> : vector<2x384xf32>
    %445 = tpu.matmul %412, %444, %cst_133 {dimension_numbers = #tpu.dot_dimension_numbers<[1], [0], [0], [1], [0, 0, 1, 1], [], []>} : vector<2x128xf32>, vector<128x384xf32>, vector<2x384xf32> -> vector<2x384xf32>
    %446 = vector.extract_strided_slice %442 {offsets = [0, 0], sizes = [2, 128], strides = [1, 1]} : vector<2x384xf32> to vector<2x128xf32>
    %447 = vector.extract_strided_slice %445 {offsets = [0, 0], sizes = [2, 128], strides = [1, 1]} : vector<2x384xf32> to vector<2x128xf32>
    %448 = arith.addf %446, %447 : vector<2x128xf32>
    %449 = arith.negf %448 : vector<2x128xf32>
    %450 = math.exp %449 : vector<2x128xf32>
    %cst_134 = arith.constant 1.000000e+00 : f32
    %451 = vector.broadcast %cst_134 : f32 to vector<2x128xf32>
    %452 = arith.addf %451, %450 : vector<2x128xf32>
    %453 = arith.divf %451, %452 : vector<2x128xf32>
    %454 = vector.extract_strided_slice %442 {offsets = [0, 128], sizes = [2, 128], strides = [1, 1]} : vector<2x384xf32> to vector<2x128xf32>
    %455 = vector.extract_strided_slice %445 {offsets = [0, 128], sizes = [2, 128], strides = [1, 1]} : vector<2x384xf32> to vector<2x128xf32>
    %456 = arith.addf %454, %455 : vector<2x128xf32>
    %457 = arith.negf %456 : vector<2x128xf32>
    %458 = math.exp %457 : vector<2x128xf32>
    %cst_135 = arith.constant 1.000000e+00 : f32
    %459 = vector.broadcast %cst_135 : f32 to vector<2x128xf32>
    %460 = arith.addf %459, %458 : vector<2x128xf32>
    %461 = arith.divf %459, %460 : vector<2x128xf32>
    %462 = vector.extract_strided_slice %442 {offsets = [0, 256], sizes = [2, 128], strides = [1, 1]} : vector<2x384xf32> to vector<2x128xf32>
    %463 = vector.extract_strided_slice %445 {offsets = [0, 256], sizes = [2, 128], strides = [1, 1]} : vector<2x384xf32> to vector<2x128xf32>
    %464 = arith.addf %463, %16 : vector<2x128xf32>
    %465 = arith.mulf %453, %464 : vector<2x128xf32>
    %466 = arith.addf %462, %465 : vector<2x128xf32>
    %467 = math.tanh %466 : vector<2x128xf32>
    %cst_136 = arith.constant 1.000000e+00 : f32
    %468 = vector.broadcast %cst_136 : f32 to vector<2x128xf32>
    %469 = arith.subf %468, %461 : vector<2x128xf32>
    %470 = arith.mulf %469, %467 : vector<2x128xf32>
    %471 = arith.mulf %461, %412 : vector<2x128xf32>
    %472 = arith.addf %470, %471 : vector<2x128xf32>
    %c0_137 = arith.constant 0 : index
    %c0_138 = arith.constant 0 : index
    %473 = vector.load %arg9[%c0_137, %c0_138] : memref<128x384xf32, #tpu.memory_space<vmem>>, vector<128x384xf32>
    %cst_139 = arith.constant dense<0.000000e+00> : vector<2x384xf32>
    %474 = tpu.matmul %441, %473, %cst_139 {dimension_numbers = #tpu.dot_dimension_numbers<[1], [0], [0], [1], [0, 0, 1, 1], [], []>} : vector<2x128xf32>, vector<128x384xf32>, vector<2x384xf32> -> vector<2x384xf32>
    %475 = vector.extract_strided_slice %443 {offsets = [0, 0], sizes = [2, 128], strides = [1, 1]} : vector<2x384xf32> to vector<2x128xf32>
    %476 = vector.extract_strided_slice %474 {offsets = [0, 0], sizes = [2, 128], strides = [1, 1]} : vector<2x384xf32> to vector<2x128xf32>
    %477 = arith.addf %475, %476 : vector<2x128xf32>
    %478 = arith.negf %477 : vector<2x128xf32>
    %479 = math.exp %478 : vector<2x128xf32>
    %cst_140 = arith.constant 1.000000e+00 : f32
    %480 = vector.broadcast %cst_140 : f32 to vector<2x128xf32>
    %481 = arith.addf %480, %479 : vector<2x128xf32>
    %482 = arith.divf %480, %481 : vector<2x128xf32>
    %483 = vector.extract_strided_slice %443 {offsets = [0, 128], sizes = [2, 128], strides = [1, 1]} : vector<2x384xf32> to vector<2x128xf32>
    %484 = vector.extract_strided_slice %474 {offsets = [0, 128], sizes = [2, 128], strides = [1, 1]} : vector<2x384xf32> to vector<2x128xf32>
    %485 = arith.addf %483, %484 : vector<2x128xf32>
    %486 = arith.negf %485 : vector<2x128xf32>
    %487 = math.exp %486 : vector<2x128xf32>
    %cst_141 = arith.constant 1.000000e+00 : f32
    %488 = vector.broadcast %cst_141 : f32 to vector<2x128xf32>
    %489 = arith.addf %488, %487 : vector<2x128xf32>
    %490 = arith.divf %488, %489 : vector<2x128xf32>
    %491 = vector.extract_strided_slice %443 {offsets = [0, 256], sizes = [2, 128], strides = [1, 1]} : vector<2x384xf32> to vector<2x128xf32>
    %492 = vector.extract_strided_slice %474 {offsets = [0, 256], sizes = [2, 128], strides = [1, 1]} : vector<2x384xf32> to vector<2x128xf32>
    %493 = arith.addf %492, %19 : vector<2x128xf32>
    %494 = arith.mulf %482, %493 : vector<2x128xf32>
    %495 = arith.addf %491, %494 : vector<2x128xf32>
    %496 = math.tanh %495 : vector<2x128xf32>
    %cst_142 = arith.constant 1.000000e+00 : f32
    %497 = vector.broadcast %cst_142 : f32 to vector<2x128xf32>
    %498 = arith.subf %497, %490 : vector<2x128xf32>
    %499 = arith.mulf %498, %496 : vector<2x128xf32>
    %500 = arith.mulf %490, %441 : vector<2x128xf32>
    %501 = arith.addf %499, %500 : vector<2x128xf32>
    %c0_143 = arith.constant 0 : index
    %c0_144 = arith.constant 0 : index
    %502 = vector.load %arg11[%c0_143, %c0_144] : memref<128x128xf32, #tpu.memory_space<vmem>>, vector<128x128xf32>
    %cst_145 = arith.constant dense<0.000000e+00> : vector<2x128xf32>
    %503 = tpu.matmul %472, %502, %cst_145 {dimension_numbers = #tpu.dot_dimension_numbers<[1], [0], [0], [1], [0, 0, 1, 1], [], []>} : vector<2x128xf32>, vector<128x128xf32>, vector<2x128xf32> -> vector<2x128xf32>
    %c0_146 = arith.constant 0 : index
    %c0_147 = arith.constant 0 : index
    %504 = vector.load %arg12[%c0_146, %c0_147] : memref<128x128xf32, #tpu.memory_space<vmem>>, vector<128x128xf32>
    %cst_148 = arith.constant dense<0.000000e+00> : vector<2x128xf32>
    %505 = tpu.matmul %501, %504, %cst_148 {dimension_numbers = #tpu.dot_dimension_numbers<[1], [0], [0], [1], [0, 0, 1, 1], [], []>} : vector<2x128xf32>, vector<128x128xf32>, vector<2x128xf32> -> vector<2x128xf32>
    %506 = arith.addf %503, %505 : vector<2x128xf32>
    %c0_149 = arith.constant 0 : index
    %c0_150 = arith.constant 0 : index
    %507 = vector.load %arg13[%c0_149, %c0_150] : memref<1x128xf32, #tpu.memory_space<vmem>>, vector<1x128xf32>
    %508 = vector.broadcast %507 : vector<1x128xf32> to vector<2x128xf32>
    %509 = arith.addf %506, %508 : vector<2x128xf32>
    %c0_151 = arith.constant 0 : index
    %c0_152 = arith.constant 0 : index
    %510 = vector.load %arg14[%c0_151, %c0_152] : memref<2x128xf32, #tpu.memory_space<vmem>>, vector<2x128xf32>
    tpu.vector_store %arg14[%c0_151, %c0_152], %509 {strides = array<i32>} : memref<2x128xf32, #tpu.memory_space<vmem>>, vector<2x128xf32>,
    return
  }
  func.func @transform_0(%arg0: i32) -> (i32, i32) {
    %c0_i32 = arith.constant 0 : i32
    %c0_i32_0 = arith.constant 0 : i32
    %c0_i32_1 = arith.constant 0 : i32
    return %c0_i32, %c0_i32_0 : i32, i32
  }
  func.func @transform_1(%arg0: i32) -> (i32, i32) {
    %c0_i32 = arith.constant 0 : i32
    %c0_i32_0 = arith.constant 0 : i32
    %c0_i32_1 = arith.constant 0 : i32
    return %c0_i32, %c0_i32_0 : i32, i32
  }
  func.func @transform_2(%arg0: i32) -> (i32, i32) {
    %c0_i32 = arith.constant 0 : i32
    %c0_i32_0 = arith.constant 0 : i32
    %c0_i32_1 = arith.constant 0 : i32
    return %c0_i32, %c0_i32_0 : i32, i32
  }
  func.func @transform_3(%arg0: i32) -> (i32, i32) {
    %c0_i32 = arith.constant 0 : i32
    %c0_i32_0 = arith.constant 0 : i32
    %c0_i32_1 = arith.constant 0 : i32
    return %c0_i32, %c0_i32_0 : i32, i32
  }
  func.func @transform_4(%arg0: i32) -> (i32, i32) {
    %c0_i32 = arith.constant 0 : i32
    %c0_i32_0 = arith.constant 0 : i32
    %c0_i32_1 = arith.constant 0 : i32
    return %c0_i32, %c0_i32_0 : i32, i32
  }
  func.func @transform_5(%arg0: i32) -> (i32, i32) {
    %c0_i32 = arith.constant 0 : i32
    %c0_i32_0 = arith.constant 0 : i32
    %c0_i32_1 = arith.constant 0 : i32
    return %c0_i32, %c0_i32_0 : i32, i32
  }
  func.func @transform_6(%arg0: i32) -> (i32, i32) {
    %c0_i32 = arith.constant 0 : i32
    %c0_i32_0 = arith.constant 0 : i32
    %c0_i32_1 = arith.constant 0 : i32
    return %c0_i32, %c0_i32_0 : i32, i32
  }
  func.func @transform_7(%arg0: i32) -> (i32, i32) {
    %c0_i32 = arith.constant 0 : i32
    %c0_i32_0 = arith.constant 0 : i32
    %c0_i32_1 = arith.constant 0 : i32
    return %c0_i32, %c0_i32_0 : i32, i32
  }
  func.func @transform_8(%arg0: i32) -> (i32, i32) {
    %c0_i32 = arith.constant 0 : i32
    %c0_i32_0 = arith.constant 0 : i32
    %c0_i32_1 = arith.constant 0 : i32
    return %c0_i32, %c0_i32_0 : i32, i32
  }
  func.func @transform_9(%arg0: i32) -> (i32, i32) {
    %c0_i32 = arith.constant 0 : i32
    %c0_i32_0 = arith.constant 0 : i32
    %c0_i32_1 = arith.constant 0 : i32
    return %c0_i32, %c0_i32_0 : i32, i32
  }
  func.func @transform_10(%arg0: i32) -> (i32, i32) {
    %c0_i32 = arith.constant 0 : i32
    %c0_i32_0 = arith.constant 0 : i32
    %c0_i32_1 = arith.constant 0 : i32
    return %c0_i32, %c0_i32_0 : i32, i32
  }
  func.func @transform_11(%arg0: i32) -> (i32, i32) {
    %c0_i32 = arith.constant 0 : i32
    %c0_i32_0 = arith.constant 0 : i32
    %c0_i32_1 = arith.constant 0 : i32
    return %c0_i32, %c0_i32_0 : i32, i32
  }
  func.func @transform_12(%arg0: i32) -> (i32, i32) {
    %c0_i32 = arith.constant 0 : i32
    %c0_i32_0 = arith.constant 0 : i32
    %c0_i32_1 = arith.constant 0 : i32
    return %c0_i32, %c0_i32_0 : i32, i32
  }
  func.func @transform_13(%arg0: i32) -> (i32, i32) {
    %c0_i32 = arith.constant 0 : i32
    %c0_i32_0 = arith.constant 0 : i32
    %c0_i32_1 = arith.constant 0 : i32
    return %c0_i32, %c0_i32_0 : i32, i32
  }
}

</mosaic_0001>

<bundles_post_ra>
// kernel: my_multimodal_gru_forward.1
= control target key start
LH: loop header
LB: loop body
LE: loop exit
PB: predicated region body
PF: predicated region fallthrough
CT: control target
= control target key end

     0   :  { %18 = vsyncpa [#allocation5], 0  ;;  %s2829_s28 = smov [#allocation4]   ;;  %s2830_s30 = smov 384   ;;  %s5079_s0 = inlined_call_operand.vmem [shape: f32[16,16], index: 0, kind: input, shape index: {}]   ;;  %s5080_s1 = inlined_call_operand.vmem [shape: f32[16,24], index: 1, kind: input, shape index: {}]   ;;  %s5081_s2 = inlined_call_operand.vmem [shape: f32[16,384], index: 2, kind: input, shape index: {}]   ;;  %s5082_s3 = inlined_call_operand.vmem [shape: f32[1,384], index: 3, kind: input, shape index: {}]   ;;  %s5083_s4 = inlined_call_operand.vmem [shape: f32[24,384], index: 4, kind: input, shape index: {}]   ;;  %s5084_s5 = inlined_call_operand.vmem [shape: f32[1,384], index: 5, kind: input, shape index: {}]   ;;  %s5085_s6 = inlined_call_operand.vmem [shape: f32[128,384], index: 6, kind: input, shape index: {}]   ;;  %s5086_s7 = inlined_call_operand.vmem [shape: f32[1,128], index: 7, kind: input, shape index: {}]   ;;  %s5087_s8 = inlined_call_operand.hbm [shape: f32[128,384], index: 8, kind: input, shape index: {}]   ;;  %s5088_s9 = inlined_call_operand.vmem [shape: f32[1,128], index: 9, kind: input, shape index: {}]   ;;  %s5089_s10 = inlined_call_operand.vmem [shape: f32[128,128], index: 10, kind: input, shape index: {}]   ;;  %s5090_s11 = inlined_call_operand.vmem [shape: f32[128,128], index: 11, kind: input, shape index: {}]   ;;  %s5091_s12 = inlined_call_operand.vmem [shape: f32[1,128], index: 12, kind: input, shape index: {}]   ;;  %s5092_s13 = inlined_call_operand.vmem [shape: f32[2,128], index: 13, kind: output, shape index: {}]  }
   0x1   :  { %s39_s27 = sshll.u32 %s5087_s8, 4  ;;  %s41_s29 = sshll.u32 %s2829_s28, 4  ;;  %s40_s27 = int_to_ptr.hbm [resolvable:$true] %s39_s27  ;;  %s42_s29 = int_to_ptr.vmem [resolvable:$true] %s41_s29 }
   0x2   :  { %s2831_s14 = smov 24  }
   0x3   :  { %47 = dma.hbm_to_vmem [thread:$0]  %s40_s27, 6144, %s42_s29, [#allocation5], %s2830_s30, %s2830_s30, %s2831_s14  }
   0x4   :  { %2827 = dma.done.wait [#allocation5], 6144  }
   0x5   :  { %2828 = vsyncadd [#allocation5], 4294961152  ;;  %v65_v0 = vld [vmem:[%s5081_s2 + $0x18] sm:$0xff]  ;;  %v67_v1 = vld [vmem:[%s5081_s2 + $0x28] sm:$0xff]  ;;  %vm76_vm0 = vcmask 130048   ;;  %vm177_vm1 = vcmask 195584  }
   0x6   :  { %v2915_v2 = vld [vmem:[%s5085_s6 + $0x170] sm:$0xff]  ;;  %2438 = vmatpush.msra.mxu1 %v65_v0  ;;  %143 = vmatpush.msra.mxu2 %v67_v1  ;;  %v62_v3 = vld [vmem:[%s5081_s2] sm:$0xff]  ;;  %v2926_v5 = vld [vmem:[%s5085_s6 + $0x158] sm:$0xff]  ;;  %v5093_v61 = vmov 0.0  }
   0x7   :  { %5301 = vst [vmem:[#allocation7_spill] sm:$0xff] %v2915_v2  ;;  %v64_v4 = vld [vmem:[%s5081_s2 + $0x10] sm:$0xff]  ;;  %341 = vmatpush.msra.mxu3 %v2915_v2  ;;  %v2932_v6 = vld [vmem:[%s5079_s0 + $0x8] sm:$0xff]  ;;  %v66_v8 = vld [vmem:[%s5081_s2 + $0x20] sm:$0xff]  ;;  %97 = vmatpush.msra.mxu0 %v65_v0 }
   0x8   :  { %5302 = vst [vmem:[#allocation8_spill] sm:$0xff] %v2926_v5  ;;  %v2937_v7 = vld [vmem:[%s5085_s6 + $0x168] sm:$0xff]  ;;  %2439 = vmatpush.msra.mxu1 %v62_v3  ;;  %144 = vmatpush.msra.mxu2 %v64_v4  ;;  %v2945_v9 = vld [vmem:[%s5085_s6 + $0x140] sm:$0xff]  ;;  %v2953_v10 = vld [vmem:[%s5085_s6 + $0x150] sm:$0xff] }
   0x9   :  { %5303 = vst [vmem:[#allocation9_spill] sm:$0xff] %v2945_v9  ;;  %342 = vmatpush.msra.mxu3 %v2926_v5  ;;  %2395 = vmatmul.msk.f32.vlgmr.msra.gmra.mxu1 %vm76_vm0, %v2932_v6  ;;  %v63_v11 = vld [vmem:[%s5081_s2 + $0x8] sm:$0xff]  ;;  %v168_v13 = vld [vmem:[%s5083_s4 + $0x40] sm:$0xff]  ;;  %v2971_v14 = vld [vmem:[%s5085_s6 + $0x138] sm:$0xff] }
   0xa   :  { %321 = vmatpush.msrb.mxu2 %v2937_v7  ;;  %120 = vmatpush.msrb.mxu1 %v66_v8  ;;  %v2962_v12 = vld [vmem:[%s5085_s6 + $0x128] sm:$0xff]  ;;  %v2977_v15 = vld [vmem:[%s5085_s6 + $0x110] sm:$0xff]  ;;  %v2986_v17 = vld [vmem:[%s5085_s6 + $0x120] sm:$0xff] }
   0xb   :  { %5304 = vst [vmem:[#allocation10_spill] sm:$0xff] %v2962_v12  ;;  %343 = vmatpush.msra.mxu3 %v2945_v9  ;;  %98 = vmatpush.msra.mxu0 %v62_v3  ;;  %v165_v16 = vld [vmem:[%s5083_s4 + $0x28] sm:$0xff]  ;;  %v60_v18 = vld [vmem:[%s5079_s0] sm:$0xff]  ;;  %v2995_v19 = vld [vmem:[%s5085_s6 + $0xf8] sm:$0xff] }
   0xc   :  { %322 = vmatpush.msrb.mxu2 %v2953_v10  ;;  %121 = vmatpush.msrb.mxu1 %v63_v11  ;;  %5305 = vst [vmem:[#allocation11_spill] sm:$0xff] %v2977_v15  ;;  %v162_v20 = vld [vmem:[%s5083_s4 + $0x10] sm:$0xff]  ;;  %v3005_v21 = vld [vmem:[%s5085_s6 + $0x108] sm:$0xff]  ;;  %v3011_v22 = vld [vmem:[%s5085_s6 + $0xe0] sm:$0xff] }
   0xd   :  { %344 = vmatpush.msra.mxu3 %v2962_v12  ;;  %5306 = vst [vmem:[#allocation12_spill] sm:$0xff] %v2995_v19  ;;  %2394 = vmatmul.msk.f32.vlgmr.msra.gmra.mxu0 %vm76_vm0, %v60_v18  ;;  %v3013_v23 = vld [vmem:[#allocation4 + $0x168] sm:$0xff]  ;;  %v3020_v24 = vld [vmem:[%s5085_s6 + $0xf0] sm:$0xff]  ;;  %v3035_v27 = vld [vmem:[%s5085_s6 + $0xd8] sm:$0xff] }
   0xe   :  { %243 = vmatpush.msra.mxu1 %v168_v13  ;;  %323 = vmatpush.msrb.mxu2 %v2971_v14  ;;  %5307 = vst [vmem:[#allocation13_spill] sm:$0xff] %v3011_v22  ;;  %v3026_v25 = vld [vmem:[%s5085_s6 + $0xc8] sm:$0xff]  ;;  %v3028_v26 = vld [vmem:[#allocation4 + $0x150] sm:$0xff]  ;;  %v3043_v29 = vld [vmem:[#allocation4 + $0x138] sm:$0xff] }
   0xf   :  { %345 = vmatpush.msra.mxu3 %v2977_v15  ;;  %v3041_v28 = vld [vmem:[%s5085_s6 + $0xb0] sm:$0xff]  ;;  %v3053_v31 = vld [vmem:[%s5085_s6 + $0xc0] sm:$0xff]  ;;  %v163_v32 = vld [vmem:[%s5083_s4 + $0x18] sm:$0xff]  ;;  %2398 = vmatmul.msk.f32.vlgmr.msra.gmra.mxu2 %vm76_vm0, %v60_v18 }
  0x10   :  { %244 = vmatpush.msra.mxu1 %v165_v16  ;;  %324 = vmatpush.msrb.mxu2 %v2986_v17  ;;  %v166_v30 = vld [vmem:[%s5083_s4 + $0x30] sm:$0xff]  ;;  %v3062_v33 = vld [vmem:[%s5085_s6 + $0x98] sm:$0xff]  ;;  %v3066_v34 = vld [vmem:[#allocation4 + $0x120] sm:$0xff] }
  0x11   :  { %346 = vmatpush.msra.mxu3 %v2995_v19  ;;  %2396 = vmatmul.msk.f32.vlgmr.msrb.gmra.mxu1 %vm76_vm0, %v60_v18  ;;  %v3071_v35 = vld [vmem:[%s5085_s6 + $0xa8] sm:$0xff]  ;;  %v3077_v36 = vld [vmem:[%s5085_s6 + $0x80] sm:$0xff]  ;;  %v3086_v38 = vld [vmem:[%s5085_s6 + $0x90] sm:$0xff] }
  0x12   :  { %245 = vmatpush.msra.mxu1 %v162_v20  ;;  %325 = vmatpush.msrb.mxu2 %v3005_v21  ;;  %v3081_v37 = vld [vmem:[#allocation4 + $0x108] sm:$0xff]  ;;  %v160_v40 = vld [vmem:[%s5083_s4] sm:$0xff]  ;;  %v3101_v41 = vld [vmem:[#allocation4 + $0xf0] sm:$0xff] }
  0x13   :  { %347 = vmatpush.msra.mxu3 %v3011_v22  ;;  %197 = vmatpush.msrb.mxu0 %v166_v30  ;;  %v3093_v39 = vld [vmem:[%s5085_s6 + $0x68] sm:$0xff]  ;;  %v3106_v42 = vld [vmem:[%s5085_s6 + $0x78] sm:$0xff]  ;;  %v3113_v43 = vld [vmem:[%s5085_s6 + $0x50] sm:$0xff] }
  0x14   :  { %477 = vmatpush.msrb.mxu1 %v3013_v23  ;;  %326 = vmatpush.msrb.mxu2 %v3020_v24  ;;  %v167_v44 = vld [vmem:[%s5083_s4 + $0x38] sm:$0xff]  ;;  %v3124_v46 = vld [vmem:[%s5085_s6 + $0x60] sm:$0xff]  ;;  %v3139_v49 = vld [vmem:[%s5085_s6 + $0x48] sm:$0xff] }
  0x15   :  { %348 = vmatpush.msra.mxu3 %v3026_v25  ;;  %198 = vmatpush.msrb.mxu0 %v163_v32  ;;  %v3119_v45 = vld [vmem:[#allocation4 + $0xd8] sm:$0xff]  ;;  %v3134_v48 = vld [vmem:[#allocation4 + $0xc0] sm:$0xff]  ;;  %v3156_v52 = vld [vmem:[#allocation4 + $0xa8] sm:$0xff] }
  0x16   :  { %478 = vmatpush.msrb.mxu1 %v3028_v26  ;;  %327 = vmatpush.msrb.mxu2 %v3035_v27  ;;  %v3131_v47 = vld [vmem:[%s5085_s6 + $0x38] sm:$0xff]  ;;  %v3146_v50 = vld [vmem:[%s5080_s1] sm:$0xff]  ;;  %v3161_v53 = vld [vmem:[%s5085_s6 + $0x30] sm:$0xff] }
  0x17   :  { %349 = vmatpush.msra.mxu3 %v3041_v28  ;;  %199 = vmatpush.msrb.mxu0 %v160_v40  ;;  %v3151_v51 = vld [vmem:[%s5085_s6 + $0x20] sm:$0xff]  ;;  %5308 = vst [vmem:[#allocation14_spill] sm:$0xff] %v3161_v53  ;;  %v3168_v54 = vld [vmem:[%s5085_s6 + $0x8] sm:$0xff]  ;;  %v3173_v55 = vld [vmem:[#allocation4 + $0x90] sm:$0xff] }
  0x18   :  { %479 = vmatpush.msrb.mxu1 %v3043_v29  ;;  %328 = vmatpush.msrb.mxu2 %v3053_v31  ;;  %v3178_v56 = vld [vmem:[%s5085_s6 + $0x18] sm:$0xff]  ;;  %v164_v57 = vld [vmem:[%s5083_s4 + $0x20] sm:$0xff]  ;;  %v3202_v63 = vld [vmem:[#allocation4 + $0x170] sm:$0xff] }
  0x19   :  { %350 = vmatpush.msra.mxu3 %v3062_v33  ;;  %2397 = vmatmul.msk.f32.gmra.mxu1 %vm76_vm0, %v2932_v6  ;;  %5309 = vst [vmem:[#allocation15_spill] sm:$0xff] %v3178_v56  ;;  %v3186_v58 = vld [vmem:[#allocation4 + $0x78] sm:$0xff]  ;;  %v3193_v59 = vld [vmem:[%s5085_s6] sm:$0xff]  ;;  %v3209_v0 = vld [vmem:[%s5080_s1 + $0x8] sm:$0xff] }
  0x1a   :  { %480 = vmatpush.msrb.mxu1 %v3066_v34  ;;  %329 = vmatpush.msrb.mxu2 %v3071_v35  ;;  %5310 = vst [vmem:[#allocation16_spill] sm:$0xff] %v3193_v59  ;;  %v3197_v60 = vld [vmem:[#allocation4 + $0x178] sm:$0xff]  ;;  %v3200_v62 = vld [vmem:[#allocation4 + $0x60] sm:$0xff]  ;;  %v161_v1 = vld [vmem:[%s5083_s4 + $0x8] sm:$0xff] }
  0x1b   :  { %351 = vmatpush.msra.mxu3 %v3077_v36  ;;  %220 = vmatpush.msra.mxu0 %v167_v44  ;;  %5311 = vst [vmem:[#allocation17_spill] sm:$0xff] %v3202_v63  ;;  %v3216_v3 = vld [vmem:[#allocation4 + $0x48] sm:$0xff]  ;;  %v3218_v4 = vld [vmem:[#allocation4 + $0x158] sm:$0xff]  ;;  %v3229_v11 = vld [vmem:[#allocation4 + $0x30] sm:$0xff] }
  0x1c   :  { %481 = vmatpush.msrb.mxu1 %v3081_v37  ;;  %330 = vmatpush.msrb.mxu2 %v3086_v38  ;;  %5312 = vst [vmem:[#allocation18_spill] sm:$0xff] %v3216_v3  ;;  %v3227_v8 = vld [vmem:[%s5085_s6 + $0x178] sm:$0xff]  ;;  %v3233_v13 = vld [vmem:[#allocation4 + $0x140] sm:$0xff]  ;;  %v3237_v16 = vld [vmem:[#allocation4 + $0x148] sm:$0xff] }
  0x1d   :  { %352 = vmatpush.msra.mxu3 %v3093_v39  ;;  %2399 = vmatmul.msk.f32.gmra.mxu2 %vm76_vm0, %v2932_v6  ;;  %5313 = vst [vmem:[#allocation19_spill] sm:$0xff] %v3218_v4  ;;  %v3222_v6 = vld [vmem:[#allocation4 + $0x160] sm:$0xff]  ;;  %v3246_v20 = vld [vmem:[#allocation4 + $0x18] sm:$0xff]  ;;  %v3248_v30 = vld [vmem:[#allocation4 + $0x128] sm:$0xff] }
  0x1e   :  { %482 = vmatpush.msrb.mxu1 %v3101_v41  ;;  %331 = vmatpush.msrb.mxu2 %v3106_v42  ;;  %5314 = vst [vmem:[#allocation20_spill] sm:$0xff] %v3222_v6  ;;  %v3242_v18 = vld [vmem:[%s5085_s6 + $0x160] sm:$0xff]  ;;  %v3252_v32 = vld [vmem:[#allocation4 + $0x130] sm:$0xff]  ;;  %v3257_v40 = vld [vmem:[%s5085_s6 + $0x148] sm:$0xff] }
  0x1f   :  { %353 = vmatpush.msra.mxu3 %v3113_v43  ;;  %2400 = vmatmul.msk.f32.vlgmr.msrb.gmra.mxu0 %vm177_vm1, %v3146_v50  ;;  %5315 = vst [vmem:[#allocation21_spill] sm:$0xff] %v3229_v11  ;;  %v3261_v44 = vld [vmem:[#allocation4] sm:$0xff] }
  0x20   :  { %483 = vmatpush.msrb.mxu1 %v3119_v45  ;;  %332 = vmatpush.msrb.mxu2 %v3124_v46  ;;  %5316 = vst [vmem:[#allocation22_spill] sm:$0xff] %v3233_v13 }
  0x21   :  { %354 = vmatpush.msra.mxu3 %v3131_v47  ;;  %2404 = vmatmul.msk.f32.vlgmr.msra.gmra.mxu1 %vm177_vm1, %v3146_v50  ;;  %5317 = vst [vmem:[#allocation23_spill] sm:$0xff] %v3237_v16 }
  0x22   :  { %484 = vmatpush.msrb.mxu1 %v3134_v48  ;;  %333 = vmatpush.msrb.mxu2 %v3139_v49  ;;  %5318 = vst [vmem:[#allocation24_spill] sm:$0xff] %v3246_v20 }
  0x23   :  { %355 = vmatpush.msra.mxu3 %v3151_v51  ;;  %221 = vmatpush.msra.mxu0 %v164_v57  ;;  %5319 = vst [vmem:[#allocation25_spill] sm:$0xff] %v3248_v30  ;;  %v3263_v57 = vld [vmem:[#allocation4 + $0x110] sm:$0xff] }
  0x24   :  { %485 = vmatpush.msrb.mxu1 %v3156_v52  ;;  %334 = vmatpush.msrb.mxu2 %v3161_v53  ;;  %5320 = vst [vmem:[#allocation26_spill] sm:$0xff] %v3252_v32  ;;  %v3319_v53 = vld [vmem:[#allocation4 + $0xb8] sm:$0xff] }
  0x25   :  { %356 = vmatpush.msra.mxu3 %v3168_v54  ;;  %222 = vmatpush.msra.mxu0 %v161_v1  ;;  %5321 = vst [vmem:[#allocation27_spill] sm:$0xff] %v3261_v44  ;;  %v3267_v1 = vld [vmem:[#allocation4 + $0x118] sm:$0xff] }
  0x26   :  { %486 = vmatpush.msrb.mxu1 %v3173_v55  ;;  %335 = vmatpush.msrb.mxu2 %v3178_v56  ;;  %5322 = vst [vmem:[#allocation28_spill] sm:$0xff] %v3263_v57  ;;  %v3306_v56 = vld [vmem:[#allocation4 + $0xd0] sm:$0xff] }
  0x27   :  { %357 = vmatmul.f32.vlgmr.msra.gmra.mxu3 %v5093_v61  ;;  %361 = vmatpush.msrb.mxu0 %v3227_v8  ;;  %5323 = vst [vmem:[#allocation29_spill] sm:$0xff] %v3267_v1 }
  0x28   :  { %487 = vmatpush.msrb.mxu1 %v3186_v58  ;;  %336 = vmatpush.msrb.mxu2 %v3193_v59  ;;  %v3301_v59 = vld [vmem:[%s5085_s6 + $0x100] sm:$0xff]  ;;  %5330 = vst [vmem:[#allocation35_spill] sm:$0xff] %v3306_v56 }
  0x29   :  { %337 = vmatmul.f32.vlgmr.msrb.gmra.mxu2 %v5093_v61  ;;  %517 = vmatpush.msrb.mxu3 %v3197_v60  ;;  %v3272_v61 = vld [vmem:[%s5085_s6 + $0x130] sm:$0xff]  ;;  %5332 = vst [vmem:[#allocation37_spill] sm:$0xff] %v3319_v53 }
  0x2a   :  { %488 = vmatpush.msrb.mxu1 %v3200_v62  ;;  %497 = vmatpush.msra.mxu2 %v3202_v63  ;;  %v5326_v63 = vmov 0.0  }
  0x2b   :  { %2405 = vmatmul.msk.f32.gmra.mxu1 %vm177_vm1, %v3209_v0  ;;  %518 = vmatpush.msrb.mxu3 %v3222_v6 }
  0x2c   :  { %489 = vmatpush.msrb.mxu1 %v3216_v3  ;;  %498 = vmatpush.msra.mxu2 %v3218_v4  ;;  %v3280_v4 = vld [vmem:[#allocation4 + $0x100] sm:$0xff] }
  0x2d   :  { %519 = vmatpush.msrb.mxu3 %v3237_v16  ;;  %362 = vmatpush.msrb.mxu0 %v3242_v18  ;;  %5325 = vst [vmem:[#allocation31_spill] sm:$0xff] %v3280_v4 }
  0x2e   :  { %490 = vmatpush.msrb.mxu1 %v3229_v11  ;;  %499 = vmatpush.msra.mxu2 %v3233_v13  ;;  %v3278_v13 = vld [vmem:[#allocation4 + $0xf8] sm:$0xff]  ;;  %v3317_v11 = vld [vmem:[#allocation4 + $0xb0] sm:$0xff] }
  0x2f   :  { %520 = vmatpush.msrb.mxu3 %v3252_v32  ;;  %363 = vmatpush.msrb.mxu0 %v3257_v40  ;;  %5324 = vst [vmem:[#allocation30_spill] sm:$0xff] %v3278_v13 }
  0x30   :  { %491 = vmatpush.msrb.mxu1 %v3246_v20  ;;  %500 = vmatpush.msra.mxu2 %v3248_v30  ;;  %v3287_v30 = vld [vmem:[%s5085_s6 + $0x118] sm:$0xff]  ;;  %v3304_v20 = vld [vmem:[#allocation4 + $0xc8] sm:$0xff]  ;;  %5331 = vst [vmem:[#allocation36_spill] sm:$0xff] %v3317_v11 }
  0x31   :  { %521 = vmatpush.msrb.mxu3 %v3267_v1  ;;  %364 = vmatpush.msrb.mxu0 %v3272_v61  ;;  %5329 = vst [vmem:[#allocation34_spill] sm:$0xff] %v3304_v20 }
  0x32   :  { %492 = vmatpush.msrb.mxu1 %v3261_v44  ;;  %501 = vmatpush.msra.mxu2 %v3263_v57  ;;  %v3292_v44 = vld [vmem:[#allocation4 + $0xe0] sm:$0xff]  ;;  %v3294_v57 = vld [vmem:[#allocation4 + $0xe8] sm:$0xff] }
  0x33   :  { %493 = vmatmul.f32.vlgmr.msrb.gmra.mxu1 %v5326_v63  ;;  %2401 = vmatmul.msk.f32.gmra.mxu0 %vm177_vm1, %v3209_v0  ;;  %5327 = vst [vmem:[#allocation32_spill] sm:$0xff] %v3292_v44 }
  0x34   :  { %5328 = vst [vmem:[#allocation33_spill] sm:$0xff] %v3294_v57  ;;  %502 = vmatpush.msra.mxu2 %v3278_v13  ;;  %522 = vmatpush.msrb.mxu3 %v3280_v4  ;;  %v3314_v13 = vld [vmem:[%s5085_s6 + $0xe8] sm:$0xff] }
  0x35   :  { %365 = vmatpush.msrb.mxu0 %v3287_v30  ;;  %611 = vmatpush.msra.mxu1 %v2915_v2  ;;  %v3330_v2 = vld [vmem:[#allocation4 + $0x98] sm:$0xff] }
  0x36   :  { %503 = vmatpush.msra.mxu2 %v3292_v44  ;;  %523 = vmatpush.msrb.mxu3 %v3294_v57  ;;  %v3327_v44 = vld [vmem:[%s5085_s6 + $0xd0] sm:$0xff]  ;;  %5333 = vst [vmem:[#allocation38_spill] sm:$0xff] %v3330_v2 }
  0x37   :  { %366 = vmatpush.msrb.mxu0 %v3301_v59  ;;  %612 = vmatpush.msra.mxu1 %v2926_v5  ;;  %v3335_v5 = vld [vmem:[#allocation4 + $0xa0] sm:$0xff] }
  0x38   :  { %504 = vmatpush.msra.mxu2 %v3304_v20  ;;  %524 = vmatpush.msrb.mxu3 %v3306_v56  ;;  %5334 = vst [vmem:[#allocation39_spill] sm:$0xff] %v3335_v5  ;;  %v3340_v20 = vld [vmem:[%s5085_s6 + $0xb8] sm:$0xff]  ;;  %v3343_v56 = vld [vmem:[#allocation4 + $0x80] sm:$0xff] }
  0x39   :  { %367 = vmatpush.msrb.mxu0 %v3314_v13  ;;  %613 = vmatpush.msra.mxu1 %v2945_v9  ;;  %5335 = vst [vmem:[#allocation40_spill] sm:$0xff] %v3343_v56  ;;  %v3354_v9 = vld [vmem:[%s5085_s6 + $0xa0] sm:$0xff] }
  0x3a   :  { %505 = vmatpush.msra.mxu2 %v3317_v11  ;;  %525 = vmatpush.msrb.mxu3 %v3319_v53  ;;  %v3349_v11 = vld [vmem:[#allocation4 + $0x88] sm:$0xff] }
  0x3b   :  { %368 = vmatpush.msrb.mxu0 %v3327_v44  ;;  %614 = vmatpush.msra.mxu1 %v2962_v12  ;;  %5336 = vst [vmem:[#allocation41_spill] sm:$0xff] %v3349_v11  ;;  %v3358_v53 = vld [vmem:[#allocation4 + $0x68] sm:$0xff]  ;;  %v3361_v12 = vld [vmem:[#allocation4 + $0x70] sm:$0xff] }
  0x3c   :  { %2402 = vmatmul.msk.f32.vlgmr.msra.gmra.mxu0 %vm177_vm1, %v3146_v50  ;;  %506 = vmatpush.msra.mxu2 %v3330_v2  ;;  %5337 = vst [vmem:[#allocation42_spill] sm:$0xff] %v3358_v53  ;;  %v3366_v50 = vld [vmem:[%s5085_s6 + $0x88] sm:$0xff]  ;;  %v3371_v2 = vld [vmem:[#allocation4 + $0x50] sm:$0xff] }
  0x3d   :  { %526 = vmatpush.msrb.mxu3 %v3335_v5  ;;  %369 = vmatpush.msrb.mxu0 %v3340_v20  ;;  %5338 = vst [vmem:[#allocation43_spill] sm:$0xff] %v3361_v12  ;;  %v3374_v5 = vld [vmem:[#allocation4 + $0x58] sm:$0xff] }
  0x3e   :  { %507 = vmatpush.msra.mxu2 %v3343_v56  ;;  %615 = vmatpush.msra.mxu1 %v2977_v15  ;;  %5339 = vst [vmem:[#allocation44_spill] sm:$0xff] %v3371_v2  ;;  %v3379_v56 = vld [vmem:[%s5085_s6 + $0x70] sm:$0xff]  ;;  %v3384_v15 = vld [vmem:[#allocation4 + $0x38] sm:$0xff] }
  0x3f   :  { %527 = vmatpush.msrb.mxu3 %v3349_v11  ;;  %370 = vmatpush.msrb.mxu0 %v3354_v9  ;;  %5340 = vst [vmem:[#allocation45_spill] sm:$0xff] %v3374_v5  ;;  %v3387_v11 = vld [vmem:[#allocation4 + $0x40] sm:$0xff] }
  0x40   :  { %508 = vmatpush.msra.mxu2 %v3358_v53  ;;  %616 = vmatpush.msra.mxu1 %v2995_v19  ;;  %5341 = vst [vmem:[#allocation46_spill] sm:$0xff] %v3384_v15  ;;  %v3392_v53 = vld [vmem:[%s5085_s6 + $0x58] sm:$0xff]  ;;  %v3397_v19 = vld [vmem:[#allocation4 + $0x20] sm:$0xff] }
  0x41   :  { %528 = vmatpush.msrb.mxu3 %v3361_v12  ;;  %371 = vmatpush.msrb.mxu0 %v3366_v50  ;;  %5342 = vst [vmem:[#allocation47_spill] sm:$0xff] %v3387_v11  ;;  %v3407_v12 = vld [vmem:[%s5085_s6 + $0x40] sm:$0xff] }
  0x42   :  { %509 = vmatpush.msra.mxu2 %v3371_v2  ;;  %617 = vmatpush.msra.mxu1 %v3011_v22  ;;  %5343 = vst [vmem:[#allocation48_spill] sm:$0xff] %v3397_v19  ;;  %v3402_v2 = vld [vmem:[#allocation4 + $0x28] sm:$0xff] }
  0x43   :  { %529 = vmatpush.msrb.mxu3 %v3374_v5  ;;  %372 = vmatpush.msrb.mxu0 %v3379_v56  ;;  %5344 = vst [vmem:[#allocation49_spill] sm:$0xff] %v3402_v2  ;;  %v3411_v22 = vld [vmem:[#allocation4 + $0x8] sm:$0xff]  ;;  %v3414_v5 = vld [vmem:[#allocation4 + $0x10] sm:$0xff] }
  0x44   :  { %2403 = vmatmul.msk.f32.gmra.mxu0 %vm177_vm1, %v3209_v0  ;;  %510 = vmatpush.msra.mxu2 %v3384_v15  ;;  %5345 = vst [vmem:[#allocation50_spill] sm:$0xff] %v3407_v12  ;;  %v3419_v0 = vld [vmem:[%s5085_s6 + $0x28] sm:$0xff]  ;;  %v3428_v15 = vld [vmem:[%s5085_s6 + $0x10] sm:$0xff] }
  0x45   :  { %530 = vmatpush.msrb.mxu3 %v3387_v11  ;;  %373 = vmatpush.msrb.mxu0 %v3392_v53  ;;  %5346 = vst [vmem:[#allocation51_spill] sm:$0xff] %v3411_v22 }
  0x46   :  { %511 = vmatpush.msra.mxu2 %v3397_v19  ;;  %5347 = vst [vmem:[#allocation52_spill] sm:$0xff] %v3414_v5  ;;  %618 = vmatpush.msra.mxu1 %v3026_v25 }
  0x47   :  { %5348 = vst [vmem:[#allocation53_spill] sm:$0xff] %v3419_v0  ;;  %531 = vmatpush.msrb.mxu3 %v3402_v2  ;;  %374 = vmatpush.msrb.mxu0 %v3407_v12 }
  0x48   :  { %512 = vmatpush.msra.mxu2 %v3411_v22  ;;  %5349 = vst [vmem:[#allocation54_spill] sm:$0xff] %v3428_v15  ;;  %619 = vmatpush.msra.mxu1 %v3041_v28 }
  0x49   :  { %532 = vmatpush.msrb.mxu3 %v3414_v5  ;;  %375 = vmatpush.msrb.mxu0 %v3419_v0 }
  0x4a   :  { %513 = vmatmul.f32.vlgmr.msra.gmra.mxu2 %v5326_v63  ;;  %533 = vmatmul.f32.vlgmr.msrb.gmra.mxu3 %v5326_v63 }
  0x4b   :  { %376 = vmatpush.msrb.mxu0 %v3428_v15  ;;  %631 = vmatpush.msrb.mxu2 %v3227_v8 }
  0x4c   :  { %377 = vmatmul.f32.vlgmr.msrb.gmra.mxu0 %v5326_v63  ;;  %620 = vmatpush.msra.mxu1 %v3062_v33  ;;  %v5350_v63 = vld [vmem:[#allocation14_spill] sm:$0xff] }
  0x4d   :  { %591 = vmatpush.msra.mxu0 %v2937_v7  ;;  %632 = vmatpush.msrb.mxu2 %v3242_v18 }
  0x4e   :  { %621 = vmatpush.msra.mxu1 %v3077_v36  ;;  %711 = vmatpush.msra.mxu3 %v3013_v23 }
  0x4f   :  { %592 = vmatpush.msra.mxu0 %v2953_v10  ;;  %633 = vmatpush.msrb.mxu2 %v3257_v40 }
  0x50   :  { %622 = vmatpush.msra.mxu1 %v3093_v39  ;;  %712 = vmatpush.msra.mxu3 %v3028_v26 }
  0x51   :  { %593 = vmatpush.msra.mxu0 %v2971_v14  ;;  %634 = vmatpush.msrb.mxu2 %v3272_v61 }
  0x52   :  { %623 = vmatpush.msra.mxu1 %v3113_v43  ;;  %713 = vmatpush.msra.mxu3 %v3043_v29 }
  0x53   :  { %594 = vmatpush.msra.mxu0 %v2986_v17  ;;  %635 = vmatpush.msrb.mxu2 %v3287_v30 }
  0x54   :  { %624 = vmatpush.msra.mxu1 %v3131_v47  ;;  %714 = vmatpush.msra.mxu3 %v3066_v34 }
  0x55   :  { %595 = vmatpush.msra.mxu0 %v3005_v21  ;;  %636 = vmatpush.msrb.mxu2 %v3301_v59 }
  0x56   :  { %625 = vmatpush.msra.mxu1 %v3151_v51  ;;  %715 = vmatpush.msra.mxu3 %v3081_v37 }
  0x57   :  { %596 = vmatpush.msra.mxu0 %v3020_v24  ;;  %637 = vmatpush.msrb.mxu2 %v3314_v13 }
  0x58   :  { %626 = vmatpush.msra.mxu1 %v3168_v54  ;;  %716 = vmatpush.msra.mxu3 %v3101_v41 }
  0x59   :  { %597 = vmatpush.msra.mxu0 %v3035_v27  ;;  %638 = vmatpush.msrb.mxu2 %v3327_v44 }
  0x5a   :  { %751 = vmatpush.msrb.mxu1 %v3197_v60  ;;  %717 = vmatpush.msra.mxu3 %v3119_v45 }
  0x5b   :  { %598 = vmatpush.msra.mxu0 %v3053_v31  ;;  %639 = vmatpush.msrb.mxu2 %v3340_v20 }
  0x5c   :  { %752 = vmatpush.msrb.mxu1 %v3222_v6  ;;  %718 = vmatpush.msra.mxu3 %v3134_v48  ;;  %v5355_v6 = vld [vmem:[#allocation24_spill] sm:$0xff] }
  0x5d   :  { %599 = vmatpush.msra.mxu0 %v3071_v35  ;;  %640 = vmatpush.msrb.mxu2 %v3354_v9 }
  0x5e   :  { %753 = vmatpush.msrb.mxu1 %v3237_v16  ;;  %719 = vmatpush.msra.mxu3 %v3156_v52  ;;  %v5353_v16 = vld [vmem:[#allocation15_spill] sm:$0xff] }
  0x5f   :  { %600 = vmatpush.msra.mxu0 %v3086_v38  ;;  %641 = vmatpush.msrb.mxu2 %v3366_v50 }
  0x60   :  { %754 = vmatpush.msrb.mxu1 %v3252_v32  ;;  %720 = vmatpush.msra.mxu3 %v3173_v55  ;;  %v5352_v32 = vld [vmem:[#allocation21_spill] sm:$0xff] }
  0x61   :  { %601 = vmatpush.msra.mxu0 %v3106_v42  ;;  %642 = vmatpush.msrb.mxu2 %v3379_v56 }
  0x62   :  { %755 = vmatpush.msrb.mxu1 %v3267_v1  ;;  %721 = vmatpush.msra.mxu3 %v3186_v58  ;;  %v5351_v1 = vld [vmem:[#allocation35_spill] sm:$0xff] }
  0x63   :  { %602 = vmatpush.msra.mxu0 %v3124_v46  ;;  %643 = vmatpush.msrb.mxu2 %v3392_v53 }
  0x64   :  { %756 = vmatpush.msrb.mxu1 %v3280_v4  ;;  %722 = vmatpush.msra.mxu3 %v3200_v62  ;;  %v5354_v4 = vld [vmem:[#allocation37_spill] sm:$0xff] }
  0x65   :  { %603 = vmatpush.msra.mxu0 %v3139_v49  ;;  %644 = vmatpush.msrb.mxu2 %v3407_v12  ;;  %v5356_v12 = vld [vmem:[#allocation16_spill] sm:$0xff] }
  0x66   :  { %757 = vmatpush.msrb.mxu1 %v3294_v57  ;;  %723 = vmatpush.msra.mxu3 %v3216_v3  ;;  %v5357_v57 = vld [vmem:[#allocation17_spill] sm:$0xff]  ;;  %v5358_v3 = vld [vmem:[#allocation39_spill] sm:$0xff] }
  0x67   :  { %604 = vmatpush.msra.mxu0 %v5350_v63  ;;  %645 = vmatpush.msrb.mxu2 %v3419_v0  ;;  %v5359_v0 = vld [vmem:[#allocation27_spill] sm:$0xff] }
  0x68   :  { %758 = vmatpush.msrb.mxu1 %v5351_v1  ;;  %724 = vmatpush.msra.mxu3 %v5352_v32  ;;  %v5360_v1 = vld [vmem:[#allocation19_spill] sm:$0xff]  ;;  %v5361_v32 = vld [vmem:[#allocation41_spill] sm:$0xff] }
  0x69   :  { %605 = vmatpush.msra.mxu0 %v5353_v16  ;;  %646 = vmatpush.msrb.mxu2 %v3428_v15  ;;  %v5362_v15 = vld [vmem:[#allocation7_spill] sm:$0xff] }
  0x6a   :  { %759 = vmatpush.msrb.mxu1 %v5354_v4  ;;  %725 = vmatpush.msra.mxu3 %v5355_v6  ;;  %v5363_v4 = vld [vmem:[#allocation22_spill] sm:$0xff]  ;;  %v5364_v6 = vld [vmem:[#allocation43_spill] sm:$0xff] }
  0x6b   :  { %606 = vmatpush.msra.mxu0 %v5356_v12  ;;  %840 = vmatpush.msra.mxu2 %v2937_v7  ;;  %v5365_v7 = vld [vmem:[#allocation8_spill] sm:$0xff] }
  0x6c   :  { %760 = vmatpush.msrb.mxu1 %v5358_v3  ;;  %726 = vmatpush.msra.mxu3 %v5359_v0  ;;  %v5366_v3 = vld [vmem:[#allocation25_spill] sm:$0xff] }
  0x6d   :  { %731 = vmatpush.msrb.mxu0 %v5357_v57  ;;  %841 = vmatpush.msra.mxu2 %v2953_v10  ;;  %v5367_v0 = vld [vmem:[#allocation45_spill] sm:$0xff] }
  0x6e   :  { %761 = vmatpush.msrb.mxu1 %v5361_v32  ;;  %860 = vmatpush.msrb.mxu3 %v5362_v15  ;;  %v5368_v10 = vld [vmem:[#allocation9_spill] sm:$0xff]  ;;  %v5369_v32 = vld [vmem:[#allocation28_spill] sm:$0xff]  ;;  %v5371_v15 = vld [vmem:[#allocation30_spill] sm:$0xff] }
  0x6f   :  { %732 = vmatpush.msrb.mxu0 %v5360_v1  ;;  %842 = vmatpush.msra.mxu2 %v2971_v14  ;;  %v5370_v14 = vld [vmem:[#allocation10_spill] sm:$0xff] }
  0x70   :  { %762 = vmatpush.msrb.mxu1 %v5364_v6  ;;  %861 = vmatpush.msrb.mxu3 %v5365_v7  ;;  %v5373_v7 = vld [vmem:[#allocation32_spill] sm:$0xff] }
  0x71   :  { %733 = vmatpush.msrb.mxu0 %v5363_v4  ;;  %843 = vmatpush.msra.mxu2 %v2986_v17  ;;  %v5372_v17 = vld [vmem:[#allocation11_spill] sm:$0xff] }
  0x72   :  { %763 = vmatpush.msrb.mxu1 %v5367_v0  ;;  %862 = vmatpush.msrb.mxu3 %v5368_v10  ;;  %v5375_v10 = vld [vmem:[#allocation34_spill] sm:$0xff] }
  0x73   :  { %734 = vmatpush.msrb.mxu0 %v5366_v3  ;;  %844 = vmatpush.msra.mxu2 %v3005_v21  ;;  %v5374_v21 = vld [vmem:[#allocation12_spill] sm:$0xff] }
  0x74   :  { %764 = vmatpush.msrb.mxu1 %v3387_v11  ;;  %863 = vmatpush.msrb.mxu3 %v5370_v14  ;;  %v5376_v14 = vld [vmem:[#allocation13_spill] sm:$0xff] }
  0x75   :  { %735 = vmatpush.msrb.mxu0 %v5369_v32  ;;  %845 = vmatpush.msra.mxu2 %v3020_v24  ;;  %v5377_v24 = vld [vmem:[#allocation36_spill] sm:$0xff] }
  0x76   :  { %765 = vmatpush.msrb.mxu1 %v3402_v2  ;;  %864 = vmatpush.msrb.mxu3 %v5372_v17  ;;  %v68_v17 = vld [vmem:[%s5082_s3] sm:$0x7] }
  0x77   :  { %736 = vmatpush.msrb.mxu0 %v5371_v15  ;;  %846 = vmatpush.msra.mxu2 %v3035_v27  ;;  %v5378_v27 = vld [vmem:[#allocation38_spill] sm:$0xff] }
  0x78   :  { %766 = vmatpush.msrb.mxu1 %v3414_v5  ;;  %865 = vmatpush.msrb.mxu3 %v5374_v21 }
  0x79   :  { %737 = vmatpush.msrb.mxu0 %v5373_v7  ;;  %847 = vmatpush.msra.mxu2 %v3053_v31  ;;  %v5379_v31 = vld [vmem:[#allocation40_spill] sm:$0xff] }
  0x7a   :  { %866 = vmatpush.msrb.mxu3 %v5376_v14 }
  0x7b   :  { %738 = vmatpush.msrb.mxu0 %v5375_v10  ;;  %848 = vmatpush.msra.mxu2 %v3071_v35  ;;  %v70_v35 = vperm.slane %v68_v17, 0 }
  0x7c   :  { %867 = vmatpush.msrb.mxu3 %v3026_v25  ;;  %v5380_v25 = vld [vmem:[#allocation42_spill] sm:$0xff] }
  0x7d   :  { %739 = vmatpush.msrb.mxu0 %v5377_v24  ;;  %849 = vmatpush.msra.mxu2 %v3086_v38  ;;  %v5381_v38 = vld [vmem:[#allocation44_spill] sm:$0xff] }
  0x7e   :  { %868 = vmatpush.msrb.mxu3 %v3041_v28 }
  0x7f   :  { %740 = vmatpush.msrb.mxu0 %v5378_v27  ;;  %850 = vmatpush.msra.mxu2 %v3106_v42  ;;  %v5382_v42 = vld [vmem:[#allocation46_spill] sm:$0xff] }
  0x80   :  { %869 = vmatpush.msrb.mxu3 %v3062_v33  ;;  %v71_v33 = vperm.slane %v68_v17, 1 }
  0x81   :  { %741 = vmatpush.msrb.mxu0 %v5379_v31  ;;  %851 = vmatpush.msra.mxu2 %v3124_v46 }
  0x82   :  { %870 = vmatpush.msrb.mxu3 %v3077_v36 }
  0x83   :  { %742 = vmatpush.msrb.mxu0 %v5380_v25  ;;  %852 = vmatpush.msra.mxu2 %v3139_v49 }
  0x84   :  { %871 = vmatpush.msrb.mxu3 %v3093_v39 }
  0x85   :  { %743 = vmatpush.msrb.mxu0 %v5381_v38  ;;  %853 = vmatpush.msra.mxu2 %v5350_v63  ;;  %v72_v63 = vperm.slane %v68_v17, 2 }
  0x86   :  { %v103_v21 = vpop.f32.mrf.mxu1  ;;  %872 = vmatpush.msrb.mxu3 %v3113_v43 }
  0x87   :  { %v104_v28 = vadd.f32 %v103_v21, %v70_v35  ;;  %744 = vmatpush.msrb.mxu0 %v5382_v42  ;;  %854 = vmatpush.msra.mxu2 %v5353_v16 }
  0x88   :  { %873 = vmatpush.msrb.mxu3 %v3131_v47 }
  0x89   :  { %155 = vst [vmem:[#allocation2] sm:$0xff] %v104_v28  ;;  %745 = vmatpush.msrb.mxu0 %v3397_v19  ;;  %855 = vmatpush.msra.mxu2 %v5356_v12  ;;  %v169_v12 = vld [vmem:[%s5084_s5] sm:$0x7] }
  0x8a   :  { %v100_v36 = vpop.f32.mrf.mxu0  ;;  %874 = vmatpush.msrb.mxu3 %v3151_v51  ;;  %v173_v21 = vperm.slane %v169_v12, 2 }
  0x8b   :  { %746 = vmatpush.msrb.mxu0 %v3411_v22  ;;  %v101_v39 = vadd.f32 %v100_v36, %v70_v35  ;;  %v171_v35 = vperm.slane %v169_v12, 0 }
  0x8c   :  { %875 = vmatpush.msrb.mxu3 %v3168_v54 }
  0x8d   :  { %152 = vst [vmem:[#allocation2 + $0x28] sm:$0xff] %v101_v39 }
  0x8e   :  { %v123_v46 = vpop.f32.mrf.mxu1 }
  0x8f   :  { %v124_v43 = vadd.f32 %v123_v46, %v71_v33 }
  0x91   :  { %153 = vst [vmem:[#allocation2 + $0x10] sm:$0xff] %v124_v43 }
  0x92   :  { %v146_v47 = vpop.f32.mrf.mxu2 }
  0x93   :  { %v147_v14 = vadd.f32 %v146_v47, %v72_v63 }
  0x95   :  { %154 = vst [vmem:[#allocation2 + $0x8] sm:$0xff] %v147_v14 }
  0x96   :  { %v126_v49 = vpop.f32.mrf.mxu1 }
  0x97   :  { %v127_v16 = vadd.f32 %v126_v49, %v71_v33 }
  0x98   :  { %v268_v33 = vld [vmem:[#allocation2 + $0x10] sm:$0x3] }
  0x99   :  { %156 = vst [vmem:[#allocation2 + $0x18] sm:$0xff] %v127_v16  ;;  %v267_v16 = vld [vmem:[#allocation2 + $0x28] sm:$0x3] }
  0x9c   :  { %v201_v36 = vpop.f32.mrf.mxu0  ;;  %v269_v22 = vld [vmem:[#allocation2 + $0x8] sm:$0x3] }
  0x9d   :  { %v202_v54 = vadd.f32 %v201_v36, %v171_v35 }
  0x9e   :  { %v247_v51 = vpop.f32.mrf.mxu1 }
  0x9f   :  { %v248_v28 = vadd.f32 %v247_v51, %v173_v21  ;;  %253 = vst [vmem:[#allocation3] sm:$0xff] %v202_v54 }
  0xa0   :  { %v149_v39 = vpop.f32.mrf.mxu2 }
  0xa1   :  { %255 = vst [vmem:[#allocation3 + $0x20] sm:$0xff] %v248_v28  ;;  %v150_v46 = vadd.f32 %v149_v39, %v72_v63 }
  0xa3   :  { %157 = vst [vmem:[#allocation2 + $0x20] sm:$0xff] %v150_v46 }
  0xa6   :  { %v270_v51 = vld [vmem:[#allocation3] sm:$0x3] }
  0xa8   :  { %v250_v17 = vpop.f32.mrf.mxu1 }
  0xa9   :  { %v251_v43 = vadd.f32 %v250_v17, %v173_v21  ;;  %v172_v17 = vperm.slane %v169_v12, 1 }
  0xaa   :  { %v358_v49 = vpop.f32.mrf.mxu3 }
  0xab   :  { %258 = vst [vmem:[#allocation3 + $0x10] sm:$0xff] %v251_v43  ;;  %v401_v5 = vadd.f32 %v358_v49, %v268_v33 }
  0xac   :  { %v338_v47 = vpop.f32.mrf.mxu2 }
  0xad   :  { %v2407_v2 = vmul.f32 -1.442695, %v401_v5  ;;  %v381_v14 = vadd.f32 %v338_v47, %v267_v16 }
  0xaf   :  { %2447 = vpow2.f32 %v2407_v2  ;;  %v2406_v11 = vmul.f32 -1.442695, %v381_v14 }
  0xb0   :  { %v494_v28 = vpop.f32.mrf.mxu1  ;;  %v204_v36 = vpop.f32.mrf.mxu0 }
  0xb1   :  { %2449 = vpow2.f32 %v2406_v11  ;;  %v537_v0 = vadd.f32 %v494_v28, %v270_v51  ;;  %v205_v63 = vadd.f32 %v204_v36, %v171_v35 }
  0xb3   :  { %v2408_v54 = vmul.f32 -1.442695, %v537_v0  ;;  %256 = vst [vmem:[#allocation3 + $0x18] sm:$0xff] %v205_v63 }
  0xb5   :  { %v2448_v39 = vpop.eup %2447  ;;  %2451 = vpow2.f32 %v2408_v54 }
  0xb6   :  { %v405_v46 = vadd.f32 1.0, %v2448_v39  ;;  %v3568_v39 = vld [vmem:[%s5086_s7] ss:$0 sm:$0xff] }
  0xb7   :  { %v2450_v21 = vpop.eup %2449 }
  0xb8   :  { %2453 = vrcp.f32 %v405_v46  ;;  %v385_v33 = vadd.f32 1.0, %v2450_v21  ;;  %v417_v6 = vand.u32 2147483648, %v405_v46  ;;  %vm411_vm7 = vweird.f32 %v405_v46 }
  0xb9   :  { %v224_v5 = vpop.f32.mrf.mxu0 }
  0xba   :  { %2455 = vrcp.f32 %v385_v33  ;;  %v225_v43 = vadd.f32 %v224_v5, %v172_v17  ;;  %v397_v12 = vand.u32 2147483648, %v385_v33  ;;  %vm391_vm2 = vweird.f32 %v385_v33 }
  0xbb   :  { %v2452_v2 = vpop.eup %2451  ;;  %v395_v63 = vand.u32 2147483647, %v385_v33 }
  0xbc   :  { %v3562_v49 = vadd.f32 1.0, %v2452_v2  ;;  %254 = vst [vmem:[#allocation3 + $0x8] sm:$0xff] %v225_v43  ;;  %v398_v43 = vor.u32 1.1754944e-38, %v397_v12 }
  0xbd   :  { %vm396_vm5 = vcmp.eq.f32.partialorder %v395_v63, 8.507059e+37 }
  0xbe   :  { %v2454_v11 = vpop.eup %2453  ;;  %2457 = vrcp.f32 %v3562_v49  ;;  %vm547_vm10 = vweird.f32 %v3562_v49 }
  0xbf   :  { %v407_v47 = vmul.f32 %v2454_v11, %v405_v46  ;;  %vm412_vm6 = vweird.f32 %v2454_v11 }
  0xc0   :  { %v2456_v16 = vpop.eup %2455  ;;  %vm413_vm8 = vmor %vm411_vm7, %vm412_vm6 }
  0xc1   :  { %v387_v0 = vmul.f32 %v2456_v16, %v385_v33  ;;  %v227_v35 = vpop.f32.mrf.mxu0  ;;  %v408_v28 = vsub.f32 1.0, %v407_v47  ;;  %vm392_vm3 = vweird.f32 %v2456_v16 }
  0xc2   :  { %v228_v14 = vadd.f32 %v227_v35, %v172_v17  ;;  %vm393_vm4 = vmor %vm391_vm2, %vm392_vm3 }
  0xc3   :  { %v388_v51 = vsub.f32 1.0, %v387_v0  ;;  %v409_v5 = vmul.f32 %v2454_v11, %v408_v28  ;;  %v415_v28 = vand.u32 2147483647, %v405_v46 }
  0xc4   :  { %257 = vst [vmem:[#allocation3 + $0x28] sm:$0xff] %v228_v14  ;;  %v2458_v54 = vpop.eup %2457  ;;  %v271_v14 = vld [vmem:[#allocation3 + $0x8] sm:$0x3] }
  0xc5   :  { %v389_v36 = vmul.f32 %v2456_v16, %v388_v51  ;;  %v543_v0 = vmul.f32 %v2458_v54, %v3562_v49  ;;  %v410_v33 = vadd.f32 %v2454_v11, %v409_v5  ;;  %vm416_vm9 = vcmp.eq.f32.partialorder %v415_v28, 8.507059e+37 }
  0xc6   :  { %vm548_vm11 = vweird.f32 %v2458_v54  ;;  %v553_v5 = vand.u32 2147483648, %v3562_v49 }
  0xc7   :  { %v390_v21 = vadd.f32 %v2456_v16, %v389_v36  ;;  %v544_v36 = vsub.f32 1.0, %v543_v0  ;;  %vm3575_vm12 = vmor %vm547_vm10, %vm548_vm11 }
  0xc9   :  { %v394_v2 = vsel %vm393_vm4, %v2456_v16, %v390_v21  ;;  %v378_v17 = vpop.f32.mrf.mxu0  ;;  %v414_v16 = vsel %vm413_vm8, %v2454_v11, %v410_v33  ;;  %v418_v21 = vor.u32 1.1754944e-38, %v417_v6  ;;  %v3582_v6 = vld [vmem:[%s5088_s9] ss:$0 sm:$0xff] }
  0xca   :  { %v399_v47 = vsel %vm396_vm5, %v398_v43, %v394_v2  ;;  %v421_v35 = vadd.f32 %v3568_v39, %v378_v17  ;;  %v545_v43 = vmul.f32 %v2458_v54, %v544_v36 }
  0xcb   :  { %v419_v2 = vsel %vm416_vm9, %v418_v21, %v414_v16  ;;  %v3699_v21 = vld [vmem:[%s5085_s6 + $0x128] sm:$0xff] }
  0xcc   :  { %v422_v51 = vmul.f32 %v421_v35, %v399_v47  ;;  %v546_v17 = vadd.f32 %v2458_v54, %v545_v43  ;;  %v551_v47 = vand.u32 2147483647, %v3562_v49  ;;  %v425_v46 = vsub.f32 1.0, %v419_v2  ;;  %5406 = vst [vmem:[#allocation17_spill] sm:$0xff] %v3699_v21  ;;  %v3705_v43 = vld [vmem:[%s5085_s6 + $0x108] sm:$0xff] }
  0xcd   :  { %v514_v19 = vpop.f32.mrf.mxu2  ;;  %v427_v11 = vmul.f32 0.0, %v419_v2  ;;  %v534_v35 = vpop.f32.mrf.mxu3  ;;  %v5407_v2 = vld [vmem:[#allocation39_spill] sm:$0xff] }
  0xce   :  { %v423_v42 = vadd.f32 %v422_v51, %v269_v22  ;;  %v557_v12 = vadd.f32 %v514_v19, %v271_v14  ;;  %v554_v14 = vor.u32 1.1754944e-38, %v553_v5  ;;  %v550_v49 = vsel %vm3575_vm12, %v2458_v54, %v546_v17  ;;  %v3712_v5 = vld [vmem:[%s5085_s6 + $0x110] sm:$0xff]  ;;  %v5413_v19 = vld [vmem:[#allocation43_spill] sm:$0xff] }
  0xcf   :  { %vm552_vm13 = vcmp.eq.f32.partialorder %v551_v47, 8.507059e+37  ;;  %v577_v36 = vadd.f32 %v3582_v6, %v534_v35  ;;  %5408 = vst [vmem:[#allocation19_spill] sm:$0xff] %v3712_v5  ;;  %v3718_v17 = vld [vmem:[%s5085_s6 + $0xf0] sm:$0xff]  ;;  %v3751_v35 = vld [vmem:[%s5085_s6 + $0xc8] sm:$0xff] }
  0xd0   :  { %2459 = vtanh.f32 %v423_v42  ;;  %v2409_v63 = vmul.f32 -1.442695, %v557_v12  ;;  %v555_v28 = vsel %vm552_vm13, %v554_v14, %v550_v49  ;;  %5409 = vst [vmem:[#allocation7_spill] sm:$0xff] %v3718_v17  ;;  %v5410_v47 = vld [vmem:[#allocation41_spill] sm:$0xff]  ;;  %v3757_v14 = vld [vmem:[%s5085_s6 + $0xa8] sm:$0xff] }
  0xd1   :  { %v578_v54 = vmul.f32 %v577_v36, %v555_v28  ;;  %5417 = vst [vmem:[#allocation28_spill] sm:$0xff] %v3751_v35  ;;  %v3764_v49 = vld [vmem:[%s5085_s6 + $0xb0] sm:$0xff] }
  0xd2   :  { %2461 = vpow2.f32 %v2409_v63  ;;  %v5405_v63 = vld [vmem:[#allocation37_spill] sm:$0xff]  ;;  %5418 = vst [vmem:[#allocation10_spill] sm:$0xff] %v3757_v14 }
  0xd3   :  { %5420 = vst [vmem:[#allocation30_spill] sm:$0xff] %v3764_v49  ;;  %v3770_v36 = vld [vmem:[%s5085_s6 + $0x90] sm:$0xff] }
  0xd4   :  { %5421 = vst [vmem:[#allocation11_spill] sm:$0xff] %v3770_v36  ;;  %v5422_v28 = vld [vmem:[#allocation49_spill] sm:$0xff] }
  0xd6   :  { %v2460_v22 = vpop.eup %2459 }
  0xd7   :  { %v426_v42 = vmul.f32 %v2460_v22, %v425_v46  ;;  %v3725_v46 = vld [vmem:[%s5085_s6 + $0xf8] sm:$0xff] }
  0xd8   :  { %v2462_v0 = vpop.eup %2461  ;;  %5411 = vst [vmem:[#allocation22_spill] sm:$0xff] %v3725_v46  ;;  %v3731_v22 = vld [vmem:[%s5085_s6 + $0xd8] sm:$0xff] }
  0xd9   :  { %v561_v33 = vadd.f32 1.0, %v2462_v0  ;;  %v3586_v51 = vadd.f32 %v427_v11, %v426_v42  ;;  %5412 = vst [vmem:[#allocation8_spill] sm:$0xff] %v3731_v22  ;;  %v3738_v42 = vld [vmem:[%s5085_s6 + $0xe0] sm:$0xff]  ;;  %v5416_v0 = vld [vmem:[#allocation45_spill] sm:$0xff] }
  0xda   :  { %5414 = vst [vmem:[#allocation25_spill] sm:$0xff] %v3738_v42  ;;  %v3744_v11 = vld [vmem:[%s5085_s6 + $0xc0] sm:$0xff] }
  0xdb   :  { %2463 = vrcp.f32 %v561_v33  ;;  %607 = vmatmul.f32.vlgmr.msra.gmra.mxu0 %v3586_v51  ;;  %627 = vmatmul.f32.vlgmr.msra.gmra.mxu1 %v3586_v51  ;;  %vm567_vm15 = vweird.f32 %v561_v33  ;;  %5415 = vst [vmem:[#allocation9_spill] sm:$0xff] %v3744_v11 }
  0xdc   :  { %647 = vmatmul.f32.vlgmr.msrb.gmra.mxu2 %v3586_v51  ;;  %880 = vmatpush.msra.mxu0 %v3227_v8  ;;  %v272_v8 = vld [vmem:[#allocation3 + $0x20] sm:$0x3] }
  0xdd   :  { %962 = vmatpush.msra.mxu1 %v3013_v23  ;;  %982 = vmatpush.msrb.mxu2 %v5357_v57  ;;  %v579_v23 = vadd.f32 %v578_v54, %v272_v8  ;;  %v5398_v57 = vld [vmem:[#allocation51_spill] sm:$0xff]  ;;  %v3777_v54 = vld [vmem:[%s5085_s6 + $0x98] sm:$0xff] }
  0xde   :  { %881 = vmatpush.msra.mxu0 %v3242_v18  ;;  %5423 = vst [vmem:[#allocation32_spill] sm:$0xff] %v3777_v54  ;;  %v3790_v8 = vld [vmem:[%s5085_s6 + $0x80] sm:$0xff] }
  0xdf   :  { %963 = vmatpush.msra.mxu1 %v3028_v26  ;;  %983 = vmatpush.msrb.mxu2 %v5360_v1  ;;  %v573_v26 = vand.u32 2147483648, %v561_v33  ;;  %2465 = vtanh.f32 %v579_v23  ;;  %v3653_v1 = vld [vmem:[%s5085_s6 + $0x168] sm:$0xff]  ;;  %5426 = vst [vmem:[#allocation34_spill] sm:$0xff] %v3790_v8  ;;  %v3796_v23 = vld [vmem:[%s5085_s6 + $0x60] sm:$0xff] }
  0xe0   :  { %882 = vmatpush.msra.mxu0 %v3257_v40  ;;  %v5396_v40 = vld [vmem:[#allocation29_spill] sm:$0xff]  ;;  %5427 = vst [vmem:[#allocation13_spill] sm:$0xff] %v3796_v23 }
  0xe1   :  { %v2464_v12 = vpop.eup %2463  ;;  %964 = vmatpush.msra.mxu1 %v3043_v29  ;;  %984 = vmatpush.msrb.mxu2 %v5363_v4  ;;  %v571_v4 = vand.u32 2147483647, %v561_v33 }
  0xe2   :  { %v563_v16 = vmul.f32 %v2464_v12, %v561_v33  ;;  %883 = vmatpush.msra.mxu0 %v3272_v61  ;;  %vm568_vm14 = vweird.f32 %v2464_v12  ;;  %v574_v61 = vor.u32 1.1754944e-38, %v573_v26  ;;  %v5419_v33 = vld [vmem:[#allocation47_spill] sm:$0xff]  ;;  %v3808_v26 = vld [vmem:[%s5085_s6 + $0x48] sm:$0xff] }
  0xe3   :  { %965 = vmatpush.msra.mxu1 %v3066_v34  ;;  %985 = vmatpush.msrb.mxu2 %v5366_v3  ;;  %vm569_vm0 = vmor %vm567_vm15, %vm568_vm14  ;;  %vm572_vm1 = vcmp.eq.f32.partialorder %v571_v4, 8.507059e+37  ;;  %5429 = vst [vmem:[#allocation38_spill] sm:$0xff] %v3808_v26  ;;  %v3820_v4 = vld [vmem:[%s5085_s6 + $0x30] sm:$0xff] }
  0xe4   :  { %v564_v18 = vsub.f32 1.0, %v563_v16  ;;  %884 = vmatpush.msra.mxu0 %v3287_v30  ;;  %v5425_v16 = vld [vmem:[#allocation52_spill] sm:$0xff]  ;;  %5431 = vst [vmem:[#allocation42_spill] sm:$0xff] %v3820_v4 }
  0xe5   :  { %966 = vmatpush.msra.mxu1 %v3081_v37  ;;  %986 = vmatpush.msrb.mxu2 %v5369_v32  ;;  %v2466_v3 = vpop.eup %2465  ;;  %v5395_v32 = vld [vmem:[#allocation48_spill] sm:$0xff] }
  0xe6   :  { %v565_v29 = vmul.f32 %v2464_v12, %v564_v18  ;;  %885 = vmatpush.msra.mxu0 %v3301_v59  ;;  %v3802_v18 = vld [vmem:[%s5085_s6 + $0x68] sm:$0xff] }
  0xe7   :  { %967 = vmatpush.msra.mxu1 %v3101_v41  ;;  %987 = vmatpush.msrb.mxu2 %v5371_v15  ;;  %v3660_v15 = vld [vmem:[%s5085_s6 + $0x170] sm:$0xff]  ;;  %5428 = vst [vmem:[#allocation36_spill] sm:$0xff] %v3802_v18 }
  0xe8   :  { %v566_v34 = vadd.f32 %v2464_v12, %v565_v29  ;;  %886 = vmatpush.msra.mxu0 %v3314_v13  ;;  %5400 = vst [vmem:[#allocation14_spill] sm:$0xff] %v3660_v15  ;;  %v3814_v29 = vld [vmem:[%s5085_s6 + $0x50] sm:$0xff] }
  0xe9   :  { %968 = vmatpush.msra.mxu1 %v3119_v45  ;;  %988 = vmatpush.msrb.mxu2 %v5373_v7  ;;  %v3666_v7 = vld [vmem:[%s5085_s6 + $0x150] sm:$0xff]  ;;  %5430 = vst [vmem:[#allocation40_spill] sm:$0xff] %v3814_v29 }
  0xea   :  { %v570_v37 = vsel %vm569_vm0, %v2464_v12, %v566_v34  ;;  %887 = vmatpush.msra.mxu0 %v3327_v44  ;;  %v5397_v44 = vld [vmem:[#allocation27_spill] sm:$0xff]  ;;  %v3783_v12 = vld [vmem:[%s5085_s6 + $0x78] sm:$0xff] }
  0xeb   :  { %v575_v59 = vsel %vm572_vm1, %v574_v61, %v570_v37  ;;  %969 = vmatpush.msra.mxu1 %v3134_v48  ;;  %989 = vmatpush.msrb.mxu2 %v5375_v10  ;;  %v5386_v48 = vld [vmem:[#allocation18_spill] sm:$0xff]  ;;  %v5401_v10 = vld [vmem:[#allocation33_spill] sm:$0xff]  ;;  %5424 = vst [vmem:[#allocation12_spill] sm:$0xff] %v3783_v12  ;;  %v3838_v37 = vld [vmem:[%s5085_s6 + $0x20] sm:$0xff] }
  0xec   :  { %v581_v41 = vsub.f32 1.0, %v575_v59  ;;  %888 = vmatpush.msra.mxu0 %v3340_v20  ;;  %v583_v13 = vmul.f32 0.0, %v575_v59  ;;  %v5394_v20 = vld [vmem:[#allocation54_spill] sm:$0xff]  ;;  %5434 = vst [vmem:[#allocation18_spill] sm:$0xff] %v3838_v37  ;;  %v3844_v59 = vld [vmem:[%s5085_s6] sm:$0xff] }
  0xed   :  { %970 = vmatpush.msra.mxu1 %v3156_v52  ;;  %990 = vmatpush.msrb.mxu2 %v5377_v24  ;;  %v5387_v52 = vld [vmem:[#allocation50_spill] sm:$0xff] }
  0xee   :  { %v582_v45 = vmul.f32 %v2466_v3, %v581_v41  ;;  %889 = vmatpush.msra.mxu0 %v3354_v9  ;;  %v5385_v9 = vld [vmem:[#allocation20_spill] sm:$0xff]  ;;  %v3673_v24 = vld [vmem:[%s5085_s6 + $0x158] sm:$0xff]  ;;  %5435 = vst [vmem:[#allocation50_spill] sm:$0xff] %v3844_v59 }
  0xef   :  { %971 = vmatpush.msra.mxu1 %v3173_v55  ;;  %991 = vmatpush.msrb.mxu2 %v5378_v27  ;;  %v5388_v55 = vld [vmem:[#allocation23_spill] sm:$0xff]  ;;  %5402 = vst [vmem:[#allocation15_spill] sm:$0xff] %v3673_v24  ;;  %v3679_v27 = vld [vmem:[%s5085_s6 + $0x138] sm:$0xff]  ;;  %v3850_v41 = vld [vmem:[%s5085_s6 + $0x8] sm:$0xff] }
  0xf0   :  { %v3622_v30 = vadd.f32 %v583_v13, %v582_v45  ;;  %890 = vmatpush.msra.mxu0 %v3366_v50  ;;  %v5399_v50 = vld [vmem:[#allocation31_spill] sm:$0xff]  ;;  %v3826_v34 = vld [vmem:[%s5085_s6 + $0x38] sm:$0xff]  ;;  %5436 = vst [vmem:[#allocation23_spill] sm:$0xff] %v3850_v41 }
  0xf1   :  { %972 = vmatpush.msra.mxu1 %v3186_v58  ;;  %992 = vmatpush.msrb.mxu2 %v5379_v31  ;;  %v5389_v58 = vld [vmem:[#allocation21_spill] sm:$0xff]  ;;  %v5403_v31 = vld [vmem:[#allocation35_spill] sm:$0xff]  ;;  %5432 = vst [vmem:[#allocation44_spill] sm:$0xff] %v3826_v34  ;;  %v3832_v61 = vld [vmem:[%s5085_s6 + $0x18] sm:$0xff] }
  0xf2   :  { %727 = vmatmul.f32.vlgmr.msra.gmra.mxu3 %v3622_v30  ;;  %747 = vmatmul.f32.vlgmr.msrb.gmra.mxu0 %v3622_v30  ;;  %5433 = vst [vmem:[#allocation20_spill] sm:$0xff] %v3832_v61 }
  0xf3   :  { %767 = vmatmul.f32.vlgmr.msrb.gmra.mxu1 %v3622_v30  ;;  %891 = vmatpush.msra.mxu0 %v3379_v56  ;;  %v5390_v56 = vld [vmem:[#allocation53_spill] sm:$0xff] }
  0xf4   :  { %1002 = vmatpush.msra.mxu3 %v3197_v60  ;;  %973 = vmatpush.msra.mxu1 %v3200_v62  ;;  %v5391_v60 = vld [vmem:[#allocation46_spill] sm:$0xff] }
  0xf5   :  { %892 = vmatpush.msra.mxu0 %v3392_v53  ;;  %993 = vmatpush.msrb.mxu2 %v5380_v25  ;;  %v5392_v62 = vld [vmem:[#allocation26_spill] sm:$0xff]  ;;  %v5393_v53 = vld [vmem:[#allocation24_spill] sm:$0xff]  ;;  %v3686_v25 = vld [vmem:[%s5085_s6 + $0x140] sm:$0xff] }
  0xf6   :  { %1003 = vmatpush.msra.mxu3 %v5385_v9  ;;  %974 = vmatpush.msra.mxu1 %v5386_v48  ;;  %5404 = vst [vmem:[#allocation16_spill] sm:$0xff] %v3686_v25  ;;  %v585_v48 = vld [vmem:[#allocation2 + $0x28] sm:$0xc] }
  0xf7   :  { %893 = vmatpush.msra.mxu0 %v5387_v52  ;;  %994 = vmatpush.msrb.mxu2 %v5381_v38  ;;  %v3692_v38 = vld [vmem:[%s5085_s6 + $0x120] sm:$0xff]  ;;  %v586_v52 = vld [vmem:[#allocation2 + $0x10] sm:$0xc] }
  0xf8   :  { %1004 = vmatpush.msra.mxu3 %v5388_v55  ;;  %975 = vmatpush.msra.mxu1 %v5389_v58 }
  0xf9   :  { %894 = vmatpush.msra.mxu0 %v5390_v56  ;;  %995 = vmatpush.msrb.mxu2 %v5391_v60 }
  0xfa   :  { %1005 = vmatpush.msra.mxu3 %v5392_v62  ;;  %976 = vmatpush.msra.mxu1 %v5393_v53 }
  0xfb   :  { %895 = vmatpush.msra.mxu0 %v5394_v20  ;;  %996 = vmatpush.msrb.mxu2 %v5395_v32 }
  0xfc   :  { %1006 = vmatpush.msra.mxu3 %v5396_v40  ;;  %977 = vmatpush.msra.mxu1 %v5397_v44 }
  0xfd   :  { %997 = vmatpush.msrb.mxu2 %v5398_v57  ;;  %1090 = vmatpush.msrb.mxu0 %v3653_v1 }
  0xfe   :  { %1007 = vmatpush.msra.mxu3 %v5399_v50  ;;  %1110 = vmatpush.msrb.mxu1 %v3660_v15 }
  0xff   :  { %1091 = vmatpush.msrb.mxu0 %v3666_v7 }
 0x100   :  { %1008 = vmatpush.msra.mxu3 %v5401_v10  ;;  %1111 = vmatpush.msrb.mxu1 %v3673_v24 }
 0x101   :  { %1092 = vmatpush.msrb.mxu0 %v3679_v27 }
 0x102   :  { %1009 = vmatpush.msra.mxu3 %v5403_v31  ;;  %1112 = vmatpush.msrb.mxu1 %v3686_v25 }
 0x103   :  { %1093 = vmatpush.msrb.mxu0 %v3692_v38 }
 0x104   :  { %1010 = vmatpush.msra.mxu3 %v5405_v63  ;;  %1113 = vmatpush.msrb.mxu1 %v3699_v21 }
 0x105   :  { %1094 = vmatpush.msrb.mxu0 %v3705_v43 }
 0x106   :  { %1011 = vmatpush.msra.mxu3 %v5407_v2  ;;  %1114 = vmatpush.msrb.mxu1 %v3712_v5 }
 0x107   :  { %1095 = vmatpush.msrb.mxu0 %v3718_v17 }
 0x108   :  { %1012 = vmatpush.msra.mxu3 %v5410_v47  ;;  %1115 = vmatpush.msrb.mxu1 %v3725_v46  ;;  %v589_v47 = vld [vmem:[#allocation3 + $0x8] sm:$0xc] }
 0x109   :  { %1096 = vmatpush.msrb.mxu0 %v3731_v22 }
 0x10a   :  { %1013 = vmatpush.msra.mxu3 %v5413_v19  ;;  %1116 = vmatpush.msrb.mxu1 %v3738_v42 }
 0x10b   :  { %1097 = vmatpush.msrb.mxu0 %v3744_v11 }
 0x10c   :  { %1014 = vmatpush.msra.mxu3 %v5416_v0  ;;  %1117 = vmatpush.msrb.mxu1 %v3751_v35 }
 0x10d   :  { %1098 = vmatpush.msrb.mxu0 %v3757_v14 }
 0x10e   :  { %1015 = vmatpush.msra.mxu3 %v5419_v33  ;;  %1118 = vmatpush.msrb.mxu1 %v3764_v49 }
 0x10f   :  { %1099 = vmatpush.msrb.mxu0 %v3770_v36 }
 0x110   :  { %1016 = vmatpush.msra.mxu3 %v5422_v28  ;;  %1119 = vmatpush.msrb.mxu1 %v3777_v54 }
 0x111   :  { %1100 = vmatpush.msrb.mxu0 %v3783_v12 }
 0x112   :  { %1017 = vmatpush.msra.mxu3 %v5425_v16  ;;  %1120 = vmatpush.msrb.mxu1 %v3790_v8 }
 0x113   :  { %1101 = vmatpush.msrb.mxu0 %v3796_v23 }
 0x114   :  { %1121 = vmatpush.msrb.mxu1 %v3802_v18 }
 0x115   :  { %1102 = vmatpush.msrb.mxu0 %v3808_v26 }
 0x116   :  { %1122 = vmatpush.msrb.mxu1 %v3814_v29 }
 0x117   :  { %1103 = vmatpush.msrb.mxu0 %v3820_v4 }
 0x118   :  { %1123 = vmatpush.msrb.mxu1 %v3826_v34 }
 0x119   :  { %1104 = vmatpush.msrb.mxu0 %v3832_v61 }
 0x11a   :  { %1124 = vmatpush.msrb.mxu1 %v3838_v37 }
 0x11b   :  { %1105 = vmatpush.msrb.mxu0 %v3844_v59 }
 0x11c   :  { %1125 = vmatpush.msrb.mxu1 %v3850_v41 }
 0x158   :  { %v608_v3 = vpop.f32.mrf.mxu0  ;;  %v628_v45 = vpop.f32.mrf.mxu1 }
 0x159   :  { %v652_v13 = vrot.slane %v608_v3, 6  ;;  %v675_v9 = vrot.slane %v628_v45, 6 }
 0x15b   :  { %v654_v55 = vadd.f32 %v652_v13, %v585_v48  ;;  %v677_v58 = vadd.f32 %v675_v9, %v586_v52 }
 0x15d   :  { %v2410_v56 = vmul.f32 -1.442695, %v654_v55  ;;  %v2411_v60 = vmul.f32 -1.442695, %v677_v58 }
 0x15f   :  { %2467 = vpow2.f32 %v2410_v56  ;;  %v648_v31 = vpop.f32.mrf.mxu2 }
 0x160   :  { %2469 = vpow2.f32 %v2411_v60  ;;  %v697_v3 = vadd.f32 %v3568_v39, %v648_v31  ;;  %v588_v60 = vld [vmem:[#allocation3] sm:$0xc]  ;;  %v587_v31 = vld [vmem:[#allocation2 + $0x8] sm:$0xc] }
 0x162   :  { %v699_v56 = vrot.slane %v697_v3, 6  ;;  %v707_v3 = vrot.slane %v3586_v51, 6  ;;  %v3868_v51 = vld [vmem:[%s5085_s6 + $0x178] sm:$0xff] }
 0x165   :  { %v2468_v62 = vpop.eup %2467 }
 0x166   :  { %v2470_v53 = vpop.eup %2469  ;;  %v658_v20 = vadd.f32 1.0, %v2468_v62 }
 0x167   :  { %v681_v32 = vadd.f32 1.0, %v2470_v53 }
 0x168   :  { %2471 = vrcp.f32 %v658_v20  ;;  %v670_v0 = vand.u32 2147483648, %v658_v20  ;;  %v668_v16 = vand.u32 2147483647, %v658_v20  ;;  %vm664_vm3 = vweird.f32 %v658_v20 }
 0x169   :  { %2473 = vrcp.f32 %v681_v32  ;;  %vm687_vm7 = vweird.f32 %v681_v32 }
 0x16a   :  { %v671_v52 = vor.u32 1.1754944e-38, %v670_v0  ;;  %vm669_vm5 = vcmp.eq.f32.partialorder %v668_v16, 8.507059e+37 }
 0x16e   :  { %v2472_v40 = vpop.eup %2471 }
 0x16f   :  { %v2474_v44 = vpop.eup %2473  ;;  %v660_v57 = vmul.f32 %v2472_v40, %v658_v20  ;;  %v748_v50 = vpop.f32.mrf.mxu0  ;;  %vm665_vm2 = vweird.f32 %v2472_v40 }
 0x170   :  { %v683_v10 = vmul.f32 %v2474_v44, %v681_v32  ;;  %v795_v63 = vrot.slane %v748_v50, 6  ;;  %vm666_vm4 = vmor %vm664_vm3, %vm665_vm2  ;;  %vm688_vm6 = vweird.f32 %v2474_v44 }
 0x171   :  { %v661_v2 = vsub.f32 1.0, %v660_v57  ;;  %vm689_vm8 = vmor %vm687_vm7, %vm688_vm6 }
 0x172   :  { %v684_v19 = vsub.f32 1.0, %v683_v10  ;;  %v797_v33 = vadd.f32 %v795_v63, %v589_v47  ;;  %v693_v10 = vand.u32 2147483648, %v681_v32 }
 0x173   :  { %v662_v28 = vmul.f32 %v2472_v40, %v661_v2  ;;  %v691_v2 = vand.u32 2147483647, %v681_v32 }
 0x174   :  { %v685_v45 = vmul.f32 %v2474_v44, %v684_v19  ;;  %v2413_v13 = vmul.f32 -1.442695, %v797_v33  ;;  %v694_v0 = vor.u32 1.1754944e-38, %v693_v10 }
 0x175   :  { %v663_v9 = vadd.f32 %v2472_v40, %v662_v28  ;;  %v728_v48 = vpop.f32.mrf.mxu3  ;;  %vm692_vm9 = vcmp.eq.f32.partialorder %v691_v2, 8.507059e+37 }
 0x176   :  { %2475 = vpow2.f32 %v2413_v13  ;;  %v772_v55 = vrot.slane %v728_v48, 6  ;;  %v686_v57 = vadd.f32 %v2474_v44, %v685_v45 }
 0x177   :  { %v667_v58 = vsel %vm666_vm4, %v2472_v40, %v663_v9 }
 0x178   :  { %v672_v62 = vsel %vm669_vm5, %v671_v52, %v667_v58  ;;  %v774_v53 = vadd.f32 %v772_v55, %v588_v60  ;;  %v690_v19 = vsel %vm689_vm8, %v2474_v44, %v686_v57  ;;  %v3871_v60 = vld [vmem:[#allocation4 + $0x168] sm:$0xff]  ;;  %v768_v57 = vpop.f32.mrf.mxu1 }
 0x179   :  { %v701_v50 = vmul.f32 %v699_v56, %v672_v62  ;;  %v695_v33 = vsel %vm692_vm9, %v694_v0, %v690_v19  ;;  %v3874_v62 = vld [vmem:[#allocation4 + $0x170] sm:$0xff] }
 0x17a   :  { %v2412_v63 = vmul.f32 -1.442695, %v774_v53  ;;  %v704_v16 = vsub.f32 1.0, %v695_v33  ;;  %v709_v9 = vmul.f32 %v707_v3, %v695_v33  ;;  %v3896_v33 = vld [vmem:[#allocation4 + $0x138] sm:$0xff]  ;;  %v3906_v3 = vld [vmem:[%s5085_s6 + $0x130] sm:$0xff] }
 0x17b   :  { %v702_v20 = vadd.f32 %v701_v50, %v587_v31  ;;  %v3880_v50 = vld [vmem:[%s5085_s6 + $0x160] sm:$0xff]  ;;  %v3883_v31 = vld [vmem:[#allocation4 + $0x150] sm:$0xff] }
 0x17c   :  { %v2476_v47 = vpop.eup %2475  ;;  %2477 = vpow2.f32 %v2412_v63  ;;  %v3886_v63 = vld [vmem:[#allocation4 + $0x158] sm:$0xff] }
 0x17d   :  { %2479 = vtanh.f32 %v702_v20  ;;  %v3854_v40 = vadd.f32 1.0, %v2476_v47  ;;  %v3892_v20 = vld [vmem:[%s5085_s6 + $0x148] sm:$0xff]  ;;  %v817_v47 = vadd.f32 %v3582_v6, %v768_v57  ;;  %v3925_v57 = vld [vmem:[#allocation4 + $0x110] sm:$0xff] }
 0x17f   :  { %2481 = vrcp.f32 %v3854_v40  ;;  %vm807_vm15 = vweird.f32 %v3854_v40 }
 0x182   :  { %v2478_v28 = vpop.eup %2477 }
 0x183   :  { %v2480_v45 = vpop.eup %2479  ;;  %v778_v13 = vadd.f32 1.0, %v2478_v28  ;;  %v3899_v28 = vld [vmem:[#allocation4 + $0x140] sm:$0xff] }
 0x184   :  { %v705_v32 = vmul.f32 %v2480_v45, %v704_v16 }
 0x185   :  { %2483 = vrcp.f32 %v778_v13  ;;  %v3858_v48 = vpop.eup %2481  ;;  %v790_v2 = vand.u32 2147483648, %v778_v13  ;;  %v788_v0 = vand.u32 2147483647, %v778_v13  ;;  %vm784_vm11 = vweird.f32 %v778_v13 }
 0x186   :  { %v3860_v44 = vadd.f32 %v709_v9, %v705_v32  ;;  %v803_v55 = vmul.f32 %v3858_v48, %v3854_v40  ;;  %v3909_v32 = vld [vmem:[#allocation4 + $0x120] sm:$0xff]  ;;  %v3912_v9 = vld [vmem:[#allocation4 + $0x128] sm:$0xff]  ;;  %vm808_vm14 = vweird.f32 %v3858_v48 }
 0x187   :  { %vm789_vm13 = vcmp.eq.f32.partialorder %v788_v0, 8.507059e+37  ;;  %v3937_v0 = vld [vmem:[#allocation4 + $0xf0] sm:$0xff]  ;;  %vm3951_vm0 = vmor %vm807_vm15, %vm808_vm14 }
 0x188   :  { %v838_v52 = vrot.slane %v3860_v44, 2  ;;  %v804_v53 = vsub.f32 1.0, %v803_v55  ;;  %v3919_v55 = vld [vmem:[%s5085_s6 + $0x118] sm:$0xff]  ;;  %5437 = vst [vmem:[#allocation21_spill] sm:$0xff] %v3937_v0 }
 0x18a   :  { %856 = vmatmul.f32.vlgmr.msra.gmra.mxu2 %v838_v52  ;;  %876 = vmatmul.f32.vlgmr.msrb.gmra.mxu3 %v838_v52  ;;  %v805_v16 = vmul.f32 %v3858_v48, %v804_v53  ;;  %v3922_v53 = vld [vmem:[#allocation4 + $0x108] sm:$0xff] }
 0x18b   :  { %v2484_v58 = vpop.eup %2483  ;;  %896 = vmatmul.f32.vlgmr.msra.gmra.mxu0 %v838_v52  ;;  %1130 = vmatpush.msra.mxu2 %v3868_v51  ;;  %v791_v52 = vor.u32 1.1754944e-38, %v790_v2 }
 0x18c   :  { %v780_v56 = vmul.f32 %v2484_v58, %v778_v13  ;;  %1212 = vmatpush.msrb.mxu3 %v3871_v60  ;;  %1232 = vmatpush.msra.mxu0 %v3874_v62  ;;  %vm785_vm10 = vweird.f32 %v2484_v58  ;;  %v806_v2 = vadd.f32 %v3858_v48, %v805_v16  ;;  %v590_v16 = vld [vmem:[#allocation3 + $0x20] sm:$0xc] }
 0x18d   :  { %1131 = vmatpush.msra.mxu2 %v3880_v50  ;;  %vm786_vm12 = vmor %vm784_vm11, %vm785_vm10 }
 0x18e   :  { %v781_v10 = vsub.f32 1.0, %v780_v56  ;;  %1213 = vmatpush.msrb.mxu3 %v3883_v31  ;;  %1233 = vmatpush.msra.mxu0 %v3886_v63  ;;  %v819_v56 = vrot.slane %v817_v47, 6 }
 0x18f   :  { %1132 = vmatpush.msra.mxu2 %v3892_v20 }
 0x190   :  { %v782_v19 = vmul.f32 %v2484_v58, %v781_v10  ;;  %1214 = vmatpush.msrb.mxu3 %v3896_v33  ;;  %1234 = vmatpush.msra.mxu0 %v3899_v28 }
 0x191   :  { %1133 = vmatpush.msra.mxu2 %v3906_v3 }
 0x192   :  { %v783_v45 = vadd.f32 %v2484_v58, %v782_v19  ;;  %1215 = vmatpush.msrb.mxu3 %v3909_v32  ;;  %1235 = vmatpush.msra.mxu0 %v3912_v9  ;;  %v3933_v19 = vld [vmem:[%s5085_s6 + $0x100] sm:$0xff] }
 0x193   :  { %1134 = vmatpush.msra.mxu2 %v3919_v55 }
 0x194   :  { %v787_v13 = vsel %vm786_vm12, %v2484_v58, %v783_v45  ;;  %1216 = vmatpush.msrb.mxu3 %v3922_v53  ;;  %1236 = vmatpush.msra.mxu0 %v3925_v57  ;;  %v813_v58 = vand.u32 2147483648, %v3854_v40  ;;  %v3940_v45 = vld [vmem:[#allocation4 + $0xf8] sm:$0xff] }
 0x195   :  { %v792_v10 = vsel %vm789_vm13, %v791_v52, %v787_v13  ;;  %1135 = vmatpush.msra.mxu2 %v3933_v19  ;;  %5438 = vst [vmem:[#allocation53_spill] sm:$0xff] %v3940_v45  ;;  %v811_v52 = vand.u32 2147483647, %v3854_v40  ;;  %v3948_v13 = vld [vmem:[%s5085_s6 + $0xe8] sm:$0xff]  ;;  %v810_v40 = vsel %vm3951_vm0, %v3858_v48, %v806_v2  ;;  %v3979_v48 = vld [vmem:[%s5085_s6 + $0xb8] sm:$0xff] }
 0x196   :  { %v821_v47 = vmul.f32 %v819_v56, %v792_v10  ;;  %1217 = vmatpush.msrb.mxu3 %v3937_v0  ;;  %1237 = vmatpush.msra.mxu0 %v3940_v45  ;;  %5439 = vst [vmem:[#allocation46_spill] sm:$0xff] %v3948_v13  ;;  %v3955_v0 = vld [vmem:[#allocation4 + $0xd8] sm:$0xff]  ;;  %v3958_v45 = vld [vmem:[#allocation4 + $0xe0] sm:$0xff]  ;;  %v3982_v56 = vld [vmem:[#allocation4 + $0xa8] sm:$0xff] }
 0x197   :  { %1136 = vmatpush.msra.mxu2 %v3948_v13  ;;  %5442 = vst [vmem:[#allocation26_spill] sm:$0xff] %v3955_v0  ;;  %v3967_v13 = vld [vmem:[%s5085_s6 + $0xd0] sm:$0xff]  ;;  %vm812_vm1 = vcmp.eq.f32.partialorder %v811_v52, 8.507059e+37  ;;  %v3991_v52 = vld [vmem:[%s5085_s6 + $0xa0] sm:$0xff] }
 0x198   :  { %v822_v10 = vadd.f32 %v821_v47, %v590_v16  ;;  %1218 = vmatpush.msrb.mxu3 %v3955_v0  ;;  %1238 = vmatpush.msra.mxu0 %v3958_v45  ;;  %v814_v47 = vor.u32 1.1754944e-38, %v813_v58  ;;  %v3970_v16 = vld [vmem:[#allocation4 + $0xc0] sm:$0xff]  ;;  %v3973_v0 = vld [vmem:[#allocation4 + $0xc8] sm:$0xff]  ;;  %5445 = vst [vmem:[#allocation48_spill] sm:$0xff] %v3979_v48  ;;  %v3985_v58 = vld [vmem:[#allocation4 + $0xb0] sm:$0xff] }
 0x199   :  { %1137 = vmatpush.msra.mxu2 %v3967_v13  ;;  %5443 = vst [vmem:[#allocation24_spill] sm:$0xff] %v3970_v16 }
 0x19a   :  { %2485 = vtanh.f32 %v822_v10  ;;  %1219 = vmatpush.msrb.mxu3 %v3970_v16  ;;  %5444 = vst [vmem:[#allocation54_spill] sm:$0xff] %v3973_v0  ;;  %1239 = vmatpush.msra.mxu0 %v3973_v0  ;;  %v815_v2 = vsel %vm812_vm1, %v814_v47, %v810_v40  ;;  %v3994_v10 = vld [vmem:[#allocation4 + $0x90] sm:$0xff]  ;;  %v3997_v40 = vld [vmem:[#allocation4 + $0x98] sm:$0xff]  ;;  %v4019_v16 = vld [vmem:[#allocation4 + $0x60] sm:$0xff] }
 0x19b   :  { %1138 = vmatpush.msra.mxu2 %v3979_v48  ;;  %5446 = vst [vmem:[#allocation29_spill] sm:$0xff] %v3982_v56  ;;  %v824_v47 = vsub.f32 1.0, %v815_v2 }
 0x19c   :  { %1220 = vmatpush.msrb.mxu3 %v3982_v56  ;;  %5447 = vst [vmem:[#allocation27_spill] sm:$0xff] %v3985_v58  ;;  %1240 = vmatpush.msra.mxu0 %v3985_v58  ;;  %v827_v56 = vrot.slane %v3622_v30, 6  ;;  %v4004_v58 = vld [vmem:[%s5085_s6 + $0x88] sm:$0xff]  ;;  %v4016_v30 = vld [vmem:[%s5085_s6 + $0x70] sm:$0xff] }
 0x19d   :  { %5448 = vst [vmem:[#allocation51_spill] sm:$0xff] %v3991_v52  ;;  %1139 = vmatpush.msra.mxu2 %v3991_v52  ;;  %v4007_v52 = vld [vmem:[#allocation4 + $0x78] sm:$0xff] }
 0x19e   :  { %5449 = vst [vmem:[#allocation31_spill] sm:$0xff] %v3994_v10  ;;  %1221 = vmatpush.msrb.mxu3 %v3994_v10  ;;  %1241 = vmatpush.msra.mxu0 %v3997_v40  ;;  %v4010_v10 = vld [vmem:[#allocation4 + $0x80] sm:$0xff]  ;;  %v829_v0 = vmul.f32 %v827_v56, %v815_v2  ;;  %v4033_v2 = vld [vmem:[#allocation4 + $0x48] sm:$0xff]  ;;  %v4036_v56 = vld [vmem:[#allocation4 + $0x50] sm:$0xff] }
 0x19f   :  { %5450 = vst [vmem:[#allocation33_spill] sm:$0xff] %v3997_v40  ;;  %1140 = vmatpush.msra.mxu2 %v4004_v58 }
 0x1a0   :  { %5451 = vst [vmem:[#allocation35_spill] sm:$0xff] %v4004_v58  ;;  %v2486_v48 = vpop.eup %2485  ;;  %1222 = vmatpush.msrb.mxu3 %v4007_v52  ;;  %1242 = vmatpush.msra.mxu0 %v4010_v10  ;;  %v4022_v58 = vld [vmem:[#allocation4 + $0x68] sm:$0xff] }
 0x1a1   :  { %5452 = vst [vmem:[#allocation37_spill] sm:$0xff] %v4007_v52  ;;  %v825_v40 = vmul.f32 %v2486_v48, %v824_v47  ;;  %1141 = vmatpush.msra.mxu2 %v4016_v30  ;;  %v4030_v48 = vld [vmem:[%s5085_s6 + $0x58] sm:$0xff] }
 0x1a2   :  { %1223 = vmatpush.msrb.mxu3 %v4019_v16  ;;  %5453 = vst [vmem:[#allocation39_spill] sm:$0xff] %v4022_v58  ;;  %1243 = vmatpush.msra.mxu0 %v4022_v58  ;;  %v4049_v58 = vld [vmem:[#allocation4 + $0x38] sm:$0xff] }
 0x1a3   :  { %v4025_v52 = vadd.f32 %v829_v0, %v825_v40  ;;  %5454 = vst [vmem:[#allocation41_spill] sm:$0xff] %v4030_v48  ;;  %1142 = vmatpush.msra.mxu2 %v4030_v48  ;;  %v4043_v0 = vld [vmem:[%s5085_s6 + $0x40] sm:$0xff]  ;;  %v4046_v40 = vld [vmem:[#allocation4 + $0x30] sm:$0xff] }
 0x1a4   :  { %5455 = vst [vmem:[#allocation43_spill] sm:$0xff] %v4033_v2  ;;  %1224 = vmatpush.msrb.mxu3 %v4033_v2  ;;  %1244 = vmatpush.msra.mxu0 %v4036_v56  ;;  %v4058_v2 = vld [vmem:[%s5085_s6 + $0x28] sm:$0xff] }
 0x1a5   :  { %5456 = vst [vmem:[#allocation45_spill] sm:$0xff] %v4036_v56  ;;  %v960_v47 = vrot.slane %v4025_v52, 2  ;;  %1143 = vmatpush.msra.mxu2 %v4043_v0  ;;  %v4052_v56 = vld [vmem:[#allocation4 + $0x178] sm:$0xff] }
 0x1a6   :  { %5457 = vst [vmem:[#allocation47_spill] sm:$0xff] %v4043_v0  ;;  %1225 = vmatpush.msrb.mxu3 %v4046_v40  ;;  %1245 = vmatpush.msra.mxu0 %v4049_v58  ;;  %v4061_v0 = vld [vmem:[#allocation4 + $0x18] sm:$0xff] }
 0x1a7   :  { %5458 = vst [vmem:[#allocation49_spill] sm:$0xff] %v4046_v40  ;;  %978 = vmatmul.f32.vlgmr.msra.gmra.mxu1 %v960_v47  ;;  %998 = vmatmul.f32.vlgmr.msrb.gmra.mxu2 %v960_v47  ;;  %v4064_v40 = vld [vmem:[#allocation4 + $0x160] sm:$0xff] }
 0x1a8   :  { %5459 = vst [vmem:[#allocation52_spill] sm:$0xff] %v4049_v58  ;;  %1018 = vmatmul.f32.vlgmr.msra.gmra.mxu3 %v960_v47  ;;  %1252 = vmatpush.msra.mxu1 %v4052_v56  ;;  %v4067_v47 = vld [vmem:[#allocation4 + $0x20] sm:$0xff]  ;;  %v4073_v58 = vld [vmem:[%s5085_s6 + $0x10] sm:$0xff] }
 0x1a9   :  { %5460 = vst [vmem:[#allocation55_spill] sm:$0xff] %v4052_v56  ;;  %1144 = vmatpush.msra.mxu2 %v4058_v2  ;;  %1226 = vmatpush.msrb.mxu3 %v4061_v0 }
 0x1aa   :  { %5461 = vst [vmem:[#allocation56_spill] sm:$0xff] %v4058_v2  ;;  %1253 = vmatpush.msra.mxu1 %v4064_v40  ;;  %1246 = vmatpush.msra.mxu0 %v4067_v47  ;;  %v4076_v2 = vld [vmem:[#allocation4] sm:$0xff] }
 0x1ab   :  { %5462 = vst [vmem:[#allocation57_spill] sm:$0xff] %v4061_v0  ;;  %1145 = vmatpush.msra.mxu2 %v4073_v58  ;;  %1227 = vmatpush.msrb.mxu3 %v4076_v2  ;;  %v4079_v0 = vld [vmem:[#allocation4 + $0x148] sm:$0xff] }
 0x1ac   :  { %5463 = vst [vmem:[#allocation58_spill] sm:$0xff] %v4064_v40  ;;  %1254 = vmatpush.msra.mxu1 %v4079_v0  ;;  %v4082_v40 = vld [vmem:[#allocation4 + $0x8] sm:$0xff] }
 0x1ad   :  { %5464 = vst [vmem:[#allocation59_spill] sm:$0xff] %v4067_v47  ;;  %1247 = vmatpush.msra.mxu0 %v4082_v40  ;;  %1340 = vmatpush.msrb.mxu2 %v3653_v1  ;;  %v4087_v47 = vld [vmem:[#allocation4 + $0x130] sm:$0xff] }
 0x1ae   :  { %5465 = vst [vmem:[#allocation60_spill] sm:$0xff] %v4073_v58  ;;  %1360 = vmatpush.msra.mxu3 %v3660_v15  ;;  %1255 = vmatpush.msra.mxu1 %v4087_v47  ;;  %v4102_v15 = vld [vmem:[#allocation4 + $0xe8] sm:$0xff] }
 0x1af   :  { %5466 = vst [vmem:[#allocation61_spill] sm:$0xff] %v4076_v2  ;;  %1341 = vmatpush.msrb.mxu2 %v3666_v7  ;;  %v4092_v2 = vld [vmem:[#allocation4 + $0x118] sm:$0xff] }
 0x1b0   :  { %5467 = vst [vmem:[#allocation62_spill] sm:$0xff] %v4079_v0  ;;  %1361 = vmatpush.msra.mxu3 %v3673_v24  ;;  %1256 = vmatpush.msra.mxu1 %v4092_v2  ;;  %v4107_v24 = vld [vmem:[#allocation4 + $0xd0] sm:$0xff] }
 0x1b1   :  { %5468 = vst [vmem:[#allocation63_spill] sm:$0xff] %v4082_v40  ;;  %1342 = vmatpush.msrb.mxu2 %v3679_v27  ;;  %v4097_v40 = vld [vmem:[#allocation4 + $0x100] sm:$0xff] }
 0x1b2   :  { %5469 = vst [vmem:[#allocation64_spill] sm:$0xff] %v4087_v47  ;;  %1362 = vmatpush.msra.mxu3 %v3686_v25  ;;  %1257 = vmatpush.msra.mxu1 %v4097_v40  ;;  %v4112_v25 = vld [vmem:[#allocation4 + $0xb8] sm:$0xff] }
 0x1b3   :  { %5470 = vst [vmem:[#allocation65_spill] sm:$0xff] %v4092_v2  ;;  %1343 = vmatpush.msrb.mxu2 %v3692_v38 }
 0x1b4   :  { %5471 = vst [vmem:[#allocation66_spill] sm:$0xff] %v4097_v40  ;;  %1363 = vmatpush.msra.mxu3 %v3699_v21  ;;  %1258 = vmatpush.msra.mxu1 %v4102_v15  ;;  %v4117_v21 = vld [vmem:[#allocation4 + $0xa0] sm:$0xff] }
 0x1b5   :  { %5472 = vst [vmem:[#allocation67_spill] sm:$0xff] %v4102_v15  ;;  %1344 = vmatpush.msrb.mxu2 %v3705_v43 }
 0x1b6   :  { %1364 = vmatpush.msra.mxu3 %v3712_v5  ;;  %5473 = vst [vmem:[#allocation68_spill] sm:$0xff] %v4107_v24  ;;  %1259 = vmatpush.msra.mxu1 %v4107_v24  ;;  %v4122_v5 = vld [vmem:[#allocation4 + $0x88] sm:$0xff] }
 0x1b7   :  { %1345 = vmatpush.msrb.mxu2 %v3718_v17  ;;  %5474 = vst [vmem:[#allocation69_spill] sm:$0xff] %v4112_v25 }
 0x1b8   :  { %1365 = vmatpush.msra.mxu3 %v3725_v46  ;;  %1260 = vmatpush.msra.mxu1 %v4112_v25  ;;  %5475 = vst [vmem:[#allocation70_spill] sm:$0xff] %v4117_v21  ;;  %v4127_v46 = vld [vmem:[#allocation4 + $0x70] sm:$0xff] }
 0x1b9   :  { %1346 = vmatpush.msrb.mxu2 %v3731_v22  ;;  %5476 = vst [vmem:[#allocation71_spill] sm:$0xff] %v4122_v5 }
 0x1ba   :  { %1366 = vmatpush.msra.mxu3 %v3738_v42  ;;  %1261 = vmatpush.msra.mxu1 %v4117_v21  ;;  %5477 = vst [vmem:[#allocation72_spill] sm:$0xff] %v4127_v46  ;;  %v4132_v42 = vld [vmem:[#allocation4 + $0x58] sm:$0xff] }
 0x1bb   :  { %1347 = vmatpush.msrb.mxu2 %v3744_v11  ;;  %5478 = vst [vmem:[#allocation73_spill] sm:$0xff] %v4132_v42  ;;  %v835_v21 = vld [vmem:[#allocation3 + $0x8] sm:$0x30] }
 0x1bc   :  { %1367 = vmatpush.msra.mxu3 %v3751_v35  ;;  %1262 = vmatpush.msra.mxu1 %v4122_v5  ;;  %v4137_v35 = vld [vmem:[#allocation4 + $0x40] sm:$0xff] }
 0x1bd   :  { %1348 = vmatpush.msrb.mxu2 %v3757_v14  ;;  %5479 = vst [vmem:[#allocation74_spill] sm:$0xff] %v4137_v35 }
 0x1be   :  { %1368 = vmatpush.msra.mxu3 %v3764_v49  ;;  %1263 = vmatpush.msra.mxu1 %v4127_v46  ;;  %v4142_v49 = vld [vmem:[#allocation4 + $0x28] sm:$0xff] }
 0x1bf   :  { %1349 = vmatpush.msrb.mxu2 %v3770_v36  ;;  %5480 = vst [vmem:[#allocation75_spill] sm:$0xff] %v4142_v49 }
 0x1c0   :  { %1369 = vmatpush.msra.mxu3 %v3777_v54  ;;  %1264 = vmatpush.msra.mxu1 %v4132_v42  ;;  %v4147_v54 = vld [vmem:[#allocation4 + $0x10] sm:$0xff] }
 0x1c1   :  { %1350 = vmatpush.msrb.mxu2 %v3783_v12  ;;  %5481 = vst [vmem:[#allocation76_spill] sm:$0xff] %v4147_v54  ;;  %v832_v12 = vld [vmem:[#allocation2 + $0x10] sm:$0x30] }
 0x1c2   :  { %1370 = vmatpush.msra.mxu3 %v3790_v8  ;;  %1265 = vmatpush.msra.mxu1 %v4137_v35  ;;  %v831_v8 = vld [vmem:[#allocation2 + $0x28] sm:$0x30] }
 0x1c3   :  { %1351 = vmatpush.msrb.mxu2 %v3796_v23 }
 0x1c4   :  { %1371 = vmatpush.msra.mxu3 %v3802_v18  ;;  %1266 = vmatpush.msra.mxu1 %v4142_v49 }
 0x1c5   :  { %1352 = vmatpush.msrb.mxu2 %v3808_v26 }
 0x1c6   :  { %1372 = vmatpush.msra.mxu3 %v3814_v29  ;;  %1267 = vmatpush.msra.mxu1 %v4147_v54 }
 0x1c7   :  { %1353 = vmatpush.msrb.mxu2 %v3820_v4 }
 0x1c8   :  { %1373 = vmatpush.msra.mxu3 %v3826_v34 }
 0x1c9   :  { %1354 = vmatpush.msrb.mxu2 %v3832_v61 }
 0x1ca   :  { %1374 = vmatpush.msra.mxu3 %v3838_v37 }
 0x1cb   :  { %1355 = vmatpush.msrb.mxu2 %v3844_v59 }
 0x1cc   :  { %1375 = vmatpush.msra.mxu3 %v3850_v41 }
 0x20d   :  { %v857_v18 = vpop.f32.mrf.mxu2  ;;  %v877_v26 = vpop.f32.mrf.mxu3 }
 0x20e   :  { %v901_v23 = vrot.slane %v857_v18, 4  ;;  %v924_v29 = vrot.slane %v877_v26, 4  ;;  %v897_v18 = vpop.f32.mrf.mxu0 }
 0x210   :  { %v903_v49 = vadd.f32 %v901_v23, %v831_v8  ;;  %v926_v54 = vadd.f32 %v924_v29, %v832_v12  ;;  %v834_v8 = vld [vmem:[#allocation3] sm:$0x30] }
 0x212   :  { %v2414_v36 = vmul.f32 -1.442695, %v903_v49  ;;  %v2415_v4 = vmul.f32 -1.442695, %v926_v54 }
 0x214   :  { %2487 = vpow2.f32 %v2414_v36  ;;  %v946_v36 = vadd.f32 %v3568_v39, %v897_v18 }
 0x215   :  { %2489 = vpow2.f32 %v2415_v4 }
 0x21a   :  { %v2488_v34 = vpop.eup %2487 }
 0x21b   :  { %v2490_v61 = vpop.eup %2489  ;;  %v907_v35 = vadd.f32 1.0, %v2488_v34 }
 0x21c   :  { %v930_v37 = vadd.f32 1.0, %v2490_v61 }
 0x21d   :  { %2491 = vrcp.f32 %v907_v35  ;;  %v919_v12 = vand.u32 2147483648, %v907_v35  ;;  %v917_v29 = vand.u32 2147483647, %v907_v35  ;;  %vm913_vm3 = vweird.f32 %v907_v35 }
 0x21e   :  { %2493 = vrcp.f32 %v930_v37  ;;  %v942_v39 = vand.u32 2147483648, %v930_v37  ;;  %vm936_vm7 = vweird.f32 %v930_v37 }
 0x21f   :  { %v920_v5 = vor.u32 1.1754944e-38, %v919_v12  ;;  %vm918_vm5 = vcmp.eq.f32.partialorder %v917_v29, 8.507059e+37 }
 0x223   :  { %v2492_v59 = vpop.eup %2491 }
 0x224   :  { %v2494_v41 = vpop.eup %2493  ;;  %v909_v14 = vmul.f32 %v2492_v59, %v907_v35  ;;  %v979_v42 = vpop.f32.mrf.mxu1  ;;  %vm914_vm2 = vweird.f32 %v2492_v59 }
 0x225   :  { %v932_v26 = vmul.f32 %v2494_v41, %v930_v37  ;;  %v1023_v11 = vrot.slane %v979_v42, 4  ;;  %vm915_vm4 = vmor %vm913_vm3, %vm914_vm2  ;;  %v948_v42 = vrot.slane %v946_v36, 4  ;;  %vm937_vm6 = vweird.f32 %v2494_v41 }
 0x226   :  { %v910_v46 = vsub.f32 1.0, %v909_v14  ;;  %vm938_vm8 = vmor %vm936_vm7, %vm937_vm6  ;;  %v943_v36 = vor.u32 1.1754944e-38, %v942_v39 }
 0x227   :  { %v933_v49 = vsub.f32 1.0, %v932_v26  ;;  %v1025_v54 = vadd.f32 %v1023_v11, %v834_v8 }
 0x228   :  { %v911_v23 = vmul.f32 %v2492_v59, %v910_v46 }
 0x229   :  { %v934_v4 = vmul.f32 %v2494_v41, %v933_v49  ;;  %v2416_v34 = vmul.f32 -1.442695, %v1025_v54  ;;  %v833_v49 = vld [vmem:[#allocation2 + $0x8] sm:$0x30]  ;;  %v940_v54 = vand.u32 2147483647, %v930_v37 }
 0x22a   :  { %v912_v61 = vadd.f32 %v2492_v59, %v911_v23  ;;  %v999_v22 = vpop.f32.mrf.mxu2 }
 0x22b   :  { %2495 = vpow2.f32 %v2416_v34  ;;  %v1046_v17 = vrot.slane %v999_v22, 4  ;;  %v935_v8 = vadd.f32 %v2494_v41, %v934_v4  ;;  %vm941_vm9 = vcmp.eq.f32.partialorder %v940_v54, 8.507059e+37 }
 0x22c   :  { %v916_v14 = vsel %vm915_vm4, %v2492_v59, %v912_v61 }
 0x22d   :  { %v921_v26 = vsel %vm918_vm5, %v920_v5, %v916_v14  ;;  %v1048_v11 = vadd.f32 %v1046_v17, %v835_v21  ;;  %v939_v12 = vsel %vm938_vm8, %v2494_v41, %v935_v8  ;;  %v955_v17 = vrot.slane %v3860_v44, 6  ;;  %v1019_v41 = vpop.f32.mrf.mxu3 }
 0x22e   :  { %v950_v46 = vmul.f32 %v948_v42, %v921_v26  ;;  %v944_v5 = vsel %vm941_vm9, %v943_v36, %v939_v12  ;;  %v1068_v44 = vadd.f32 %v3582_v6, %v1019_v41  ;;  %v5483_v41 = vld [vmem:[#allocation53_spill] sm:$0xff] }
 0x22f   :  { %v2417_v18 = vmul.f32 -1.442695, %v1048_v11  ;;  %v953_v59 = vsub.f32 1.0, %v944_v5  ;;  %v957_v61 = vmul.f32 %v955_v17, %v944_v5  ;;  %v836_v17 = vld [vmem:[#allocation3 + $0x20] sm:$0x30] }
 0x230   :  { %v951_v35 = vadd.f32 %v950_v46, %v833_v49  ;;  %v1070_v6 = vrot.slane %v1068_v44, 4  ;;  %v5486_v44 = vld [vmem:[#allocation24_spill] sm:$0xff] }
 0x231   :  { %v2496_v23 = vpop.eup %2495  ;;  %2497 = vpow2.f32 %v2417_v18 }
 0x232   :  { %v1029_v22 = vadd.f32 1.0, %v2496_v23  ;;  %2499 = vtanh.f32 %v951_v35 }
 0x234   :  { %2501 = vrcp.f32 %v1029_v22  ;;  %v1041_v8 = vand.u32 2147483648, %v1029_v22  ;;  %v1039_v46 = vand.u32 2147483647, %v1029_v22  ;;  %vm1035_vm11 = vweird.f32 %v1029_v22 }
 0x236   :  { %v1042_v35 = vor.u32 1.1754944e-38, %v1041_v8  ;;  %vm1040_vm13 = vcmp.eq.f32.partialorder %v1039_v46, 8.507059e+37  ;;  %v1077_v8 = vrot.slane %v4025_v52, 6  ;;  %v5492_v52 = vld [vmem:[#allocation31_spill] sm:$0xff] }
 0x237   :  { %v2498_v21 = vpop.eup %2497 }
 0x238   :  { %v2500_v29 = vpop.eup %2499  ;;  %v1052_v4 = vadd.f32 1.0, %v2498_v21 }
 0x239   :  { %v954_v34 = vmul.f32 %v2500_v29, %v953_v59 }
 0x23a   :  { %v2502_v37 = vpop.eup %2501  ;;  %2503 = vrcp.f32 %v1052_v4  ;;  %v1064_v21 = vand.u32 2147483648, %v1052_v4  ;;  %v1062_v59 = vand.u32 2147483647, %v1052_v4  ;;  %vm1058_vm15 = vweird.f32 %v1052_v4 }
 0x23b   :  { %v1031_v42 = vmul.f32 %v2502_v37, %v1029_v22  ;;  %v4158_v14 = vadd.f32 %v957_v61, %v954_v34  ;;  %vm1036_vm10 = vweird.f32 %v2502_v37 }
 0x23c   :  { %vm1037_vm12 = vmor %vm1035_vm11, %vm1036_vm10  ;;  %vm1063_vm1 = vcmp.eq.f32.partialorder %v1062_v59, 8.507059e+37  ;;  %v5496_v59 = vld [vmem:[#allocation39_spill] sm:$0xff] }
 0x23d   :  { %v1032_v26 = vsub.f32 1.0, %v1031_v42  ;;  %v1088_v11 = vrot.slane %v4158_v14, 4  ;;  %v5482_v42 = vld [vmem:[#allocation21_spill] sm:$0xff] }
 0x23f   :  { %v1033_v39 = vmul.f32 %v2502_v37, %v1032_v26  ;;  %1106 = vmatmul.f32.vlgmr.msrb.gmra.mxu0 %v1088_v11  ;;  %1126 = vmatmul.f32.vlgmr.msrb.gmra.mxu1 %v1088_v11  ;;  %v5484_v26 = vld [vmem:[#allocation46_spill] sm:$0xff] }
 0x240   :  { %v2504_v18 = vpop.eup %2503  ;;  %1146 = vmatmul.f32.vlgmr.msra.gmra.mxu2 %v1088_v11  ;;  %1380 = vmatpush.msrb.mxu0 %v3868_v51  ;;  %v5485_v11 = vld [vmem:[#allocation26_spill] sm:$0xff] }
 0x241   :  { %v1054_v49 = vmul.f32 %v2504_v18, %v1052_v4  ;;  %v1034_v54 = vadd.f32 %v2502_v37, %v1033_v39  ;;  %1451 = vmatpush.msrb.mxu1 %v3871_v60  ;;  %1471 = vmatpush.msra.mxu2 %v3874_v62  ;;  %vm1059_vm14 = vweird.f32 %v2504_v18 }
 0x242   :  { %1381 = vmatpush.msrb.mxu0 %v3880_v50  ;;  %vm1060_vm0 = vmor %vm1058_vm15, %vm1059_vm14 }
 0x243   :  { %v1055_v23 = vsub.f32 1.0, %v1054_v49  ;;  %v1038_v12 = vsel %vm1037_vm12, %v2502_v37, %v1034_v54  ;;  %1452 = vmatpush.msrb.mxu1 %v3883_v31  ;;  %1472 = vmatpush.msra.mxu2 %v3886_v63  ;;  %v1065_v37 = vor.u32 1.1754944e-38, %v1064_v21  ;;  %v5494_v21 = vld [vmem:[#allocation35_spill] sm:$0xff] }
 0x244   :  { %v1043_v36 = vsel %vm1040_vm13, %v1042_v35, %v1038_v12  ;;  %1382 = vmatpush.msrb.mxu0 %v3892_v20  ;;  %v5488_v35 = vld [vmem:[#allocation48_spill] sm:$0xff]  ;;  %v5490_v12 = vld [vmem:[#allocation27_spill] sm:$0xff] }
 0x245   :  { %v1056_v22 = vmul.f32 %v2504_v18, %v1055_v23  ;;  %v1072_v5 = vmul.f32 %v1070_v6, %v1043_v36  ;;  %1453 = vmatpush.msrb.mxu1 %v3896_v33  ;;  %1473 = vmatpush.msra.mxu2 %v3899_v28  ;;  %v5489_v23 = vld [vmem:[#allocation29_spill] sm:$0xff]  ;;  %v5491_v36 = vld [vmem:[#allocation51_spill] sm:$0xff] }
 0x246   :  { %1383 = vmatpush.msrb.mxu0 %v3906_v3 }
 0x247   :  { %v1073_v29 = vadd.f32 %v1072_v5, %v836_v17  ;;  %v1057_v34 = vadd.f32 %v2504_v18, %v1056_v22  ;;  %1454 = vmatpush.msrb.mxu1 %v3909_v32  ;;  %1474 = vmatpush.msra.mxu2 %v3912_v9  ;;  %v5493_v22 = vld [vmem:[#allocation33_spill] sm:$0xff] }
 0x248   :  { %1384 = vmatpush.msrb.mxu0 %v3919_v55  ;;  %v5495_v17 = vld [vmem:[#allocation37_spill] sm:$0xff] }
 0x249   :  { %2505 = vtanh.f32 %v1073_v29  ;;  %v1061_v61 = vsel %vm1060_vm0, %v2504_v18, %v1057_v34  ;;  %1455 = vmatpush.msrb.mxu1 %v3922_v53  ;;  %1475 = vmatpush.msra.mxu2 %v3925_v57  ;;  %v5487_v18 = vld [vmem:[#allocation54_spill] sm:$0xff]  ;;  %v5498_v34 = vld [vmem:[#allocation43_spill] sm:$0xff] }
 0x24a   :  { %1385 = vmatpush.msrb.mxu0 %v3933_v19  ;;  %v1066_v4 = vsel %vm1063_vm1, %v1065_v37, %v1061_v61  ;;  %v5497_v29 = vld [vmem:[#allocation58_spill] sm:$0xff]  ;;  %v5499_v61 = vld [vmem:[#allocation47_spill] sm:$0xff]  ;;  %v5500_v37 = vld [vmem:[#allocation45_spill] sm:$0xff] }
 0x24b   :  { %1456 = vmatpush.msrb.mxu1 %v5482_v42  ;;  %1476 = vmatpush.msra.mxu2 %v5483_v41  ;;  %v1075_v39 = vsub.f32 1.0, %v1066_v4  ;;  %v1079_v54 = vmul.f32 %v1077_v8, %v1066_v4  ;;  %v5501_v4 = vld [vmem:[#allocation49_spill] sm:$0xff]  ;;  %v5502_v8 = vld [vmem:[#allocation56_spill] sm:$0xff] }
 0x24c   :  { %1386 = vmatpush.msrb.mxu0 %v5484_v26 }
 0x24d   :  { %1457 = vmatpush.msrb.mxu1 %v5485_v11  ;;  %1477 = vmatpush.msra.mxu2 %v3958_v45 }
 0x24e   :  { %1387 = vmatpush.msrb.mxu0 %v3967_v13 }
 0x24f   :  { %v2506_v46 = vpop.eup %2505  ;;  %1458 = vmatpush.msrb.mxu1 %v5486_v44  ;;  %1478 = vmatpush.msra.mxu2 %v5487_v18 }
 0x250   :  { %v1076_v49 = vmul.f32 %v2506_v46, %v1075_v39  ;;  %1388 = vmatpush.msrb.mxu0 %v5488_v35  ;;  %v5503_v39 = vld [vmem:[#allocation52_spill] sm:$0xff]  ;;  %v5504_v46 = vld [vmem:[#allocation57_spill] sm:$0xff] }
 0x251   :  { %1459 = vmatpush.msrb.mxu1 %v5489_v23  ;;  %1479 = vmatpush.msra.mxu2 %v5490_v12 }
 0x252   :  { %v4190_v6 = vadd.f32 %v1079_v54, %v1076_v49  ;;  %1389 = vmatpush.msrb.mxu0 %v5491_v36  ;;  %v5505_v49 = vld [vmem:[#allocation59_spill] sm:$0xff]  ;;  %v5506_v54 = vld [vmem:[#allocation61_spill] sm:$0xff] }
 0x253   :  { %1460 = vmatpush.msrb.mxu1 %v5492_v52  ;;  %1480 = vmatpush.msra.mxu2 %v5493_v22 }
 0x254   :  { %v1210_v5 = vrot.slane %v4190_v6, 4  ;;  %1390 = vmatpush.msrb.mxu0 %v5494_v21 }
 0x255   :  { %1461 = vmatpush.msrb.mxu1 %v5495_v17  ;;  %1481 = vmatpush.msra.mxu2 %v4010_v10 }
 0x256   :  { %1228 = vmatmul.f32.vlgmr.msrb.gmra.mxu3 %v1210_v5  ;;  %1248 = vmatmul.f32.vlgmr.msra.gmra.mxu0 %v1210_v5 }
 0x257   :  { %1268 = vmatmul.f32.vlgmr.msra.gmra.mxu1 %v1210_v5  ;;  %1391 = vmatpush.msrb.mxu0 %v4016_v30  ;;  %v5507_v5 = vld [vmem:[#allocation63_spill] sm:$0xff] }
 0x258   :  { %1491 = vmatpush.msrb.mxu3 %v4052_v56  ;;  %1462 = vmatpush.msrb.mxu1 %v4019_v16 }
 0x259   :  { %1392 = vmatpush.msrb.mxu0 %v4030_v48  ;;  %1482 = vmatpush.msra.mxu2 %v5496_v59 }
 0x25a   :  { %1492 = vmatpush.msrb.mxu3 %v5497_v29  ;;  %1463 = vmatpush.msrb.mxu1 %v5498_v34 }
 0x25b   :  { %1393 = vmatpush.msrb.mxu0 %v5499_v61  ;;  %1483 = vmatpush.msra.mxu2 %v5500_v37 }
 0x25c   :  { %1493 = vmatpush.msrb.mxu3 %v4079_v0  ;;  %1464 = vmatpush.msrb.mxu1 %v5501_v4  ;;  %v5508_v0 = vld [vmem:[#allocation14_spill] sm:$0xff] }
 0x25d   :  { %1394 = vmatpush.msrb.mxu0 %v5502_v8  ;;  %1484 = vmatpush.msra.mxu2 %v5503_v39 }
 0x25e   :  { %1494 = vmatpush.msrb.mxu3 %v4087_v47  ;;  %1465 = vmatpush.msrb.mxu1 %v5504_v46  ;;  %v5509_v47 = vld [vmem:[#allocation15_spill] sm:$0xff] }
 0x25f   :  { %1395 = vmatpush.msrb.mxu0 %v4073_v58  ;;  %1485 = vmatpush.msra.mxu2 %v5505_v49 }
 0x260   :  { %1495 = vmatpush.msrb.mxu3 %v4092_v2  ;;  %1466 = vmatpush.msrb.mxu1 %v5506_v54  ;;  %v5510_v2 = vld [vmem:[#allocation16_spill] sm:$0xff] }
 0x261   :  { %1486 = vmatpush.msra.mxu2 %v5507_v5  ;;  %1565 = vmatpush.msra.mxu0 %v3653_v1  ;;  %v5511_v1 = vld [vmem:[#allocation17_spill] sm:$0xff]  ;;  %v1081_v5 = vld [vmem:[#allocation2 + $0x28] sm:$0xc0] }
 0x262   :  { %1496 = vmatpush.msrb.mxu3 %v4097_v40  ;;  %1585 = vmatpush.msra.mxu1 %v5508_v0  ;;  %v5512_v0 = vld [vmem:[#allocation70_spill] sm:$0xff] }
 0x263   :  { %1566 = vmatpush.msra.mxu0 %v3666_v7  ;;  %v5513_v7 = vld [vmem:[#allocation19_spill] sm:$0xff] }
 0x264   :  { %1497 = vmatpush.msrb.mxu3 %v4102_v15  ;;  %1586 = vmatpush.msra.mxu1 %v5509_v47  ;;  %v5514_v15 = vld [vmem:[#allocation7_spill] sm:$0xff] }
 0x265   :  { %1567 = vmatpush.msra.mxu0 %v3679_v27  ;;  %v5515_v47 = vld [vmem:[#allocation71_spill] sm:$0xff]  ;;  %v5516_v27 = vld [vmem:[#allocation22_spill] sm:$0xff] }
 0x266   :  { %1498 = vmatpush.msrb.mxu3 %v4107_v24  ;;  %1587 = vmatpush.msra.mxu1 %v5510_v2  ;;  %v5517_v24 = vld [vmem:[#allocation8_spill] sm:$0xff] }
 0x267   :  { %1568 = vmatpush.msra.mxu0 %v3692_v38  ;;  %v5518_v2 = vld [vmem:[#allocation72_spill] sm:$0xff]  ;;  %v5519_v38 = vld [vmem:[#allocation25_spill] sm:$0xff] }
 0x268   :  { %1499 = vmatpush.msrb.mxu3 %v4112_v25  ;;  %1588 = vmatpush.msra.mxu1 %v5511_v1  ;;  %v5520_v25 = vld [vmem:[#allocation9_spill] sm:$0xff] }
 0x269   :  { %1569 = vmatpush.msra.mxu0 %v3705_v43  ;;  %v5521_v1 = vld [vmem:[#allocation73_spill] sm:$0xff]  ;;  %v5522_v43 = vld [vmem:[#allocation28_spill] sm:$0xff] }
 0x26a   :  { %1500 = vmatpush.msrb.mxu3 %v5512_v0  ;;  %1589 = vmatpush.msra.mxu1 %v5513_v7  ;;  %v5523_v0 = vld [vmem:[#allocation10_spill] sm:$0xff] }
 0x26b   :  { %1570 = vmatpush.msra.mxu0 %v5514_v15  ;;  %v5524_v7 = vld [vmem:[#allocation74_spill] sm:$0xff] }
 0x26c   :  { %1501 = vmatpush.msrb.mxu3 %v5515_v47  ;;  %1590 = vmatpush.msra.mxu1 %v5516_v27  ;;  %v5525_v15 = vld [vmem:[#allocation30_spill] sm:$0xff]  ;;  %v5526_v47 = vld [vmem:[#allocation11_spill] sm:$0xff] }
 0x26d   :  { %1571 = vmatpush.msra.mxu0 %v5517_v24  ;;  %v5527_v27 = vld [vmem:[#allocation75_spill] sm:$0xff]  ;;  %v5528_v24 = vld [vmem:[#allocation32_spill] sm:$0xff] }
 0x26e   :  { %1502 = vmatpush.msrb.mxu3 %v5518_v2  ;;  %1591 = vmatpush.msra.mxu1 %v5519_v38  ;;  %v5529_v2 = vld [vmem:[#allocation12_spill] sm:$0xff] }
 0x26f   :  { %1572 = vmatpush.msra.mxu0 %v5520_v25  ;;  %v5530_v38 = vld [vmem:[#allocation76_spill] sm:$0xff]  ;;  %v5531_v25 = vld [vmem:[#allocation34_spill] sm:$0xff] }
 0x270   :  { %1503 = vmatpush.msrb.mxu3 %v5521_v1  ;;  %1592 = vmatpush.msra.mxu1 %v5522_v43  ;;  %v5532_v1 = vld [vmem:[#allocation13_spill] sm:$0xff]  ;;  %v5533_v43 = vld [vmem:[#allocation36_spill] sm:$0xff] }
 0x271   :  { %1573 = vmatpush.msra.mxu0 %v5523_v0  ;;  %v5534_v0 = vld [vmem:[#allocation38_spill] sm:$0xff] }
 0x272   :  { %1504 = vmatpush.msrb.mxu3 %v5524_v7  ;;  %1593 = vmatpush.msra.mxu1 %v5525_v15  ;;  %v5535_v7 = vld [vmem:[#allocation40_spill] sm:$0xff]  ;;  %v5536_v15 = vld [vmem:[#allocation42_spill] sm:$0xff] }
 0x273   :  { %1574 = vmatpush.msra.mxu0 %v5526_v47  ;;  %v5537_v47 = vld [vmem:[#allocation44_spill] sm:$0xff] }
 0x274   :  { %1505 = vmatpush.msrb.mxu3 %v5527_v27  ;;  %1594 = vmatpush.msra.mxu1 %v5528_v24  ;;  %v5538_v27 = vld [vmem:[#allocation20_spill] sm:$0xff]  ;;  %v5539_v24 = vld [vmem:[#allocation18_spill] sm:$0xff] }
 0x275   :  { %1575 = vmatpush.msra.mxu0 %v5529_v2  ;;  %v5540_v2 = vld [vmem:[#allocation50_spill] sm:$0xff] }
 0x276   :  { %1506 = vmatpush.msrb.mxu3 %v5530_v38  ;;  %1595 = vmatpush.msra.mxu1 %v5531_v25  ;;  %v5541_v38 = vld [vmem:[#allocation23_spill] sm:$0xff] }
 0x277   :  { %1576 = vmatpush.msra.mxu0 %v5532_v1 }
 0x278   :  { %1596 = vmatpush.msra.mxu1 %v5533_v43 }
 0x279   :  { %1577 = vmatpush.msra.mxu0 %v5534_v0  ;;  %v1082_v0 = vld [vmem:[#allocation2 + $0x10] sm:$0xc0] }
 0x27a   :  { %1597 = vmatpush.msra.mxu1 %v5535_v7 }
 0x27b   :  { %1578 = vmatpush.msra.mxu0 %v5536_v15 }
 0x27c   :  { %1598 = vmatpush.msra.mxu1 %v5537_v47 }
 0x27d   :  { %1579 = vmatpush.msra.mxu0 %v5538_v27 }
 0x27e   :  { %1599 = vmatpush.msra.mxu1 %v5539_v24 }
 0x27f   :  { %1580 = vmatpush.msra.mxu0 %v5540_v2 }
 0x280   :  { %1600 = vmatpush.msra.mxu1 %v5541_v38 }
 0x2bc   :  { %v1107_v25 = vpop.f32.mrf.mxu0  ;;  %v1127_v1 = vpop.f32.mrf.mxu1 }
 0x2bd   :  { %v1151_v40 = vrot.slane %v1107_v25, 2  ;;  %v1174_v43 = vrot.slane %v1127_v1, 2 }
 0x2bf   :  { %v1153_v54 = vadd.f32 %v1151_v40, %v1081_v5  ;;  %v1176_v7 = vadd.f32 %v1174_v43, %v1082_v0  ;;  %v1085_v40 = vld [vmem:[#allocation3 + $0x8] sm:$0xc0] }
 0x2c1   :  { %v2418_v58 = vmul.f32 -1.442695, %v1153_v54  ;;  %v2419_v15 = vmul.f32 -1.442695, %v1176_v7  ;;  %v4265_v7 = vld [vmem:[%s5086_s7] ss:$0 sm:$0xff] }
 0x2c3   :  { %2507 = vpow2.f32 %v2418_v58  ;;  %v1147_v1 = vpop.f32.mrf.mxu2 }
 0x2c4   :  { %2509 = vpow2.f32 %v2419_v15  ;;  %v1196_v15 = vadd.f32 %v4265_v7, %v1147_v1  ;;  %v1083_v1 = vld [vmem:[#allocation2 + $0x8] sm:$0xc0] }
 0x2c9   :  { %v2508_v47 = vpop.eup %2507 }
 0x2ca   :  { %v2510_v27 = vpop.eup %2509  ;;  %v1157_v49 = vadd.f32 1.0, %v2508_v47 }
 0x2cb   :  { %v1180_v24 = vadd.f32 1.0, %v2510_v27 }
 0x2cc   :  { %2511 = vrcp.f32 %v1157_v49  ;;  %v1169_v54 = vand.u32 2147483648, %v1157_v49  ;;  %v1167_v0 = vand.u32 2147483647, %v1157_v49  ;;  %vm1163_vm3 = vweird.f32 %v1157_v49 }
 0x2cd   :  { %2513 = vrcp.f32 %v1180_v24  ;;  %v1192_v48 = vand.u32 2147483648, %v1180_v24  ;;  %vm1186_vm7 = vweird.f32 %v1180_v24 }
 0x2ce   :  { %vm1168_vm5 = vcmp.eq.f32.partialorder %v1167_v0, 8.507059e+37 }
 0x2d2   :  { %v2512_v2 = vpop.eup %2511 }
 0x2d3   :  { %v2514_v38 = vpop.eup %2513  ;;  %v1159_v29 = vmul.f32 %v2512_v2, %v1157_v49  ;;  %v1249_v46 = vpop.f32.mrf.mxu0  ;;  %vm1164_vm2 = vweird.f32 %v2512_v2 }
 0x2d4   :  { %v1182_v25 = vmul.f32 %v2514_v38, %v1180_v24  ;;  %v1296_v8 = vrot.slane %v1249_v46, 2  ;;  %vm1165_vm4 = vmor %vm1163_vm3, %vm1164_vm2  ;;  %vm1187_vm6 = vweird.f32 %v2514_v38 }
 0x2d5   :  { %v1160_v56 = vsub.f32 1.0, %v1159_v29  ;;  %v1170_v29 = vor.u32 1.1754944e-38, %v1169_v54  ;;  %vm1188_vm8 = vmor %vm1186_vm7, %vm1187_vm6 }
 0x2d6   :  { %v1183_v5 = vsub.f32 1.0, %v1182_v25  ;;  %v1298_v43 = vadd.f32 %v1296_v8, %v1085_v40  ;;  %v1084_v40 = vld [vmem:[#allocation3] sm:$0xc0] }
 0x2d7   :  { %v1161_v58 = vmul.f32 %v2512_v2, %v1160_v56  ;;  %v1198_v56 = vrot.slane %v1196_v15, 2 }
 0x2d8   :  { %v2421_v47 = vmul.f32 -1.442695, %v1298_v43  ;;  %v1184_v27 = vmul.f32 %v2514_v38, %v1183_v5  ;;  %v1190_v5 = vand.u32 2147483647, %v1180_v24 }
 0x2d9   :  { %v1162_v39 = vadd.f32 %v2512_v2, %v1161_v58  ;;  %v1229_v46 = vpop.f32.mrf.mxu3 }
 0x2da   :  { %2515 = vpow2.f32 %v2421_v47  ;;  %v1273_v25 = vrot.slane %v1229_v46, 2  ;;  %v1185_v37 = vadd.f32 %v2514_v38, %v1184_v27  ;;  %vm1191_vm9 = vcmp.eq.f32.partialorder %v1190_v5, 8.507059e+37  ;;  %v5555_v5 = vld [vmem:[#allocation62_spill] sm:$0xff] }
 0x2db   :  { %v1166_v8 = vsel %vm1165_vm4, %v2512_v2, %v1162_v39  ;;  %v1193_v2 = vor.u32 1.1754944e-38, %v1192_v48 }
 0x2dc   :  { %v1171_v4 = vsel %vm1168_vm5, %v1170_v29, %v1166_v8  ;;  %v1275_v61 = vadd.f32 %v1273_v25, %v1084_v40  ;;  %v1189_v54 = vsel %vm1188_vm8, %v2514_v38, %v1185_v37  ;;  %v1269_v8 = vpop.f32.mrf.mxu1 }
 0x2dd   :  { %v1200_v34 = vmul.f32 %v1198_v56, %v1171_v4  ;;  %v1194_v0 = vsel %vm1191_vm9, %v1193_v2, %v1189_v54  ;;  %v1205_v4 = vrot.slane %v4158_v14, 6  ;;  %v4360_v54 = vld [vmem:[%s5085_s6 + $0x170] sm:$0xff] }
 0x2de   :  { %v2420_v43 = vmul.f32 -1.442695, %v1275_v61  ;;  %v1203_v47 = vsub.f32 1.0, %v1194_v0  ;;  %v4367_v2 = vld [vmem:[%s5085_s6 + $0x150] sm:$0xff] }
 0x2df   :  { %v1201_v49 = vadd.f32 %v1200_v34, %v1083_v1  ;;  %v1207_v34 = vmul.f32 %v1205_v4, %v1194_v0  ;;  %v4373_v0 = vld [vmem:[%s5085_s6 + $0x158] sm:$0xff] }
 0x2e0   :  { %v2516_v58 = vpop.eup %2515  ;;  %2517 = vpow2.f32 %v2420_v43  ;;  %v4380_v4 = vld [vmem:[%s5085_s6 + $0x138] sm:$0xff] }
 0x2e1   :  { %2519 = vtanh.f32 %v1201_v49  ;;  %v4268_v39 = vadd.f32 1.0, %v2516_v58  ;;  %v5556_v49 = vld [vmem:[#allocation63_spill] sm:$0xff]  ;;  %v4354_v58 = vld [vmem:[%s5085_s6 + $0x168] sm:$0xff] }
 0x2e3   :  { %2521 = vrcp.f32 %v4268_v39  ;;  %vm1308_vm15 = vweird.f32 %v4268_v39 }
 0x2e6   :  { %v2518_v15 = vpop.eup %2517 }
 0x2e7   :  { %v2520_v61 = vpop.eup %2519  ;;  %v1279_v27 = vadd.f32 1.0, %v2518_v15  ;;  %v5558_v15 = vld [vmem:[#allocation65_spill] sm:$0xff] }
 0x2e8   :  { %v1204_v24 = vmul.f32 %v2520_v61, %v1203_v47  ;;  %v4386_v47 = vld [vmem:[%s5085_s6 + $0x140] sm:$0xff]  ;;  %v5559_v61 = vld [vmem:[#allocation66_spill] sm:$0xff] }
 0x2e9   :  { %2523 = vrcp.f32 %v1279_v27  ;;  %v4272_v46 = vpop.eup %2521  ;;  %v1291_v40 = vand.u32 2147483648, %v1279_v27  ;;  %v1289_v1 = vand.u32 2147483647, %v1279_v27  ;;  %vm1285_vm11 = vweird.f32 %v1279_v27 }
 0x2ea   :  { %v1208_v37 = vadd.f32 %v1207_v34, %v1204_v24  ;;  %v1304_v48 = vmul.f32 %v4272_v46, %v4268_v39  ;;  %vm1309_vm14 = vweird.f32 %v4272_v46  ;;  %v4399_v24 = vld [vmem:[%s5085_s6 + $0x128] sm:$0xff]  ;;  %v5560_v34 = vld [vmem:[#allocation67_spill] sm:$0xff] }
 0x2eb   :  { %vm1290_vm13 = vcmp.eq.f32.partialorder %v1289_v1, 8.507059e+37  ;;  %vm1310_vm0 = vmor %vm1308_vm15, %vm1309_vm14  ;;  %v5564_v1 = vld [vmem:[#allocation71_spill] sm:$0xff] }
 0x2ec   :  { %v4274_v38 = vrot.slane %v1208_v37, 6  ;;  %v1305_v25 = vsub.f32 1.0, %v1304_v48  ;;  %v4412_v37 = vld [vmem:[%s5085_s6 + $0x110] sm:$0xff]  ;;  %v5561_v48 = vld [vmem:[#allocation68_spill] sm:$0xff] }
 0x2ee   :  { %1356 = vmatmul.f32.vlgmr.msrb.gmra.mxu2 %v4274_v38  ;;  %1376 = vmatmul.f32.vlgmr.msra.gmra.mxu3 %v4274_v38 }
 0x2ef   :  { %v2524_v29 = vpop.eup %2523  ;;  %1396 = vmatmul.f32.vlgmr.msrb.gmra.mxu0 %v4274_v38  ;;  %1605 = vmatpush.msrb.mxu2 %v3868_v51  ;;  %v4291_v51 = vld [vmem:[%s5088_s9] ss:$0 sm:$0xff] }
 0x2f0   :  { %v1281_v14 = vmul.f32 %v2524_v29, %v1279_v27  ;;  %1685 = vmatpush.msra.mxu3 %v3871_v60  ;;  %1705 = vmatpush.msrb.mxu0 %v3874_v62  ;;  %v1318_v60 = vadd.f32 %v4291_v51, %v1269_v8  ;;  %vm1286_vm10 = vweird.f32 %v2524_v29  ;;  %v4393_v27 = vld [vmem:[%s5085_s6 + $0x120] sm:$0xff]  ;;  %v4432_v8 = vld [vmem:[%s5085_s6 + $0xd8] sm:$0xff] }
 0x2f1   :  { %1606 = vmatpush.msrb.mxu2 %v3880_v50  ;;  %v1306_v50 = vmul.f32 %v4272_v46, %v1305_v25  ;;  %vm1287_vm12 = vmor %vm1285_vm11, %vm1286_vm10  ;;  %v5562_v25 = vld [vmem:[#allocation69_spill] sm:$0xff] }
 0x2f2   :  { %v1282_v56 = vsub.f32 1.0, %v1281_v14  ;;  %1686 = vmatpush.msra.mxu3 %v3883_v31  ;;  %1706 = vmatpush.msrb.mxu0 %v3886_v63  ;;  %v1292_v63 = vor.u32 1.1754944e-38, %v1291_v40  ;;  %v4425_v14 = vld [vmem:[%s5085_s6 + $0xf8] sm:$0xff] }
 0x2f3   :  { %1607 = vmatpush.msrb.mxu2 %v3892_v20  ;;  %v1320_v20 = vrot.slane %v1318_v60, 2  ;;  %v5563_v40 = vld [vmem:[#allocation70_spill] sm:$0xff]  ;;  %v4445_v60 = vld [vmem:[%s5085_s6 + $0xc0] sm:$0xff] }
 0x2f4   :  { %v1283_v62 = vmul.f32 %v2524_v29, %v1282_v56  ;;  %1687 = vmatpush.msra.mxu3 %v3896_v33  ;;  %1707 = vmatpush.msrb.mxu0 %v3899_v28  ;;  %v1307_v28 = vadd.f32 %v4272_v46, %v1306_v50  ;;  %v4438_v56 = vld [vmem:[%s5085_s6 + $0xe0] sm:$0xff]  ;;  %v4458_v50 = vld [vmem:[%s5085_s6 + $0xa8] sm:$0xff] }
 0x2f5   :  { %1608 = vmatpush.msrb.mxu2 %v3906_v3  ;;  %v1314_v3 = vand.u32 2147483648, %v4268_v39 }
 0x2f6   :  { %v1284_v31 = vadd.f32 %v2524_v29, %v1283_v62  ;;  %1688 = vmatpush.msra.mxu3 %v3909_v32  ;;  %1708 = vmatpush.msrb.mxu0 %v3912_v9  ;;  %v1086_v9 = vld [vmem:[#allocation3 + $0x20] sm:$0xc0]  ;;  %v4451_v62 = vld [vmem:[%s5085_s6 + $0xc8] sm:$0xff] }
 0x2f7   :  { %1609 = vmatpush.msrb.mxu2 %v3919_v55  ;;  %v1312_v55 = vand.u32 2147483647, %v4268_v39  ;;  %v5557_v39 = vld [vmem:[#allocation64_spill] sm:$0xff] }
 0x2f8   :  { %v1288_v43 = vsel %vm1287_vm12, %v2524_v29, %v1284_v31  ;;  %1689 = vmatpush.msra.mxu3 %v3922_v53  ;;  %1709 = vmatpush.msrb.mxu0 %v3925_v57  ;;  %v1311_v57 = vsel %vm1310_vm0, %v4272_v46, %v1307_v28  ;;  %v4406_v46 = vld [vmem:[%s5085_s6 + $0x108] sm:$0xff]  ;;  %v4419_v29 = vld [vmem:[%s5085_s6 + $0xf0] sm:$0xff]  ;;  %v4484_v28 = vld [vmem:[%s5085_s6 + $0x78] sm:$0xff] }
 0x2f9   :  { %v1293_v33 = vsel %vm1290_vm13, %v1292_v63, %v1288_v43  ;;  %1610 = vmatpush.msrb.mxu2 %v3933_v19  ;;  %v1315_v19 = vor.u32 1.1754944e-38, %v1314_v3  ;;  %vm1313_vm1 = vcmp.eq.f32.partialorder %v1312_v55, 8.507059e+37  ;;  %v4464_v31 = vld [vmem:[%s5085_s6 + $0xb0] sm:$0xff]  ;;  %v5565_v63 = vld [vmem:[#allocation72_spill] sm:$0xff]  ;;  %v4477_v43 = vld [vmem:[%s5085_s6 + $0x98] sm:$0xff] }
 0x2fa   :  { %v1322_v32 = vmul.f32 %v1320_v20, %v1293_v33  ;;  %1690 = vmatpush.msra.mxu3 %v5482_v42  ;;  %1710 = vmatpush.msrb.mxu0 %v5483_v41  ;;  %v4471_v20 = vld [vmem:[%s5085_s6 + $0x90] sm:$0xff]  ;;  %v4490_v3 = vld [vmem:[%s5085_s6 + $0x80] sm:$0xff]  ;;  %v4503_v55 = vld [vmem:[%s5085_s6 + $0x68] sm:$0xff] }
 0x2fb   :  { %1611 = vmatpush.msrb.mxu2 %v5484_v26  ;;  %v1316_v42 = vsel %vm1313_vm1, %v1315_v19, %v1311_v57  ;;  %v5566_v33 = vld [vmem:[#allocation73_spill] sm:$0xff]  ;;  %v4510_v57 = vld [vmem:[%s5085_s6 + $0x48] sm:$0xff] }
 0x2fc   :  { %v1323_v53 = vadd.f32 %v1322_v32, %v1086_v9  ;;  %1691 = vmatpush.msra.mxu3 %v5485_v11  ;;  %1711 = vmatpush.msrb.mxu0 %v3958_v45  ;;  %v1327_v45 = vrot.slane %v4190_v6, 6  ;;  %v5545_v6 = vld [vmem:[#allocation47_spill] sm:$0xff]  ;;  %v5567_v32 = vld [vmem:[#allocation74_spill] sm:$0xff]  ;;  %v4516_v19 = vld [vmem:[%s5085_s6 + $0x50] sm:$0xff] }
 0x2fd   :  { %1612 = vmatpush.msrb.mxu2 %v3967_v13  ;;  %v1325_v13 = vsub.f32 1.0, %v1316_v42  ;;  %v4497_v9 = vld [vmem:[%s5085_s6 + $0x60] sm:$0xff] }
 0x2fe   :  { %2525 = vtanh.f32 %v1323_v53  ;;  %1692 = vmatpush.msra.mxu3 %v5486_v44  ;;  %1712 = vmatpush.msrb.mxu0 %v5487_v18  ;;  %v1329_v11 = vmul.f32 %v1327_v45, %v1316_v42  ;;  %v5542_v18 = vld [vmem:[#allocation41_spill] sm:$0xff]  ;;  %v5568_v53 = vld [vmem:[#allocation75_spill] sm:$0xff]  ;;  %v5569_v42 = vld [vmem:[#allocation76_spill] sm:$0xff] }
 0x2ff   :  { %1613 = vmatpush.msrb.mxu2 %v5488_v35  ;;  %v5543_v35 = vld [vmem:[#allocation43_spill] sm:$0xff]  ;;  %v4523_v45 = vld [vmem:[%s5085_s6 + $0x30] sm:$0xff] }
 0x300   :  { %1693 = vmatpush.msra.mxu3 %v5489_v23  ;;  %1713 = vmatpush.msrb.mxu0 %v5490_v12  ;;  %v5544_v23 = vld [vmem:[#allocation45_spill] sm:$0xff] }
 0x301   :  { %1614 = vmatpush.msrb.mxu2 %v5491_v36  ;;  %v5547_v36 = vld [vmem:[#allocation52_spill] sm:$0xff] }
 0x302   :  { %1694 = vmatpush.msra.mxu3 %v5492_v52  ;;  %1714 = vmatpush.msrb.mxu0 %v5493_v22  ;;  %v5550_v52 = vld [vmem:[#allocation57_spill] sm:$0xff]  ;;  %v5551_v22 = vld [vmem:[#allocation58_spill] sm:$0xff] }
 0x303   :  { %1615 = vmatpush.msrb.mxu2 %v5494_v21  ;;  %v5552_v21 = vld [vmem:[#allocation59_spill] sm:$0xff] }
 0x304   :  { %v2526_v41 = vpop.eup %2525  ;;  %1695 = vmatpush.msra.mxu3 %v5495_v17  ;;  %1715 = vmatpush.msrb.mxu0 %v4010_v10  ;;  %v5546_v10 = vld [vmem:[#allocation49_spill] sm:$0xff]  ;;  %v5553_v17 = vld [vmem:[#allocation60_spill] sm:$0xff] }
 0x305   :  { %v1326_v26 = vmul.f32 %v2526_v41, %v1325_v13  ;;  %1616 = vmatpush.msrb.mxu2 %v4016_v30  ;;  %v5549_v30 = vld [vmem:[#allocation56_spill] sm:$0xff]  ;;  %v4529_v13 = vld [vmem:[%s5085_s6 + $0x38] sm:$0xff] }
 0x306   :  { %1696 = vmatpush.msra.mxu3 %v4019_v16  ;;  %1716 = vmatpush.msrb.mxu0 %v5496_v59  ;;  %v5548_v16 = vld [vmem:[#allocation55_spill] sm:$0xff]  ;;  %v5554_v59 = vld [vmem:[#allocation61_spill] sm:$0xff]  ;;  %v4535_v41 = vld [vmem:[%s5085_s6 + $0x18] sm:$0xff] }
 0x307   :  { %v1330_v44 = vadd.f32 %v1329_v11, %v1326_v26  ;;  %1617 = vmatpush.msrb.mxu2 %v5542_v18  ;;  %v4541_v26 = vld [vmem:[%s5085_s6 + $0x20] sm:$0xff] }
 0x308   :  { %1697 = vmatpush.msra.mxu3 %v5543_v35  ;;  %1717 = vmatpush.msrb.mxu0 %v5544_v23  ;;  %v4547_v11 = vld [vmem:[%s5085_s6] sm:$0xff]  ;;  %v1332_v23 = vld [vmem:[#allocation2 + $0x18] sm:$0x3] }
 0x309   :  { %v4334_v12 = vrot.slane %v1330_v44, 6  ;;  %1618 = vmatpush.msrb.mxu2 %v5545_v6  ;;  %v4553_v44 = vld [vmem:[%s5085_s6 + $0x8] sm:$0xff]  ;;  %v1331_v18 = vld [vmem:[#allocation2] sm:$0x3] }
 0x30a   :  { %1698 = vmatpush.msra.mxu3 %v5546_v10  ;;  %1718 = vmatpush.msrb.mxu0 %v5547_v36 }
 0x30b   :  { %1467 = vmatmul.f32.vlgmr.msrb.gmra.mxu1 %v4334_v12  ;;  %1487 = vmatmul.f32.vlgmr.msra.gmra.mxu2 %v4334_v12 }
 0x30c   :  { %1507 = vmatmul.f32.vlgmr.msrb.gmra.mxu3 %v4334_v12  ;;  %1725 = vmatpush.msrb.mxu1 %v5548_v16 }
 0x30d   :  { %1619 = vmatpush.msrb.mxu2 %v5549_v30  ;;  %1699 = vmatpush.msra.mxu3 %v5550_v52 }
 0x30e   :  { %1726 = vmatpush.msrb.mxu1 %v5551_v22  ;;  %1719 = vmatpush.msrb.mxu0 %v5552_v21 }
 0x30f   :  { %1620 = vmatpush.msrb.mxu2 %v5553_v17  ;;  %1700 = vmatpush.msra.mxu3 %v5554_v59 }
 0x310   :  { %1727 = vmatpush.msrb.mxu1 %v5555_v5  ;;  %1720 = vmatpush.msrb.mxu0 %v5556_v49 }
 0x311   :  { %1814 = vmatpush.msra.mxu2 %v4354_v58  ;;  %1834 = vmatpush.msrb.mxu3 %v4360_v54 }
 0x312   :  { %1728 = vmatpush.msrb.mxu1 %v5557_v39 }
 0x313   :  { %1815 = vmatpush.msra.mxu2 %v4367_v2  ;;  %1835 = vmatpush.msrb.mxu3 %v4373_v0 }
 0x314   :  { %1729 = vmatpush.msrb.mxu1 %v5558_v15 }
 0x315   :  { %1816 = vmatpush.msra.mxu2 %v4380_v4  ;;  %1836 = vmatpush.msrb.mxu3 %v4386_v47 }
 0x316   :  { %1730 = vmatpush.msrb.mxu1 %v5559_v61  ;;  %v1334_v61 = vld [vmem:[#allocation3 + $0x18] sm:$0x3] }
 0x317   :  { %1817 = vmatpush.msra.mxu2 %v4393_v27  ;;  %1837 = vmatpush.msrb.mxu3 %v4399_v24 }
 0x318   :  { %1731 = vmatpush.msrb.mxu1 %v5560_v34 }
 0x319   :  { %1818 = vmatpush.msra.mxu2 %v4406_v46  ;;  %1838 = vmatpush.msrb.mxu3 %v4412_v37 }
 0x31a   :  { %1732 = vmatpush.msrb.mxu1 %v5561_v48 }
 0x31b   :  { %1819 = vmatpush.msra.mxu2 %v4419_v29  ;;  %1839 = vmatpush.msrb.mxu3 %v4425_v14 }
 0x31c   :  { %1733 = vmatpush.msrb.mxu1 %v5562_v25 }
 0x31d   :  { %1820 = vmatpush.msra.mxu2 %v4432_v8  ;;  %1840 = vmatpush.msrb.mxu3 %v4438_v56 }
 0x31e   :  { %1734 = vmatpush.msrb.mxu1 %v5563_v40 }
 0x31f   :  { %1821 = vmatpush.msra.mxu2 %v4445_v60  ;;  %1841 = vmatpush.msrb.mxu3 %v4451_v62 }
 0x320   :  { %1735 = vmatpush.msrb.mxu1 %v5564_v1 }
 0x321   :  { %1822 = vmatpush.msra.mxu2 %v4458_v50  ;;  %1842 = vmatpush.msrb.mxu3 %v4464_v31 }
 0x322   :  { %1736 = vmatpush.msrb.mxu1 %v5565_v63 }
 0x323   :  { %1823 = vmatpush.msra.mxu2 %v4471_v20  ;;  %1843 = vmatpush.msrb.mxu3 %v4477_v43 }
 0x324   :  { %1737 = vmatpush.msrb.mxu1 %v5566_v33 }
 0x325   :  { %1824 = vmatpush.msra.mxu2 %v4484_v28  ;;  %1844 = vmatpush.msrb.mxu3 %v4490_v3 }
 0x326   :  { %1738 = vmatpush.msrb.mxu1 %v5567_v32 }
 0x327   :  { %1825 = vmatpush.msra.mxu2 %v4497_v9  ;;  %1845 = vmatpush.msrb.mxu3 %v4503_v55 }
 0x328   :  { %1739 = vmatpush.msrb.mxu1 %v5568_v53 }
 0x329   :  { %1826 = vmatpush.msra.mxu2 %v4510_v57  ;;  %1846 = vmatpush.msrb.mxu3 %v4516_v19 }
 0x32a   :  { %1740 = vmatpush.msrb.mxu1 %v5569_v42 }
 0x32b   :  { %1827 = vmatpush.msra.mxu2 %v4523_v45  ;;  %1847 = vmatpush.msrb.mxu3 %v4529_v13 }
 0x32d   :  { %1828 = vmatpush.msra.mxu2 %v4535_v41  ;;  %1848 = vmatpush.msrb.mxu3 %v4541_v26 }
 0x32f   :  { %1829 = vmatpush.msra.mxu2 %v4547_v11  ;;  %1849 = vmatpush.msrb.mxu3 %v4553_v44 }
 0x36c   :  { %v1397_v33 = vpop.f32.mrf.mxu0 }
 0x371   :  { %v1357_v35 = vpop.f32.mrf.mxu2  ;;  %v1377_v6 = vpop.f32.mrf.mxu3 }
 0x372   :  { %v1400_v10 = vadd.f32 %v1357_v35, %v1331_v18  ;;  %v1420_v36 = vadd.f32 %v1377_v6, %v1332_v23  ;;  %v1440_v35 = vadd.f32 %v4265_v7, %v1397_v33  ;;  %v1335_v6 = vld [vmem:[#allocation3 + $0x28] sm:$0x3] }
 0x374   :  { %v2422_v16 = vmul.f32 -1.442695, %v1400_v10  ;;  %v2423_v30 = vmul.f32 -1.442695, %v1420_v36 }
 0x376   :  { %2527 = vpow2.f32 %v2422_v16 }
 0x377   :  { %2529 = vpow2.f32 %v2423_v30 }
 0x37c   :  { %v2528_v52 = vpop.eup %2527 }
 0x37d   :  { %v2530_v22 = vpop.eup %2529  ;;  %v1404_v21 = vadd.f32 1.0, %v2528_v52 }
 0x37e   :  { %v1424_v17 = vadd.f32 1.0, %v2530_v22 }
 0x37f   :  { %2531 = vrcp.f32 %v1404_v21  ;;  %v1416_v48 = vand.u32 2147483648, %v1404_v21  ;;  %v1414_v63 = vand.u32 2147483647, %v1404_v21  ;;  %vm1410_vm3 = vweird.f32 %v1404_v21 }
 0x380   :  { %2533 = vrcp.f32 %v1424_v17  ;;  %v1436_v52 = vand.u32 2147483648, %v1424_v17  ;;  %vm1430_vm7 = vweird.f32 %v1424_v17 }
 0x381   :  { %v1417_v18 = vor.u32 1.1754944e-38, %v1416_v48  ;;  %vm1415_vm5 = vcmp.eq.f32.partialorder %v1414_v63, 8.507059e+37 }
 0x385   :  { %v2532_v59 = vpop.eup %2531 }
 0x386   :  { %v2534_v5 = vpop.eup %2533  ;;  %v1406_v49 = vmul.f32 %v2532_v59, %v1404_v21  ;;  %vm1411_vm2 = vweird.f32 %v2532_v59 }
 0x387   :  { %v1426_v39 = vmul.f32 %v2534_v5, %v1424_v17  ;;  %vm1412_vm4 = vmor %vm1410_vm3, %vm1411_vm2  ;;  %vm1431_vm6 = vweird.f32 %v2534_v5 }
 0x388   :  { %v1407_v15 = vsub.f32 1.0, %v1406_v49  ;;  %v1468_v34 = vpop.f32.mrf.mxu1  ;;  %vm1432_vm8 = vmor %vm1430_vm7, %vm1431_vm6 }
 0x389   :  { %v1427_v25 = vsub.f32 1.0, %v1426_v39  ;;  %v1511_v40 = vadd.f32 %v1468_v34, %v1334_v61  ;;  %v1333_v39 = vld [vmem:[#allocation2 + $0x20] sm:$0x3] }
 0x38a   :  { %v1408_v1 = vmul.f32 %v2532_v59, %v1407_v15  ;;  %v1434_v15 = vand.u32 2147483647, %v1424_v17 }
 0x38b   :  { %v1428_v32 = vmul.f32 %v2534_v5, %v1427_v25  ;;  %v2424_v53 = vmul.f32 -1.442695, %v1511_v40 }
 0x38c   :  { %v1409_v42 = vadd.f32 %v2532_v59, %v1408_v1  ;;  %vm1435_vm9 = vcmp.eq.f32.partialorder %v1434_v15, 8.507059e+37  ;;  %v4588_v15 = vld [vmem:[#allocation4 + $0x158] sm:$0xff] }
 0x38d   :  { %2535 = vpow2.f32 %v2424_v53  ;;  %v1429_v30 = vadd.f32 %v2534_v5, %v1428_v32 }
 0x38e   :  { %v1413_v23 = vsel %vm1412_vm4, %v2532_v59, %v1409_v42  ;;  %v1488_v10 = vpop.f32.mrf.mxu2  ;;  %v1437_v59 = vor.u32 1.1754944e-38, %v1436_v52  ;;  %v4581_v52 = vld [vmem:[%s5085_s6 + $0x160] sm:$0xff] }
 0x38f   :  { %v1418_v36 = vsel %vm1415_vm5, %v1417_v18, %v1413_v23  ;;  %v1531_v16 = vadd.f32 %v1488_v10, %v1335_v6  ;;  %v1433_v34 = vsel %vm1432_vm8, %v2534_v5, %v1429_v30  ;;  %v4569_v23 = vld [vmem:[%s5085_s6 + $0x178] sm:$0xff]  ;;  %v4572_v10 = vld [vmem:[#allocation4 + $0x168] sm:$0xff]  ;;  %v1508_v30 = vpop.f32.mrf.mxu3 }
 0x390   :  { %v1441_v22 = vmul.f32 %v1440_v35, %v1418_v36  ;;  %v1438_v25 = vsel %vm1435_vm9, %v1437_v59, %v1433_v34  ;;  %v4575_v36 = vld [vmem:[#allocation4 + $0x170] sm:$0xff]  ;;  %v1551_v59 = vadd.f32 %v4291_v51, %v1508_v30 }
 0x391   :  { %v2425_v49 = vmul.f32 -1.442695, %v1531_v16  ;;  %v1444_v1 = vsub.f32 1.0, %v1438_v25  ;;  %v1446_v53 = vmul.f32 %v1438_v25, %v4274_v38  ;;  %v4599_v25 = vld [vmem:[#allocation4 + $0x138] sm:$0xff] }
 0x392   :  { %v1442_v21 = vadd.f32 %v1441_v22, %v1333_v39  ;;  %v4585_v39 = vld [vmem:[#allocation4 + $0x150] sm:$0xff] }
 0x393   :  { %v2536_v61 = vpop.eup %2535  ;;  %2537 = vpow2.f32 %v2425_v49 }
 0x394   :  { %v1515_v48 = vadd.f32 1.0, %v2536_v61  ;;  %2539 = vtanh.f32 %v1442_v21  ;;  %v4595_v61 = vld [vmem:[%s5085_s6 + $0x148] sm:$0xff] }
 0x396   :  { %2541 = vrcp.f32 %v1515_v48  ;;  %v1527_v35 = vand.u32 2147483648, %v1515_v48  ;;  %v1525_v6 = vand.u32 2147483647, %v1515_v48  ;;  %vm1521_vm11 = vweird.f32 %v1515_v48 }
 0x398   :  { %v1528_v21 = vor.u32 1.1754944e-38, %v1527_v35  ;;  %vm1526_vm13 = vcmp.eq.f32.partialorder %v1525_v6, 8.507059e+37  ;;  %v1336_v35 = vld [vmem:[#allocation3 + $0x10] sm:$0x3]  ;;  %v4622_v6 = vld [vmem:[%s5085_s6 + $0x118] sm:$0xff] }
 0x399   :  { %v2538_v40 = vpop.eup %2537 }
 0x39a   :  { %v2540_v63 = vpop.eup %2539  ;;  %v4557_v33 = vadd.f32 1.0, %v2538_v40  ;;  %v4602_v40 = vld [vmem:[#allocation4 + $0x140] sm:$0xff] }
 0x39b   :  { %v1445_v32 = vmul.f32 %v2540_v63, %v1444_v1  ;;  %v4608_v63 = vld [vmem:[%s5085_s6 + $0x130] sm:$0xff] }
 0x39c   :  { %v2542_v17 = vpop.eup %2541  ;;  %2543 = vrcp.f32 %v4557_v33  ;;  %vm1541_vm15 = vweird.f32 %v4557_v33 }
 0x39d   :  { %v1517_v42 = vmul.f32 %v2542_v17, %v1515_v48  ;;  %v4561_v18 = vadd.f32 %v1446_v53, %v1445_v32  ;;  %vm1522_vm10 = vweird.f32 %v2542_v17 }
 0x39e   :  { %vm1523_vm12 = vmor %vm1521_vm11, %vm1522_vm10 }
 0x39f   :  { %v1518_v5 = vsub.f32 1.0, %v1517_v42  ;;  %1581 = vmatmul.f32.vlgmr.msra.gmra.mxu0 %v4561_v18  ;;  %1601 = vmatmul.f32.vlgmr.msra.gmra.mxu1 %v4561_v18  ;;  %v4612_v42 = vld [vmem:[#allocation4 + $0x120] sm:$0xff] }
 0x3a0   :  { %1621 = vmatmul.f32.vlgmr.msrb.gmra.mxu2 %v4561_v18  ;;  %1854 = vmatpush.msra.mxu0 %v4569_v23 }
 0x3a1   :  { %v1519_v38 = vmul.f32 %v2542_v17, %v1518_v5  ;;  %1936 = vmatpush.msra.mxu1 %v4572_v10  ;;  %1956 = vmatpush.msrb.mxu2 %v4575_v36  ;;  %v4615_v5 = vld [vmem:[#allocation4 + $0x128] sm:$0xff] }
 0x3a2   :  { %v2544_v16 = vpop.eup %2543  ;;  %1855 = vmatpush.msra.mxu0 %v4581_v52 }
 0x3a3   :  { %v1537_v22 = vmul.f32 %v2544_v16, %v4557_v33  ;;  %v1520_v49 = vadd.f32 %v2542_v17, %v1519_v38  ;;  %1937 = vmatpush.msra.mxu1 %v4585_v39  ;;  %1957 = vmatpush.msrb.mxu2 %v4588_v15  ;;  %vm1542_vm14 = vweird.f32 %v2544_v16  ;;  %v1545_v38 = vand.u32 2147483647, %v4557_v33 }
 0x3a4   :  { %1856 = vmatpush.msra.mxu0 %v4595_v61  ;;  %vm1543_vm0 = vmor %vm1541_vm15, %vm1542_vm14 }
 0x3a5   :  { %v1538_v34 = vsub.f32 1.0, %v1537_v22  ;;  %v1524_v48 = vsel %vm1523_vm12, %v2542_v17, %v1520_v49  ;;  %1938 = vmatpush.msra.mxu1 %v4599_v25  ;;  %1958 = vmatpush.msrb.mxu2 %v4602_v40  ;;  %v1547_v17 = vand.u32 2147483648, %v4557_v33  ;;  %v4626_v49 = vld [vmem:[#allocation4 + $0x108] sm:$0xff]  ;;  %vm1546_vm1 = vcmp.eq.f32.partialorder %v1545_v38, 8.507059e+37  ;;  %v4663_v38 = vld [vmem:[#allocation4 + $0xc0] sm:$0xff] }
 0x3a6   :  { %v1529_v1 = vsel %vm1526_vm13, %v1528_v21, %v1524_v48  ;;  %1857 = vmatpush.msra.mxu0 %v4608_v63  ;;  %v4629_v21 = vld [vmem:[#allocation4 + $0x110] sm:$0xff]  ;;  %5574 = vst [vmem:[#allocation24_spill] sm:$0xff] %v4663_v38 }
 0x3a7   :  { %v1539_v32 = vmul.f32 %v2544_v16, %v1538_v34  ;;  %v1552_v53 = vmul.f32 %v1551_v59, %v1529_v1  ;;  %1939 = vmatpush.msra.mxu1 %v4612_v42  ;;  %1959 = vmatpush.msrb.mxu2 %v4615_v5  ;;  %v4636_v34 = vld [vmem:[%s5085_s6 + $0x100] sm:$0xff]  ;;  %v1548_v48 = vor.u32 1.1754944e-38, %v1547_v17  ;;  %v4639_v59 = vld [vmem:[#allocation4 + $0xf0] sm:$0xff]  ;;  %v4642_v1 = vld [vmem:[#allocation4 + $0xf8] sm:$0xff] }
 0x3a8   :  { %1858 = vmatpush.msra.mxu0 %v4622_v6  ;;  %v4660_v17 = vld [vmem:[%s5085_s6 + $0xd0] sm:$0xff] }
 0x3a9   :  { %v1553_v30 = vadd.f32 %v1552_v53, %v1336_v35  ;;  %v1540_v22 = vadd.f32 %v2544_v16, %v1539_v32  ;;  %1940 = vmatpush.msra.mxu1 %v4626_v49  ;;  %1960 = vmatpush.msrb.mxu2 %v4629_v21  ;;  %v4648_v32 = vld [vmem:[%s5085_s6 + $0xe8] sm:$0xff]  ;;  %v4651_v35 = vld [vmem:[#allocation4 + $0xd8] sm:$0xff]  ;;  %5573 = vst [vmem:[#allocation26_spill] sm:$0xff] %v4660_v17 }
 0x3aa   :  { %1859 = vmatpush.msra.mxu0 %v4636_v34  ;;  %5570 = vst [vmem:[#allocation21_spill] sm:$0xff] %v4648_v32 }
 0x3ab   :  { %2545 = vtanh.f32 %v1553_v30  ;;  %v1544_v33 = vsel %vm1543_vm0, %v2544_v16, %v1540_v22  ;;  %1941 = vmatpush.msra.mxu1 %v4639_v59  ;;  %1961 = vmatpush.msrb.mxu2 %v4642_v1  ;;  %5571 = vst [vmem:[#allocation53_spill] sm:$0xff] %v4651_v35  ;;  %v4654_v16 = vld [vmem:[#allocation4 + $0xe0] sm:$0xff]  ;;  %v4666_v30 = vld [vmem:[#allocation4 + $0xc8] sm:$0xff] }
 0x3ac   :  { %1860 = vmatpush.msra.mxu0 %v4648_v32  ;;  %v1549_v53 = vsel %vm1546_vm1, %v1548_v48, %v1544_v33  ;;  %5572 = vst [vmem:[#allocation46_spill] sm:$0xff] %v4654_v16  ;;  %v4672_v33 = vld [vmem:[%s5085_s6 + $0xb8] sm:$0xff] }
 0x3ad   :  { %1942 = vmatpush.msra.mxu1 %v4651_v35  ;;  %1962 = vmatpush.msrb.mxu2 %v4654_v16  ;;  %5575 = vst [vmem:[#allocation54_spill] sm:$0xff] %v4666_v30  ;;  %v1555_v22 = vsub.f32 1.0, %v1549_v53  ;;  %v4675_v16 = vld [vmem:[#allocation4 + $0xa8] sm:$0xff]  ;;  %v4685_v35 = vld [vmem:[%s5085_s6 + $0xa0] sm:$0xff]  ;;  %v4691_v32 = vld [vmem:[#allocation4 + $0x98] sm:$0xff] }
 0x3ae   :  { %1861 = vmatpush.msra.mxu0 %v4660_v17  ;;  %5576 = vst [vmem:[#allocation48_spill] sm:$0xff] %v4672_v33  ;;  %v4678_v17 = vld [vmem:[#allocation4 + $0xb0] sm:$0xff] }
 0x3af   :  { %1943 = vmatpush.msra.mxu1 %v4663_v38  ;;  %1963 = vmatpush.msrb.mxu2 %v4666_v30  ;;  %5577 = vst [vmem:[#allocation29_spill] sm:$0xff] %v4675_v16  ;;  %v1557_v30 = vmul.f32 %v1549_v53, %v4334_v12  ;;  %v4699_v12 = vld [vmem:[%s5085_s6 + $0x88] sm:$0xff]  ;;  %v4702_v53 = vld [vmem:[#allocation4 + $0x78] sm:$0xff] }
 0x3b0   :  { %1862 = vmatpush.msra.mxu0 %v4672_v33  ;;  %v4688_v33 = vld [vmem:[#allocation4 + $0x90] sm:$0xff]  ;;  %5578 = vst [vmem:[#allocation27_spill] sm:$0xff] %v4699_v12 }
 0x3b1   :  { %v2546_v48 = vpop.eup %2545  ;;  %1944 = vmatpush.msra.mxu1 %v4675_v16  ;;  %1964 = vmatpush.msrb.mxu2 %v4678_v17  ;;  %5579 = vst [vmem:[#allocation51_spill] sm:$0xff] %v4702_v53 }
 0x3b2   :  { %v1556_v38 = vmul.f32 %v2546_v48, %v1555_v22  ;;  %1863 = vmatpush.msra.mxu0 %v4685_v35  ;;  %v4705_v22 = vld [vmem:[#allocation4 + $0x80] sm:$0xff] }
 0x3b3   :  { %1945 = vmatpush.msra.mxu1 %v4688_v33  ;;  %1965 = vmatpush.msrb.mxu2 %v4691_v32  ;;  %5580 = vst [vmem:[#allocation31_spill] sm:$0xff] %v4705_v22  ;;  %v4720_v48 = vld [vmem:[#allocation4 + $0x60] sm:$0xff] }
 0x3b4   :  { %v4694_v16 = vadd.f32 %v1557_v30, %v1556_v38  ;;  %1864 = vmatpush.msra.mxu0 %v4699_v12  ;;  %v4714_v38 = vld [vmem:[%s5085_s6 + $0x70] sm:$0xff]  ;;  %v4717_v30 = vld [vmem:[#allocation4 + $0x178] sm:$0xff]  ;;  %5583 = vst [vmem:[#allocation37_spill] sm:$0xff] %v4720_v48  ;;  %v4787_v12 = vld [vmem:[#allocation4 + $0x100] sm:$0xff] }
 0x3b5   :  { %1946 = vmatpush.msra.mxu1 %v4702_v53  ;;  %1966 = vmatpush.msrb.mxu2 %v4705_v22  ;;  %5581 = vst [vmem:[#allocation33_spill] sm:$0xff] %v4714_v38  ;;  %v4726_v22 = vld [vmem:[%s5085_s6 + $0x58] sm:$0xff]  ;;  %v4729_v53 = vld [vmem:[#allocation4 + $0x68] sm:$0xff] }
 0x3b6   :  { %1701 = vmatmul.f32.vlgmr.msra.gmra.mxu3 %v4694_v16  ;;  %1721 = vmatmul.f32.vlgmr.msrb.gmra.mxu0 %v4694_v16  ;;  %5582 = vst [vmem:[#allocation35_spill] sm:$0xff] %v4717_v30 }
 0x3b7   :  { %1741 = vmatmul.f32.vlgmr.msrb.gmra.mxu1 %v4694_v16  ;;  %1865 = vmatpush.msra.mxu0 %v4714_v38  ;;  %5584 = vst [vmem:[#allocation39_spill] sm:$0xff] %v4726_v22  ;;  %v4732_v38 = vld [vmem:[#allocation4 + $0x160] sm:$0xff] }
 0x3b8   :  { %1976 = vmatpush.msra.mxu3 %v4717_v30  ;;  %1947 = vmatpush.msra.mxu1 %v4720_v48  ;;  %5585 = vst [vmem:[#allocation14_spill] sm:$0xff] %v4729_v53  ;;  %v4735_v30 = vld [vmem:[#allocation4 + $0x48] sm:$0xff]  ;;  %v4741_v48 = vld [vmem:[%s5085_s6 + $0x40] sm:$0xff] }
 0x3b9   :  { %1866 = vmatpush.msra.mxu0 %v4726_v22  ;;  %1967 = vmatpush.msrb.mxu2 %v4729_v53  ;;  %5586 = vst [vmem:[#allocation15_spill] sm:$0xff] %v4732_v38  ;;  %v4744_v22 = vld [vmem:[#allocation4 + $0x50] sm:$0xff]  ;;  %v4747_v53 = vld [vmem:[#allocation4 + $0x148] sm:$0xff] }
 0x3ba   :  { %1977 = vmatpush.msra.mxu3 %v4732_v38  ;;  %5587 = vst [vmem:[#allocation16_spill] sm:$0xff] %v4735_v30  ;;  %1948 = vmatpush.msra.mxu1 %v4735_v30  ;;  %v4750_v38 = vld [vmem:[#allocation4 + $0x30] sm:$0xff]  ;;  %v4756_v30 = vld [vmem:[%s5085_s6 + $0x28] sm:$0xff] }
 0x3bb   :  { %5588 = vst [vmem:[#allocation17_spill] sm:$0xff] %v4741_v48  ;;  %1867 = vmatpush.msra.mxu0 %v4741_v48  ;;  %1968 = vmatpush.msrb.mxu2 %v4744_v22  ;;  %v4759_v48 = vld [vmem:[#allocation4 + $0x38] sm:$0xff] }
 0x3bc   :  { %5589 = vst [vmem:[#allocation19_spill] sm:$0xff] %v4744_v22  ;;  %1978 = vmatpush.msra.mxu3 %v4747_v53  ;;  %1949 = vmatpush.msra.mxu1 %v4750_v38  ;;  %v4762_v22 = vld [vmem:[#allocation4 + $0x130] sm:$0xff] }
 0x3bd   :  { %5590 = vst [vmem:[#allocation7_spill] sm:$0xff] %v4747_v53  ;;  %1868 = vmatpush.msra.mxu0 %v4756_v30  ;;  %1969 = vmatpush.msrb.mxu2 %v4759_v48  ;;  %v4765_v53 = vld [vmem:[#allocation4 + $0x18] sm:$0xff] }
 0x3be   :  { %5591 = vst [vmem:[#allocation22_spill] sm:$0xff] %v4750_v38  ;;  %1979 = vmatpush.msra.mxu3 %v4762_v22  ;;  %1950 = vmatpush.msra.mxu1 %v4765_v53  ;;  %v4771_v38 = vld [vmem:[%s5085_s6 + $0x10] sm:$0xff] }
 0x3bf   :  { %5592 = vst [vmem:[#allocation8_spill] sm:$0xff] %v4756_v30  ;;  %1869 = vmatpush.msra.mxu0 %v4771_v38  ;;  %v4774_v30 = vld [vmem:[#allocation4 + $0x20] sm:$0xff] }
 0x3c0   :  { %5593 = vst [vmem:[#allocation25_spill] sm:$0xff] %v4759_v48  ;;  %1970 = vmatpush.msrb.mxu2 %v4774_v30  ;;  %v4777_v48 = vld [vmem:[#allocation4 + $0x118] sm:$0xff] }
 0x3c1   :  { %5594 = vst [vmem:[#allocation9_spill] sm:$0xff] %v4762_v22  ;;  %1980 = vmatpush.msra.mxu3 %v4777_v48  ;;  %v4780_v22 = vld [vmem:[#allocation4] sm:$0xff]  ;;  %2064 = vmatpush.msrb.mxu0 %v4354_v58  ;;  %v4802_v58 = vld [vmem:[#allocation4 + $0xb8] sm:$0xff] }
 0x3c2   :  { %5595 = vst [vmem:[#allocation28_spill] sm:$0xff] %v4765_v53  ;;  %1951 = vmatpush.msra.mxu1 %v4780_v22  ;;  %v4783_v53 = vld [vmem:[#allocation4 + $0x8] sm:$0xff] }
 0x3c3   :  { %5596 = vst [vmem:[#allocation10_spill] sm:$0xff] %v4771_v38  ;;  %1971 = vmatpush.msrb.mxu2 %v4783_v53  ;;  %1981 = vmatpush.msra.mxu3 %v4787_v12  ;;  %v4792_v38 = vld [vmem:[#allocation4 + $0xe8] sm:$0xff] }
 0x3c4   :  { %5597 = vst [vmem:[#allocation30_spill] sm:$0xff] %v4777_v48  ;;  %2084 = vmatpush.msrb.mxu1 %v4360_v54  ;;  %2065 = vmatpush.msrb.mxu0 %v4367_v2  ;;  %v4797_v48 = vld [vmem:[#allocation4 + $0xd0] sm:$0xff]  ;;  %v4807_v54 = vld [vmem:[#allocation4 + $0xa0] sm:$0xff]  ;;  %v4812_v2 = vld [vmem:[#allocation4 + $0x88] sm:$0xff] }
 0x3c5   :  { %1982 = vmatpush.msra.mxu3 %v4792_v38 }
 0x3c6   :  { %2085 = vmatpush.msrb.mxu1 %v4373_v0  ;;  %2066 = vmatpush.msrb.mxu0 %v4380_v4  ;;  %v4817_v0 = vld [vmem:[#allocation4 + $0x70] sm:$0xff]  ;;  %v4822_v4 = vld [vmem:[#allocation4 + $0x58] sm:$0xff] }
 0x3c7   :  { %1983 = vmatpush.msra.mxu3 %v4797_v48 }
 0x3c8   :  { %2086 = vmatpush.msrb.mxu1 %v4386_v47  ;;  %2067 = vmatpush.msrb.mxu0 %v4393_v27  ;;  %v4827_v47 = vld [vmem:[#allocation4 + $0x40] sm:$0xff]  ;;  %v4832_v27 = vld [vmem:[#allocation4 + $0x28] sm:$0xff] }
 0x3c9   :  { %1984 = vmatpush.msra.mxu3 %v4802_v58 }
 0x3ca   :  { %2087 = vmatpush.msrb.mxu1 %v4399_v24  ;;  %2068 = vmatpush.msrb.mxu0 %v4406_v46  ;;  %v4837_v24 = vld [vmem:[#allocation4 + $0x10] sm:$0xff] }
 0x3cb   :  { %1985 = vmatpush.msra.mxu3 %v4807_v54  ;;  %5598 = vst [vmem:[#allocation11_spill] sm:$0xff] %v4837_v24 }
 0x3cc   :  { %2088 = vmatpush.msrb.mxu1 %v4412_v37  ;;  %2069 = vmatpush.msrb.mxu0 %v4419_v29 }
 0x3cd   :  { %1986 = vmatpush.msra.mxu3 %v4812_v2 }
 0x3ce   :  { %2089 = vmatpush.msrb.mxu1 %v4425_v14  ;;  %2070 = vmatpush.msrb.mxu0 %v4432_v8  ;;  %v1559_v8 = vld [vmem:[#allocation2] sm:$0xc] }
 0x3cf   :  { %1987 = vmatpush.msra.mxu3 %v4817_v0 }
 0x3d0   :  { %2090 = vmatpush.msrb.mxu1 %v4438_v56  ;;  %2071 = vmatpush.msrb.mxu0 %v4445_v60  ;;  %v1560_v56 = vld [vmem:[#allocation2 + $0x18] sm:$0xc] }
 0x3d1   :  { %1988 = vmatpush.msra.mxu3 %v4822_v4 }
 0x3d2   :  { %2091 = vmatpush.msrb.mxu1 %v4451_v62  ;;  %2072 = vmatpush.msrb.mxu0 %v4458_v50 }
 0x3d3   :  { %1989 = vmatpush.msra.mxu3 %v4827_v47 }
 0x3d4   :  { %2092 = vmatpush.msrb.mxu1 %v4464_v31  ;;  %2073 = vmatpush.msrb.mxu0 %v4471_v20 }
 0x3d5   :  { %1990 = vmatpush.msra.mxu3 %v4832_v27 }
 0x3d6   :  { %2093 = vmatpush.msrb.mxu1 %v4477_v43  ;;  %2074 = vmatpush.msrb.mxu0 %v4484_v28 }
 0x3d7   :  { %1991 = vmatpush.msra.mxu3 %v4837_v24 }
 0x3d8   :  { %2094 = vmatpush.msrb.mxu1 %v4490_v3  ;;  %2075 = vmatpush.msrb.mxu0 %v4497_v9 }
 0x3da   :  { %2095 = vmatpush.msrb.mxu1 %v4503_v55  ;;  %2076 = vmatpush.msrb.mxu0 %v4510_v57 }
 0x3dc   :  { %2096 = vmatpush.msrb.mxu1 %v4516_v19  ;;  %2077 = vmatpush.msrb.mxu0 %v4523_v45 }
 0x3de   :  { %2097 = vmatpush.msrb.mxu1 %v4529_v13  ;;  %2078 = vmatpush.msrb.mxu0 %v4535_v41 }
 0x3e0   :  { %2098 = vmatpush.msrb.mxu1 %v4541_v26  ;;  %2079 = vmatpush.msrb.mxu0 %v4547_v11  ;;  %v1563_v11 = vld [vmem:[#allocation3 + $0x28] sm:$0xc] }
 0x3e2   :  { %2099 = vmatpush.msrb.mxu1 %v4553_v44 }
 0x41c   :  { %v1582_v46 = vpop.f32.mrf.mxu0  ;;  %v1602_v37 = vpop.f32.mrf.mxu1 }
 0x41d   :  { %v1626_v29 = vrot.slane %v1582_v46, 6  ;;  %v1649_v14 = vrot.slane %v1602_v37, 6 }
 0x41f   :  { %v1628_v60 = vadd.f32 %v1626_v29, %v1559_v8  ;;  %v1651_v62 = vadd.f32 %v1649_v14, %v1560_v56 }
 0x421   :  { %v2426_v50 = vmul.f32 -1.442695, %v1628_v60  ;;  %v2427_v31 = vmul.f32 -1.442695, %v1651_v62 }
 0x423   :  { %2547 = vpow2.f32 %v2426_v50  ;;  %v1622_v13 = vpop.f32.mrf.mxu2 }
 0x424   :  { %2549 = vpow2.f32 %v2427_v31  ;;  %v1671_v8 = vadd.f32 %v4265_v7, %v1622_v13  ;;  %v1561_v7 = vld [vmem:[#allocation2 + $0x20] sm:$0xc] }
 0x429   :  { %v2548_v20 = vpop.eup %2547 }
 0x42a   :  { %v2550_v43 = vpop.eup %2549  ;;  %v1632_v28 = vadd.f32 1.0, %v2548_v20 }
 0x42b   :  { %v1655_v3 = vadd.f32 1.0, %v2550_v43 }
 0x42c   :  { %2551 = vrcp.f32 %v1632_v28  ;;  %v1644_v46 = vand.u32 2147483648, %v1632_v28  ;;  %v1642_v14 = vand.u32 2147483647, %v1632_v28  ;;  %vm1638_vm3 = vweird.f32 %v1632_v28 }
 0x42d   :  { %2553 = vrcp.f32 %v1655_v3  ;;  %v1667_v24 = vand.u32 2147483648, %v1655_v3  ;;  %vm1661_vm7 = vweird.f32 %v1655_v3 }
 0x42e   :  { %v1645_v31 = vor.u32 1.1754944e-38, %v1644_v46  ;;  %vm1643_vm5 = vcmp.eq.f32.partialorder %v1642_v14, 8.507059e+37 }
 0x432   :  { %v2552_v9 = vpop.eup %2551 }
 0x433   :  { %v2554_v55 = vpop.eup %2553  ;;  %v1634_v57 = vmul.f32 %v2552_v9, %v1632_v28  ;;  %v1722_v19 = vpop.f32.mrf.mxu0  ;;  %vm1639_vm2 = vweird.f32 %v2552_v9 }
 0x434   :  { %v1657_v45 = vmul.f32 %v2554_v55, %v1655_v3  ;;  %v1769_v41 = vrot.slane %v1722_v19, 6  ;;  %vm1640_vm4 = vmor %vm1638_vm3, %vm1639_vm2  ;;  %v1562_v19 = vld [vmem:[#allocation3 + $0x18] sm:$0xc]  ;;  %vm1662_vm6 = vweird.f32 %v2554_v55 }
 0x435   :  { %v1635_v26 = vsub.f32 1.0, %v1634_v57  ;;  %v1673_v57 = vrot.slane %v1671_v8, 6  ;;  %vm1663_vm8 = vmor %vm1661_vm7, %vm1662_vm6 }
 0x436   :  { %v1658_v44 = vsub.f32 1.0, %v1657_v45  ;;  %v1771_v37 = vadd.f32 %v1769_v41, %v1563_v11 }
 0x437   :  { %v1636_v29 = vmul.f32 %v2552_v9, %v1635_v26 }
 0x438   :  { %v1659_v56 = vmul.f32 %v2554_v55, %v1658_v44  ;;  %v2429_v60 = vmul.f32 -1.442695, %v1771_v37  ;;  %v1665_v44 = vand.u32 2147483647, %v1655_v3 }
 0x439   :  { %v1637_v62 = vadd.f32 %v2552_v9, %v1636_v29  ;;  %v1702_v50 = vpop.f32.mrf.mxu3  ;;  %v1668_v29 = vor.u32 1.1754944e-38, %v1667_v24 }
 0x43a   :  { %2555 = vpow2.f32 %v2429_v60  ;;  %v1746_v20 = vrot.slane %v1702_v50, 6  ;;  %v1660_v26 = vadd.f32 %v2554_v55, %v1659_v56  ;;  %vm1666_vm9 = vcmp.eq.f32.partialorder %v1665_v44, 8.507059e+37  ;;  %v5604_v44 = vld [vmem:[#allocation54_spill] sm:$0xff] }
 0x43b   :  { %v1641_v43 = vsel %vm1640_vm4, %v2552_v9, %v1637_v62  ;;  %v1681_v60 = vrot.slane %v4561_v18, 6 }
 0x43c   :  { %v1646_v45 = vsel %vm1643_vm5, %v1645_v31, %v1641_v43  ;;  %v1748_v41 = vadd.f32 %v1746_v20, %v1562_v19  ;;  %v1664_v46 = vsel %vm1663_vm8, %v2554_v55, %v1660_v26 }
 0x43d   :  { %v1675_v11 = vmul.f32 %v1673_v57, %v1646_v45  ;;  %v1669_v14 = vsel %vm1666_vm9, %v1668_v29, %v1664_v46  ;;  %v1742_v45 = vpop.f32.mrf.mxu1  ;;  %v5606_v46 = vld [vmem:[#allocation29_spill] sm:$0xff]  ;;  %v1801_v29 = vrot.slane %v4694_v16, 6  ;;  %v5614_v16 = vld [vmem:[#allocation16_spill] sm:$0xff] }
 0x43e   :  { %v2428_v13 = vmul.f32 -1.442695, %v1748_v41  ;;  %v1678_v56 = vsub.f32 1.0, %v1669_v14  ;;  %v1683_v31 = vmul.f32 %v1681_v60, %v1669_v14  ;;  %v5607_v14 = vld [vmem:[#allocation27_spill] sm:$0xff] }
 0x43f   :  { %v1676_v28 = vadd.f32 %v1675_v11, %v1561_v7  ;;  %v1791_v11 = vadd.f32 %v4291_v51, %v1742_v45  ;;  %v5609_v60 = vld [vmem:[#allocation31_spill] sm:$0xff]  ;;  %v5621_v45 = vld [vmem:[#allocation28_spill] sm:$0xff] }
 0x440   :  { %v2556_v37 = vpop.eup %2555  ;;  %2557 = vpow2.f32 %v2428_v13  ;;  %v5602_v13 = vld [vmem:[#allocation26_spill] sm:$0xff] }
 0x441   :  { %2559 = vtanh.f32 %v1676_v28  ;;  %v4852_v9 = vadd.f32 1.0, %v2556_v37  ;;  %v1793_v51 = vrot.slane %v1791_v11, 6  ;;  %v5605_v28 = vld [vmem:[#allocation48_spill] sm:$0xff]  ;;  %v5624_v11 = vld [vmem:[#allocation7_spill] sm:$0xff] }
 0x443   :  { %2561 = vrcp.f32 %v4852_v9  ;;  %vm1781_vm15 = vweird.f32 %v4852_v9 }
 0x446   :  { %v2558_v8 = vpop.eup %2557 }
 0x447   :  { %v2560_v62 = vpop.eup %2559  ;;  %v1752_v50 = vadd.f32 1.0, %v2558_v8 }
 0x448   :  { %v1679_v3 = vmul.f32 %v2560_v62, %v1678_v56  ;;  %v5608_v56 = vld [vmem:[#allocation51_spill] sm:$0xff] }
 0x449   :  { %2563 = vrcp.f32 %v1752_v50  ;;  %v4856_v20 = vpop.eup %2561  ;;  %v1764_v26 = vand.u32 2147483648, %v1752_v50  ;;  %v1762_v7 = vand.u32 2147483647, %v1752_v50  ;;  %vm1758_vm11 = vweird.f32 %v1752_v50 }
 0x44a   :  { %v4858_v55 = vadd.f32 %v1683_v31, %v1679_v3  ;;  %v1777_v24 = vmul.f32 %v4856_v20, %v4852_v9  ;;  %vm1782_vm14 = vweird.f32 %v4856_v20  ;;  %v5610_v3 = vld [vmem:[#allocation33_spill] sm:$0xff]  ;;  %v5615_v31 = vld [vmem:[#allocation19_spill] sm:$0xff] }
 0x44b   :  { %vm1763_vm13 = vcmp.eq.f32.partialorder %v1762_v7, 8.507059e+37  ;;  %vm1783_vm0 = vmor %vm1781_vm15, %vm1782_vm14  ;;  %v5626_v7 = vld [vmem:[#allocation30_spill] sm:$0xff] }
 0x44c   :  { %v1812_v43 = vrot.slane %v4858_v55, 2  ;;  %v1778_v19 = vsub.f32 1.0, %v1777_v24  ;;  %v5617_v24 = vld [vmem:[#allocation22_spill] sm:$0xff] }
 0x44e   :  { %1830 = vmatmul.f32.vlgmr.msra.gmra.mxu2 %v1812_v43  ;;  %1850 = vmatmul.f32.vlgmr.msrb.gmra.mxu3 %v1812_v43 }
 0x44f   :  { %v2564_v57 = vpop.eup %2563  ;;  %1870 = vmatmul.f32.vlgmr.msra.gmra.mxu0 %v1812_v43  ;;  %2104 = vmatpush.msra.mxu2 %v4569_v23  ;;  %v5616_v43 = vld [vmem:[#allocation17_spill] sm:$0xff] }
 0x450   :  { %v1754_v18 = vmul.f32 %v2564_v57, %v1752_v50  ;;  %2186 = vmatpush.msrb.mxu3 %v4572_v10  ;;  %2206 = vmatpush.msra.mxu0 %v4575_v36  ;;  %vm1759_vm10 = vweird.f32 %v2564_v57  ;;  %v1779_v10 = vmul.f32 %v4856_v20, %v1778_v19  ;;  %v5620_v19 = vld [vmem:[#allocation8_spill] sm:$0xff] }
 0x451   :  { %2105 = vmatpush.msra.mxu2 %v4581_v52  ;;  %vm1760_vm12 = vmor %vm1758_vm11, %vm1759_vm10  ;;  %v1765_v52 = vor.u32 1.1754944e-38, %v1764_v26  ;;  %v5623_v26 = vld [vmem:[#allocation10_spill] sm:$0xff] }
 0x452   :  { %v1755_v41 = vsub.f32 1.0, %v1754_v18  ;;  %2187 = vmatpush.msrb.mxu3 %v4585_v39  ;;  %2207 = vmatpush.msra.mxu0 %v4588_v15  ;;  %v5619_v18 = vld [vmem:[#allocation35_spill] sm:$0xff] }
 0x453   :  { %2106 = vmatpush.msra.mxu2 %v4595_v61  ;;  %v1780_v61 = vadd.f32 %v4856_v20, %v1779_v10 }
 0x454   :  { %v1756_v23 = vmul.f32 %v2564_v57, %v1755_v41  ;;  %2188 = vmatpush.msrb.mxu3 %v4599_v25  ;;  %2208 = vmatpush.msra.mxu0 %v4602_v40  ;;  %v1787_v25 = vand.u32 2147483648, %v4852_v9  ;;  %v5622_v41 = vld [vmem:[#allocation15_spill] sm:$0xff] }
 0x455   :  { %2107 = vmatpush.msra.mxu2 %v4608_v63  ;;  %v1564_v63 = vld [vmem:[#allocation3 + $0x10] sm:$0xc] }
 0x456   :  { %v1757_v36 = vadd.f32 %v2564_v57, %v1756_v23  ;;  %2189 = vmatpush.msrb.mxu3 %v4612_v42  ;;  %2209 = vmatpush.msra.mxu0 %v4615_v5  ;;  %v1785_v42 = vand.u32 2147483647, %v4852_v9  ;;  %v5599_v5 = vld [vmem:[#allocation21_spill] sm:$0xff] }
 0x457   :  { %2108 = vmatpush.msra.mxu2 %v4622_v6  ;;  %v5625_v23 = vld [vmem:[#allocation9_spill] sm:$0xff] }
 0x458   :  { %v1761_v39 = vsel %vm1760_vm12, %v2564_v57, %v1757_v36  ;;  %2190 = vmatpush.msrb.mxu3 %v4626_v49  ;;  %2210 = vmatpush.msra.mxu0 %v4629_v21  ;;  %v5600_v49 = vld [vmem:[#allocation53_spill] sm:$0xff]  ;;  %v5601_v21 = vld [vmem:[#allocation46_spill] sm:$0xff]  ;;  %vm1786_vm1 = vcmp.eq.f32.partialorder %v1785_v42, 8.507059e+37  ;;  %v1808_v42 = vld [vmem:[#allocation3 + $0x18] sm:$0x30] }
 0x459   :  { %v1766_v15 = vsel %vm1763_vm13, %v1765_v52, %v1761_v39  ;;  %2109 = vmatpush.msra.mxu2 %v4636_v34  ;;  %v1784_v34 = vsel %vm1783_vm0, %v4856_v20, %v1780_v61  ;;  %v5618_v57 = vld [vmem:[#allocation25_spill] sm:$0xff] }
 0x45a   :  { %v1795_v40 = vmul.f32 %v1793_v51, %v1766_v15  ;;  %2191 = vmatpush.msrb.mxu3 %v4639_v59  ;;  %2211 = vmatpush.msra.mxu0 %v4642_v1  ;;  %v1788_v59 = vor.u32 1.1754944e-38, %v1787_v25  ;;  %v5603_v1 = vld [vmem:[#allocation24_spill] sm:$0xff] }
 0x45b   :  { %2110 = vmatpush.msra.mxu2 %v5599_v5 }
 0x45c   :  { %v1796_v6 = vadd.f32 %v1795_v40, %v1564_v63  ;;  %2192 = vmatpush.msrb.mxu3 %v5600_v49  ;;  %2212 = vmatpush.msra.mxu0 %v5601_v21  ;;  %v1789_v37 = vsel %vm1786_vm1, %v1788_v59, %v1784_v34  ;;  %v4942_v21 = vld [vmem:[%s5086_s7] ss:$0 sm:$0xff] }
 0x45d   :  { %2111 = vmatpush.msra.mxu2 %v5602_v13  ;;  %v1798_v9 = vsub.f32 1.0, %v1789_v37  ;;  %v1803_v50 = vmul.f32 %v1801_v29, %v1789_v37 }
 0x45e   :  { %2565 = vtanh.f32 %v1796_v6  ;;  %2193 = vmatpush.msrb.mxu3 %v5603_v1  ;;  %2213 = vmatpush.msra.mxu0 %v5604_v44 }
 0x45f   :  { %2112 = vmatpush.msra.mxu2 %v5605_v28 }
 0x460   :  { %2194 = vmatpush.msrb.mxu3 %v5606_v46  ;;  %2214 = vmatpush.msra.mxu0 %v4678_v17  ;;  %v5611_v17 = vld [vmem:[#allocation37_spill] sm:$0xff] }
 0x461   :  { %2113 = vmatpush.msra.mxu2 %v4685_v35  ;;  %v5612_v35 = vld [vmem:[#allocation14_spill] sm:$0xff] }
 0x462   :  { %2195 = vmatpush.msrb.mxu3 %v4688_v33  ;;  %2215 = vmatpush.msra.mxu0 %v4691_v32  ;;  %v5613_v32 = vld [vmem:[#allocation39_spill] sm:$0xff] }
 0x463   :  { %2114 = vmatpush.msra.mxu2 %v5607_v14 }
 0x464   :  { %v2566_v8 = vpop.eup %2565  ;;  %2196 = vmatpush.msrb.mxu3 %v5608_v56  ;;  %2216 = vmatpush.msra.mxu0 %v5609_v60 }
 0x465   :  { %v1799_v62 = vmul.f32 %v2566_v8, %v1798_v9  ;;  %2115 = vmatpush.msra.mxu2 %v5610_v3  ;;  %v1809_v8 = vld [vmem:[#allocation3 + $0x28] sm:$0x30] }
 0x466   :  { %2197 = vmatpush.msrb.mxu3 %v5611_v17  ;;  %2217 = vmatpush.msra.mxu0 %v5612_v35  ;;  %v1807_v35 = vld [vmem:[#allocation2 + $0x20] sm:$0x30] }
 0x467   :  { %v4908_v33 = vadd.f32 %v1803_v50, %v1799_v62  ;;  %2116 = vmatpush.msra.mxu2 %v5613_v32 }
 0x468   :  { %2198 = vmatpush.msrb.mxu3 %v5614_v16  ;;  %2218 = vmatpush.msra.mxu0 %v5615_v31 }
 0x469   :  { %v1934_v20 = vrot.slane %v4908_v33, 2  ;;  %2117 = vmatpush.msra.mxu2 %v5616_v43 }
 0x46a   :  { %2199 = vmatpush.msrb.mxu3 %v5617_v24  ;;  %2219 = vmatpush.msra.mxu0 %v5618_v57 }
 0x46b   :  { %1952 = vmatmul.f32.vlgmr.msra.gmra.mxu1 %v1934_v20  ;;  %1972 = vmatmul.f32.vlgmr.msrb.gmra.mxu2 %v1934_v20 }
 0x46c   :  { %1992 = vmatmul.f32.vlgmr.msra.gmra.mxu3 %v1934_v20  ;;  %2226 = vmatpush.msra.mxu1 %v5619_v18 }
 0x46d   :  { %2118 = vmatpush.msra.mxu2 %v5620_v19  ;;  %2200 = vmatpush.msrb.mxu3 %v5621_v45  ;;  %v1929_v19 = vrot.slane %v4858_v55, 6  ;;  %v4952_v55 = vld [vmem:[%s5088_s9] ss:$0 sm:$0xff] }
 0x46e   :  { %2227 = vmatpush.msra.mxu1 %v5622_v41  ;;  %2220 = vmatpush.msra.mxu0 %v4774_v30 }
 0x46f   :  { %2119 = vmatpush.msra.mxu2 %v5623_v26  ;;  %2201 = vmatpush.msrb.mxu3 %v4780_v22 }
 0x470   :  { %2228 = vmatpush.msra.mxu1 %v5624_v11  ;;  %2221 = vmatpush.msra.mxu0 %v4783_v53  ;;  %v5627_v53 = vld [vmem:[#allocation11_spill] sm:$0xff] }
 0x472   :  { %2229 = vmatpush.msra.mxu1 %v5625_v23 }
 0x474   :  { %2230 = vmatpush.msra.mxu1 %v5626_v7 }
 0x476   :  { %2231 = vmatpush.msra.mxu1 %v4787_v12 }
 0x478   :  { %2232 = vmatpush.msra.mxu1 %v4792_v38 }
 0x47a   :  { %2233 = vmatpush.msra.mxu1 %v4797_v48  ;;  %v1805_v48 = vld [vmem:[#allocation2] sm:$0x30] }
 0x47c   :  { %2234 = vmatpush.msra.mxu1 %v4802_v58  ;;  %v1806_v58 = vld [vmem:[#allocation2 + $0x18] sm:$0x30] }
 0x47e   :  { %2235 = vmatpush.msra.mxu1 %v4807_v54 }
 0x480   :  { %2236 = vmatpush.msra.mxu1 %v4812_v2 }
 0x482   :  { %2237 = vmatpush.msra.mxu1 %v4817_v0 }
 0x484   :  { %2238 = vmatpush.msra.mxu1 %v4822_v4 }
 0x486   :  { %2239 = vmatpush.msra.mxu1 %v4827_v47 }
 0x488   :  { %2240 = vmatpush.msra.mxu1 %v4832_v27 }
 0x48a   :  { %2241 = vmatpush.msra.mxu1 %v5627_v53 }
 0x4cc   :  { %v1871_v61 = vpop.f32.mrf.mxu0 }
 0x4cd   :  { %v1920_v34 = vadd.f32 %v4942_v21, %v1871_v61 }
 0x4cf   :  { %v1922_v29 = vrot.slane %v1920_v34, 4  ;;  %v2051_v34 = vrot.slane %v4908_v33, 6  ;;  %v2319_v33 = vld [vmem:[%s5089_s10 + $0x70] sm:$0xff] }
 0x4d1   :  { %v1831_v12 = vpop.f32.mrf.mxu2  ;;  %v1851_v22 = vpop.f32.mrf.mxu3 }
 0x4d2   :  { %v1875_v38 = vrot.slane %v1831_v12, 4  ;;  %v1898_v30 = vrot.slane %v1851_v22, 4 }
 0x4d4   :  { %v1877_v10 = vadd.f32 %v1875_v38, %v1805_v48  ;;  %v1900_v54 = vadd.f32 %v1898_v30, %v1806_v58 }
 0x4d6   :  { %v2430_v36 = vmul.f32 -1.442695, %v1877_v10  ;;  %v2431_v2 = vmul.f32 -1.442695, %v1900_v54 }
 0x4d8   :  { %2567 = vpow2.f32 %v2430_v36 }
 0x4d9   :  { %2569 = vpow2.f32 %v2431_v2 }
 0x4de   :  { %v2568_v0 = vpop.eup %2567 }
 0x4df   :  { %v2570_v4 = vpop.eup %2569  ;;  %v1881_v52 = vadd.f32 1.0, %v2568_v0 }
 0x4e0   :  { %v1904_v47 = vadd.f32 1.0, %v2570_v4 }
 0x4e1   :  { %2571 = vrcp.f32 %v1881_v52  ;;  %v1893_v5 = vand.u32 2147483648, %v1881_v52  ;;  %v1891_v59 = vand.u32 2147483647, %v1881_v52  ;;  %vm1887_vm3 = vweird.f32 %v1881_v52 }
 0x4e2   :  { %2573 = vrcp.f32 %v1904_v47  ;;  %v1916_v50 = vand.u32 2147483648, %v1904_v47  ;;  %vm1910_vm7 = vweird.f32 %v1904_v47  ;;  %v1914_v32 = vand.u32 2147483647, %v1904_v47 }
 0x4e3   :  { %v1894_v46 = vor.u32 1.1754944e-38, %v1893_v5  ;;  %vm1892_vm5 = vcmp.eq.f32.partialorder %v1891_v59, 8.507059e+37 }
 0x4e4   :  { %v1917_v24 = vor.u32 1.1754944e-38, %v1916_v50  ;;  %vm1915_vm9 = vcmp.eq.f32.partialorder %v1914_v32, 8.507059e+37  ;;  %v2313_v32 = vld [vmem:[%s5089_s10 + $0x40] sm:$0xff] }
 0x4e7   :  { %v2572_v27 = vpop.eup %2571 }
 0x4e8   :  { %v2574_v51 = vpop.eup %2573  ;;  %v1883_v39 = vmul.f32 %v2572_v27, %v1881_v52  ;;  %v1953_v15 = vpop.f32.mrf.mxu1  ;;  %vm1888_vm2 = vweird.f32 %v2572_v27 }
 0x4e9   :  { %v1906_v25 = vmul.f32 %v2574_v51, %v1904_v47  ;;  %v1997_v40 = vrot.slane %v1953_v15, 4  ;;  %vm1889_vm4 = vmor %vm1887_vm3, %vm1888_vm2  ;;  %vm1911_vm6 = vweird.f32 %v2574_v51 }
 0x4ea   :  { %v1884_v63 = vsub.f32 1.0, %v1883_v39  ;;  %vm1912_vm8 = vmor %vm1910_vm7, %vm1911_vm6 }
 0x4eb   :  { %v1907_v6 = vsub.f32 1.0, %v1906_v25  ;;  %v1999_v49 = vadd.f32 %v1997_v40, %v1808_v42  ;;  %v1810_v25 = vld [vmem:[#allocation3 + $0x10] sm:$0x30] }
 0x4ec   :  { %v1885_v13 = vmul.f32 %v2572_v27, %v1884_v63 }
 0x4ed   :  { %v1908_v1 = vmul.f32 %v2574_v51, %v1907_v6  ;;  %v2432_v44 = vmul.f32 -1.442695, %v1999_v49 }
 0x4ee   :  { %v1886_v28 = vadd.f32 %v2572_v27, %v1885_v13  ;;  %v1973_v37 = vpop.f32.mrf.mxu2 }
 0x4ef   :  { %2575 = vpow2.f32 %v2432_v44  ;;  %v2020_v9 = vrot.slane %v1973_v37, 4  ;;  %v1909_v62 = vadd.f32 %v2574_v51, %v1908_v1  ;;  %v1993_v22 = vpop.f32.mrf.mxu3 }
 0x4f0   :  { %v1890_v14 = vsel %vm1889_vm4, %v2572_v27, %v1886_v28  ;;  %v2042_v54 = vadd.f32 %v4952_v55, %v1993_v22  ;;  %v2306_v22 = vld [vmem:[%s5089_s10 + $0x8] sm:$0xff] }
 0x4f1   :  { %v1895_v56 = vsel %vm1892_vm5, %v1894_v46, %v1890_v14  ;;  %v2022_v60 = vadd.f32 %v2020_v9, %v1809_v8  ;;  %v1913_v20 = vsel %vm1912_vm8, %v2574_v51, %v1909_v62  ;;  %v2320_v46 = vld [vmem:[%s5089_s10 + $0x78] sm:$0xff]  ;;  %v2318_v9 = vld [vmem:[%s5089_s10 + $0x68] sm:$0xff]  ;;  %v2315_v8 = vld [vmem:[%s5089_s10 + $0x50] sm:$0xff] }
 0x4f2   :  { %v1924_v3 = vmul.f32 %v1922_v29, %v1895_v56  ;;  %v1918_v57 = vsel %vm1915_vm9, %v1917_v24, %v1913_v20  ;;  %v2044_v27 = vrot.slane %v2042_v54, 4  ;;  %2363 = vmatpush.msra.mxu3 %v2320_v46  ;;  %v2317_v29 = vld [vmem:[%s5089_s10 + $0x60] sm:$0xff]  ;;  %v2316_v14 = vld [vmem:[%s5089_s10 + $0x58] sm:$0xff]  ;;  %v2314_v62 = vld [vmem:[%s5089_s10 + $0x48] sm:$0xff] }
 0x4f3   :  { %v2433_v17 = vmul.f32 -1.442695, %v2022_v60  ;;  %v1927_v45 = vsub.f32 1.0, %v1918_v57  ;;  %v1931_v23 = vmul.f32 %v1929_v19, %v1918_v57  ;;  %v2312_v20 = vld [vmem:[%s5089_s10 + $0x38] sm:$0xff]  ;;  %v2311_v57 = vld [vmem:[%s5089_s10 + $0x30] sm:$0xff]  ;;  %v2309_v19 = vld [vmem:[%s5089_s10 + $0x20] sm:$0xff] }
 0x4f4   :  { %v1925_v16 = vadd.f32 %v1924_v3, %v1807_v35  ;;  %2364 = vmatpush.msra.mxu3 %v2319_v33  ;;  %v2056_v35 = vld [vmem:[#allocation2 + $0x18] sm:$0xc0]  ;;  %v2058_v33 = vld [vmem:[#allocation3 + $0x18] sm:$0xc0] }
 0x4f5   :  { %v2576_v31 = vpop.eup %2575  ;;  %2577 = vpow2.f32 %v2433_v17  ;;  %v2055_v17 = vld [vmem:[#allocation2] sm:$0xc0] }
 0x4f6   :  { %v2003_v43 = vadd.f32 1.0, %v2576_v31  ;;  %2579 = vtanh.f32 %v1925_v16  ;;  %2365 = vmatpush.msra.mxu3 %v2318_v9 }
 0x4f8   :  { %2581 = vrcp.f32 %v2003_v43  ;;  %v2015_v48 = vand.u32 2147483648, %v2003_v43  ;;  %v2013_v10 = vand.u32 2147483647, %v2003_v43  ;;  %vm2009_vm11 = vweird.f32 %v2003_v43  ;;  %2366 = vmatpush.msra.mxu3 %v2317_v29 }
 0x4fa   :  { %v2016_v4 = vor.u32 1.1754944e-38, %v2015_v48  ;;  %vm2014_vm13 = vcmp.eq.f32.partialorder %v2013_v10, 8.507059e+37  ;;  %2367 = vmatpush.msra.mxu3 %v2316_v14  ;;  %v2334_v48 = vld [vmem:[%s5090_s11 + $0x68] sm:$0xff]  ;;  %v2333_v10 = vld [vmem:[%s5090_s11 + $0x60] sm:$0xff] }
 0x4fb   :  { %v2578_v18 = vpop.eup %2577 }
 0x4fc   :  { %v2580_v41 = vpop.eup %2579  ;;  %v2026_v26 = vadd.f32 1.0, %v2578_v18  ;;  %2368 = vmatpush.msra.mxu3 %v2315_v8  ;;  %v2310_v18 = vld [vmem:[%s5089_s10 + $0x28] sm:$0xff]  ;;  %v2327_v8 = vld [vmem:[%s5090_s11 + $0x30] sm:$0xff] }
 0x4fd   :  { %v1928_v11 = vmul.f32 %v2580_v41, %v1927_v45  ;;  %v2308_v45 = vld [vmem:[%s5089_s10 + $0x18] sm:$0xff] }
 0x4fe   :  { %v2582_v7 = vpop.eup %2581  ;;  %2583 = vrcp.f32 %v2026_v26  ;;  %v2038_v61 = vand.u32 2147483648, %v2026_v26  ;;  %v2036_v40 = vand.u32 2147483647, %v2026_v26  ;;  %vm2032_vm15 = vweird.f32 %v2026_v26  ;;  %2369 = vmatpush.msra.mxu3 %v2314_v62 }
 0x4ff   :  { %v2005_v53 = vmul.f32 %v2582_v7, %v2003_v43  ;;  %v4946_v12 = vadd.f32 %v1931_v23, %v1928_v11  ;;  %vm2010_vm10 = vweird.f32 %v2582_v7  ;;  %v2307_v23 = vld [vmem:[%s5089_s10 + $0x10] sm:$0xff] }
 0x500   :  { %vm2011_vm12 = vmor %vm2009_vm11, %vm2010_vm10  ;;  %v2039_v6 = vor.u32 1.1754944e-38, %v2038_v61  ;;  %vm2037_vm1 = vcmp.eq.f32.partialorder %v2036_v40, 8.507059e+37  ;;  %2370 = vmatpush.msra.mxu3 %v2313_v32 }
 0x501   :  { %v2006_v38 = vsub.f32 1.0, %v2005_v53  ;;  %v2062_v30 = vrot.slane %v4946_v12, 4  ;;  %v2336_v53 = vld [vmem:[%s5090_s11 + $0x78] sm:$0xff] }
 0x502   :  { %2371 = vmatpush.msra.mxu3 %v2312_v20  ;;  %2340 = vmatpush.msrb.mxu2 %v2336_v53 }
 0x503   :  { %v2007_v58 = vmul.f32 %v2582_v7, %v2006_v38  ;;  %2080 = vmatmul.f32.vlgmr.msrb.gmra.mxu0 %v2062_v30  ;;  %2100 = vmatmul.f32.vlgmr.msrb.gmra.mxu1 %v2062_v30  ;;  %v2335_v38 = vld [vmem:[%s5090_s11 + $0x70] sm:$0xff] }
 0x504   :  { %v2584_v36 = vpop.eup %2583  ;;  %2120 = vmatmul.f32.vlgmr.msra.gmra.mxu2 %v2062_v30  ;;  %2372 = vmatpush.msra.mxu3 %v2311_v57  ;;  %v2305_v30 = vld [vmem:[%s5089_s10] sm:$0xff] }
 0x505   :  { %v2028_v2 = vmul.f32 %v2584_v36, %v2026_v26  ;;  %v2008_v0 = vadd.f32 %v2582_v7, %v2007_v58  ;;  %vm2033_vm14 = vweird.f32 %v2584_v36  ;;  %2341 = vmatpush.msrb.mxu2 %v2335_v38 }
 0x506   :  { %vm2034_vm0 = vmor %vm2032_vm15, %vm2033_vm14  ;;  %2373 = vmatpush.msra.mxu3 %v2310_v18  ;;  %v2323_v18 = vld [vmem:[%s5090_s11 + $0x10] sm:$0xff] }
 0x507   :  { %v2029_v52 = vsub.f32 1.0, %v2028_v2  ;;  %v2012_v47 = vsel %vm2011_vm12, %v2582_v7, %v2008_v0  ;;  %2342 = vmatpush.msrb.mxu2 %v2334_v48 }
 0x508   :  { %v2017_v51 = vsel %vm2014_vm13, %v2016_v4, %v2012_v47  ;;  %2374 = vmatpush.msra.mxu3 %v2309_v19  ;;  %v2332_v47 = vld [vmem:[%s5090_s11 + $0x58] sm:$0xff] }
 0x509   :  { %v2030_v39 = vmul.f32 %v2584_v36, %v2029_v52  ;;  %v2046_v15 = vmul.f32 %v2044_v27, %v2017_v51  ;;  %2343 = vmatpush.msrb.mxu2 %v2333_v10  ;;  %v2059_v51 = vld [vmem:[#allocation3 + $0x28] sm:$0xc0] }
 0x50a   :  { %2375 = vmatpush.msra.mxu3 %v2308_v45  ;;  %v2179_v45 = vrot.slane %v4946_v12, 6 }
 0x50b   :  { %v2047_v63 = vadd.f32 %v2046_v15, %v1810_v25  ;;  %v2031_v42 = vadd.f32 %v2584_v36, %v2030_v39  ;;  %2344 = vmatpush.msrb.mxu2 %v2332_v47  ;;  %v2331_v25 = vld [vmem:[%s5090_s11 + $0x50] sm:$0xff] }
 0x50c   :  { %2376 = vmatpush.msra.mxu3 %v2307_v23 }
 0x50d   :  { %2585 = vtanh.f32 %v2047_v63  ;;  %v2035_v5 = vsel %vm2034_vm0, %v2584_v36, %v2031_v42  ;;  %2345 = vmatpush.msrb.mxu2 %v2331_v25 }
 0x50e   :  { %v2040_v49 = vsel %vm2037_vm1, %v2039_v6, %v2035_v5  ;;  %2377 = vmatpush.msra.mxu3 %v2306_v22  ;;  %v2321_v22 = vld [vmem:[%s5090_s11] sm:$0xff] }
 0x50f   :  { %v2049_v13 = vsub.f32 1.0, %v2040_v49  ;;  %v2053_v44 = vmul.f32 %v2051_v34, %v2040_v49  ;;  %v2330_v49 = vld [vmem:[%s5090_s11 + $0x48] sm:$0xff]  ;;  %v2329_v34 = vld [vmem:[%s5090_s11 + $0x40] sm:$0xff] }
 0x510   :  { %2378 = vmatpush.msra.mxu3 %v2305_v30  ;;  %2346 = vmatpush.msrb.mxu2 %v2330_v49 }
 0x512   :  { %2347 = vmatpush.msrb.mxu2 %v2329_v34 }
 0x513   :  { %v2586_v59 = vpop.eup %2585 }
 0x514   :  { %v2050_v1 = vmul.f32 %v2586_v59, %v2049_v13 }
 0x516   :  { %v4956_v28 = vadd.f32 %v2053_v44, %v2050_v1  ;;  %v2328_v44 = vld [vmem:[%s5090_s11 + $0x38] sm:$0xff] }
 0x517   :  { %2348 = vmatpush.msrb.mxu2 %v2328_v44 }
 0x518   :  { %v2184_v37 = vrot.slane %v4956_v28, 4 }
 0x519   :  { %2349 = vmatpush.msrb.mxu2 %v2327_v8 }
 0x51a   :  { %2202 = vmatmul.f32.vlgmr.msrb.gmra.mxu3 %v2184_v37  ;;  %2222 = vmatmul.f32.vlgmr.msra.gmra.mxu0 %v2184_v37 }
 0x51b   :  { %2242 = vmatmul.f32.vlgmr.msra.gmra.mxu1 %v2184_v37 }
 0x580   :  { %v2081_v56 = vpop.f32.mrf.mxu0  ;;  %v2101_v60 = vpop.f32.mrf.mxu1 }
 0x581   :  { %v2125_v50 = vrot.slane %v2081_v56, 2  ;;  %v2148_v3 = vrot.slane %v2101_v60, 2  ;;  %v2057_v56 = vld [vmem:[#allocation2 + $0x20] sm:$0xc0] }
 0x583   :  { %v2127_v16 = vadd.f32 %v2125_v50, %v2055_v17  ;;  %v2150_v31 = vadd.f32 %v2148_v3, %v2056_v35  ;;  %v2326_v17 = vld [vmem:[%s5090_s11 + $0x28] sm:$0xff] }
 0x584   :  { %2350 = vmatpush.msrb.mxu2 %v2326_v17 }
 0x585   :  { %v2434_v43 = vmul.f32 -1.442695, %v2127_v16  ;;  %v2435_v24 = vmul.f32 -1.442695, %v2150_v31  ;;  %v2325_v31 = vld [vmem:[%s5090_s11 + $0x20] sm:$0xff] }
 0x586   :  { %2351 = vmatpush.msrb.mxu2 %v2325_v31 }
 0x587   :  { %2587 = vpow2.f32 %v2434_v43  ;;  %v2121_v4 = vpop.f32.mrf.mxu2 }
 0x588   :  { %2589 = vpow2.f32 %v2435_v24  ;;  %v2170_v42 = vadd.f32 %v4942_v21, %v2121_v4  ;;  %v2324_v24 = vld [vmem:[%s5090_s11 + $0x18] sm:$0xff] }
 0x589   :  { %2352 = vmatpush.msrb.mxu2 %v2324_v24 }
 0x58a   :  { %v2172_v46 = vrot.slane %v2170_v42, 2 }
 0x58b   :  { %2353 = vmatpush.msrb.mxu2 %v2323_v18 }
 0x58d   :  { %v2588_v41 = vpop.eup %2587 }
 0x58e   :  { %v2590_v26 = vpop.eup %2589  ;;  %v2131_v11 = vadd.f32 1.0, %v2588_v41 }
 0x58f   :  { %v5001_v7 = vadd.f32 1.0, %v2590_v26  ;;  %v2322_v26 = vld [vmem:[%s5090_s11 + $0x8] sm:$0xff] }
 0x590   :  { %2591 = vrcp.f32 %v2131_v11  ;;  %v2143_v15 = vand.u32 2147483648, %v2131_v11  ;;  %v2141_v63 = vand.u32 2147483647, %v2131_v11  ;;  %vm2137_vm3 = vweird.f32 %v2131_v11  ;;  %2354 = vmatpush.msrb.mxu2 %v2322_v26 }
 0x591   :  { %2593 = vrcp.f32 %v5001_v7  ;;  %v2166_v62 = vand.u32 2147483648, %v5001_v7  ;;  %vm2160_vm7 = vweird.f32 %v5001_v7  ;;  %v2164_v3 = vand.u32 2147483647, %v5001_v7 }
 0x592   :  { %v2144_v1 = vor.u32 1.1754944e-38, %v2143_v15  ;;  %vm2142_vm5 = vcmp.eq.f32.partialorder %v2141_v63, 8.507059e+37  ;;  %2355 = vmatpush.msrb.mxu2 %v2321_v22 }
 0x593   :  { %v2167_v43 = vor.u32 1.1754944e-38, %v2166_v62  ;;  %vm2165_vm9 = vcmp.eq.f32.partialorder %v2164_v3, 8.507059e+37 }
 0x596   :  { %v2592_v58 = vpop.eup %2591 }
 0x597   :  { %v5022_v54 = vpop.eup %2593  ;;  %v2133_v36 = vmul.f32 %v2592_v58, %v2131_v11  ;;  %v2223_v2 = vpop.f32.mrf.mxu0  ;;  %vm2138_vm2 = vweird.f32 %v2592_v58 }
 0x598   :  { %v2156_v0 = vmul.f32 %v5022_v54, %v5001_v7  ;;  %v2270_v52 = vrot.slane %v2223_v2, 2  ;;  %vm2139_vm4 = vmor %vm2137_vm3, %vm2138_vm2  ;;  %vm2161_vm6 = vweird.f32 %v5022_v54 }
 0x599   :  { %v2134_v27 = vsub.f32 1.0, %v2133_v36  ;;  %vm2162_vm8 = vmor %vm2160_vm7, %vm2161_vm6  ;;  %v2243_v36 = vpop.f32.mrf.mxu1 }
 0x59a   :  { %v2157_v39 = vsub.f32 1.0, %v2156_v0  ;;  %v2272_v61 = vadd.f32 %v2270_v52, %v2059_v51  ;;  %v2292_v4 = vadd.f32 %v4952_v55, %v2243_v36 }
 0x59b   :  { %v2135_v40 = vmul.f32 %v2592_v58, %v2134_v27 }
 0x59c   :  { %v2437_v5 = vmul.f32 -1.442695, %v2272_v61  ;;  %v2158_v6 = vmul.f32 %v5022_v54, %v2157_v39  ;;  %v2294_v15 = vrot.slane %v2292_v4, 2 }
 0x59d   :  { %v2136_v13 = vadd.f32 %v2592_v58, %v2135_v40  ;;  %v2203_v59 = vpop.f32.mrf.mxu3 }
 0x59e   :  { %2595 = vpow2.f32 %v2437_v5  ;;  %v2247_v21 = vrot.slane %v2203_v59, 2  ;;  %v2159_v14 = vadd.f32 %v5022_v54, %v2158_v6  ;;  %v2060_v5 = vld [vmem:[#allocation3 + $0x10] sm:$0xc0]  ;;  %v2301_v59 = vrot.slane %v4956_v28, 6 }
 0x59f   :  { %v2140_v37 = vsel %vm2139_vm4, %v2592_v58, %v2136_v13 }
 0x5a0   :  { %v2145_v9 = vsel %vm2142_vm5, %v2144_v1, %v2140_v37  ;;  %v2249_v29 = vadd.f32 %v2247_v21, %v2058_v33  ;;  %v2163_v16 = vsel %vm2162_vm8, %v5022_v54, %v2159_v14 }
 0x5a1   :  { %v2174_v60 = vmul.f32 %v2172_v46, %v2145_v9  ;;  %v2168_v57 = vsel %vm2165_vm9, %v2167_v43, %v2163_v16  ;;  %v2446_v9 = vld [vmem:[%s5091_s12] ss:$0 sm:$0xff] }
 0x5a2   :  { %v2436_v50 = vmul.f32 -1.442695, %v2249_v29  ;;  %v2177_v41 = vsub.f32 1.0, %v2168_v57  ;;  %v2181_v53 = vmul.f32 %v2179_v45, %v2168_v57 }
 0x5a3   :  { %v2175_v35 = vadd.f32 %v2174_v60, %v2057_v56 }
 0x5a4   :  { %v2596_v32 = vpop.eup %2595  ;;  %2597 = vpow2.f32 %v2436_v50 }
 0x5a5   :  { %2599 = vtanh.f32 %v2175_v35  ;;  %v2276_v20 = vadd.f32 1.0, %v2596_v32 }
 0x5a7   :  { %2601 = vrcp.f32 %v2276_v20  ;;  %v2288_v63 = vand.u32 2147483648, %v2276_v20  ;;  %vm2282_vm15 = vweird.f32 %v2276_v20  ;;  %v2286_v6 = vand.u32 2147483647, %v2276_v20 }
 0x5a9   :  { %v2289_v34 = vor.u32 1.1754944e-38, %v2288_v63  ;;  %vm2287_vm1 = vcmp.eq.f32.partialorder %v2286_v6, 8.507059e+37 }
 0x5aa   :  { %v2598_v19 = vpop.eup %2597 }
 0x5ab   :  { %v2600_v11 = vpop.eup %2599  ;;  %v2253_v23 = vadd.f32 1.0, %v2598_v19 }
 0x5ac   :  { %v2178_v7 = vmul.f32 %v2600_v11, %v2177_v41 }
 0x5ad   :  { %2603 = vrcp.f32 %v2253_v23  ;;  %v2602_v38 = vpop.eup %2601  ;;  %v2265_v0 = vand.u32 2147483648, %v2253_v23  ;;  %v2263_v47 = vand.u32 2147483647, %v2253_v23  ;;  %vm2259_vm11 = vweird.f32 %v2253_v23 }
 0x5ae   :  { %v2182_v30 = vadd.f32 %v2181_v53, %v2178_v7  ;;  %v2278_v48 = vmul.f32 %v2602_v38, %v2276_v20  ;;  %vm2283_vm14 = vweird.f32 %v2602_v38 }
 0x5af   :  { %v2266_v39 = vor.u32 1.1754944e-38, %v2265_v0  ;;  %vm2264_vm13 = vcmp.eq.f32.partialorder %v2263_v47, 8.507059e+37  ;;  %vm2284_vm0 = vmor %vm2282_vm15, %vm2283_vm14 }
 0x5b0   :  { %v2361_v12 = vrot.slane %v2182_v30, 6  ;;  %v2279_v54 = vsub.f32 1.0, %v2278_v48 }
 0x5b2   :  { %2379 = vmatmul.f32.vlgmr.msra.gmra.mxu3 %v2361_v12  ;;  %v2280_v27 = vmul.f32 %v2602_v38, %v2279_v54 }
 0x5b3   :  { %v2604_v58 = vpop.eup %2603 }
 0x5b4   :  { %v2255_v10 = vmul.f32 %v2604_v58, %v2253_v23  ;;  %vm2260_vm10 = vweird.f32 %v2604_v58  ;;  %v2281_v40 = vadd.f32 %v2602_v38, %v2280_v27 }
 0x5b5   :  { %vm2261_vm12 = vmor %vm2259_vm11, %vm2260_vm10 }
 0x5b6   :  { %v2256_v2 = vsub.f32 1.0, %v2255_v10  ;;  %v2285_v49 = vsel %vm2284_vm0, %v2602_v38, %v2281_v40 }
 0x5b7   :  { %v2290_v13 = vsel %vm2287_vm1, %v2289_v34, %v2285_v49 }
 0x5b8   :  { %v2257_v52 = vmul.f32 %v2604_v58, %v2256_v2  ;;  %v2299_v1 = vsub.f32 1.0, %v2290_v13  ;;  %v2303_v37 = vmul.f32 %v2301_v59, %v2290_v13 }
 0x5ba   :  { %v2258_v51 = vadd.f32 %v2604_v58, %v2257_v52 }
 0x5bc   :  { %v2262_v61 = vsel %vm2261_vm12, %v2604_v58, %v2258_v51 }
 0x5bd   :  { %v2267_v25 = vsel %vm2264_vm13, %v2266_v39, %v2262_v61 }
 0x5be   :  { %v2296_v42 = vmul.f32 %v2294_v15, %v2267_v25 }
 0x5c0   :  { %v2297_v55 = vadd.f32 %v2296_v42, %v2060_v5 }
 0x5c2   :  { %2605 = vtanh.f32 %v2297_v55 }
 0x5c8   :  { %v2606_v21 = vpop.eup %2605 }
 0x5c9   :  { %v2300_v44 = vmul.f32 %v2606_v21, %v2299_v1 }
 0x5cb   :  { %v2304_v46 = vadd.f32 %v2303_v37, %v2300_v44 }
 0x5cd   :  { %v2338_v33 = vrot.slane %v2304_v46, 6 }
 0x5cf   :  { %2356 = vmatmul.f32.vlgmr.msrb.gmra.mxu2 %v2338_v33 }
 0x635   :  { %v2380_v29 = vpop.f32.mrf.mxu3 }
 0x652   :  { %v2357_v14 = vpop.f32.mrf.mxu2 }
 0x653   :  { %v2381_v8 = vadd.f32 %v2380_v29, %v2357_v14 }
 0x655   :  { %v2387_v56 = vadd.f32 %v2446_v9, %v2381_v8 }
 0x657   :  { %2388 = vst [vmem:[%s5092_s13] sm:$0x3] %v2387_v56 }
 0x658   :  { %2393 = vsyncpa [#allocation5], 1 }

</bundles_post_ra>
